<compile_context>
chip_gen: v7x
topology: tpu7x:2x2x1
jax: 0.10.0
libtpu: 0.0.40
codegen_flags: <defaults>
</compile_context>

<pallas_src>
import functools

import jax
import jax.numpy as jnp
from jax import lax
from jax.experimental import pallas as pl
from jax.experimental.pallas import tpu as pltpu


_LN_EPS = 1e-5
_NEG_INF = -1e30          # additive mask value; kept in f32 (never cast to bf16)
_LREP = 128               # lane-replication width for running max/sum scratch


def _vmem_limit_bytes():
    """Generation-dependent scoped-VMEM limit (v5e/v6e: ~100 MB, v7x: ~54 MB)."""
    try:
        info = pltpu.get_tpu_info()
        cap = int(info.vmem_capacity_bytes)
        return max(32 << 20, min(int(cap * 0.85), 100 << 20))
    except Exception:
        return 56 << 20   # conservative fallback (fits under v7x's 64 MiB)


def _layernorm_f32(h):
    # LayerNorm with elementwise_affine=False, eps=1e-5 (torch default), in f32.
    mu = jnp.mean(h, axis=-1, keepdims=True)
    var = jnp.mean(jnp.square(h - mu), axis=-1, keepdims=True)
    return (h - mu) * lax.rsqrt(var + _LN_EPS)


def _rep_minor(x, width):
    """x: (rows, _LREP) lane-replicated f32. Return an array broadcastable vs (rows, width)."""
    lrep = x.shape[-1]
    if width == lrep:
        return x
    if width % lrep == 0:
        return jnp.concatenate([x] * (width // lrep), axis=-1)
    if lrep % width == 0:
        return x[:, :width]
    return x[:, :1]


# --------------------------------------------------------------------------------------
# Kernel 1: LN1 + fused QKV projection (row-tiled).  Q is pre-scaled (scale folded into
# the Q columns of W_qkv in the wrapper); K is emitted pre-transposed per head.
# --------------------------------------------------------------------------------------
def _qkv_proj_kernel(x_ref, wqkv_ref, q_ref, kt_ref, v_ref,
                     *, dim_model, nb_heads, dim_heads):
    x = x_ref[0].astype(jnp.float32)                          # (TR, D)
    xn = _layernorm_f32(x)
    qkv = jnp.dot(xn.astype(jnp.bfloat16), wqkv_ref[...],     # bf16 x bf16 -> f32 acc
                  preferred_element_type=jnp.float32)         # (TR, 3D)
    D = dim_model
    for h in range(nb_heads):                                 # static loop: slice + store only
        lo = h * dim_heads
        q_ref[0, h] = qkv[:, lo:lo + dim_heads].astype(q_ref.dtype)           # (TR, dh)
        kt_ref[0, h] = qkv[:, D + lo:D + lo + dim_heads].T.astype(kt_ref.dtype)  # (dh, TR)
        v_ref[0, h] = qkv[:, 2 * D + lo:2 * D + lo + dim_heads].astype(v_ref.dtype)


# --------------------------------------------------------------------------------------
# Kernel 2: flash attention (causal) + out-proj + residual + LN2 + MLP + residual.
# Grid = (B, num_q_tiles, num_k_tiles); the K axis is the innermost reduction axis.
# --------------------------------------------------------------------------------------
def _attn_mlp_kernel(x_ref, q_ref, kt_ref, v_ref, wo_ref, wfc_ref, wproj_ref,
                     o_ref, m_sc, l_sc, acc_sc, ctx_sc,
                     *, nb_heads, dim_heads, tq, tk):
    qi = pl.program_id(1)
    ki = pl.program_id(2)
    nk = pl.num_programs(2)

    @pl.when(ki == 0)
    def _init():
        m_sc[...] = jnp.full(m_sc.shape, -jnp.inf, jnp.float32)
        l_sc[...] = jnp.zeros(l_sc.shape, jnp.float32)
        acc_sc[...] = jnp.zeros(acc_sc.shape, jnp.float32)

    q_start = qi * tq
    k_start = ki * tk

    def accumulate(apply_mask):
        if apply_mask:
            row = q_start + lax.broadcasted_iota(jnp.int32, (tq, tk), 0)
            col = k_start + lax.broadcasted_iota(jnp.int32, (tq, tk), 1)
            allowed = col <= row                               # in-kernel causal mask

        def head_body(h, carry):
            qh = q_ref[0, h]                                   # (TQ, dh) bf16, pre-scaled
            kth = kt_ref[0, h]                                 # (dh, TK) bf16 (pre-transposed)
            vh = v_ref[0, h]                                   # (TK, dh) bf16
            s = jnp.dot(qh, kth, preferred_element_type=jnp.float32)   # (TQ, TK) f32
            if apply_mask:
                s = jnp.where(allowed, s, _NEG_INF)
            m_prev = m_sc[h]                                   # (TQ, 128) lane-replicated
            l_prev = l_sc[h]
            m_new = jnp.maximum(m_prev, jnp.max(s, axis=-1, keepdims=True))
            alpha = jnp.exp(m_prev - m_new)                    # (TQ, 128)
            p = jnp.exp(s - _rep_minor(m_new, tk))             # (TQ, TK) f32
            l_sc[h] = alpha * l_prev + jnp.sum(p, axis=-1, keepdims=True)
            acc_sc[h] = (_rep_minor(alpha, dim_heads) * acc_sc[h]
                         + jnp.dot(p.astype(jnp.bfloat16), vh,
                                   preferred_element_type=jnp.float32))
            m_sc[h] = m_new
            return carry

        lax.fori_loop(0, nb_heads, head_body, None)

    fully_visible = k_start + tk <= q_start + 1                # tile strictly below diagonal

    @pl.when(fully_visible)
    def _full():
        accumulate(apply_mask=False)

    @pl.when(jnp.logical_and(jnp.logical_not(fully_visible), k_start < q_start + tq))
    def _diag():
        accumulate(apply_mask=True)

    @pl.when(ki == nk - 1)
    def _finalize():
        # Normalize each head into a lane-dense (TQ, D) scratch slab, then one full-width
        # out-projection matmul; static loop (runs once per Q tile).
        for h in range(nb_heads):
            lo = h * dim_heads
            inv_l = pl.reciprocal(l_sc[h], approx=True)        # (TQ, 128)
            ctx_sc[:, lo:lo + dim_heads] = acc_sc[h] * _rep_minor(inv_l, dim_heads)
        y = jnp.dot(ctx_sc[...].astype(jnp.bfloat16), wo_ref[...],
                    preferred_element_type=jnp.float32)        # (TQ, D) f32
        x1 = x_ref[0].astype(jnp.float32) + y                  # residual 1

        # MLP: LN2 -> FC -> exact-erf GELU -> proj -> residual 2
        xn2 = _layernorm_f32(x1)
        hdd = jnp.dot(xn2.astype(jnp.bfloat16), wfc_ref[...],
                      preferred_element_type=jnp.float32)      # (TQ, 4D)
        hdd = 0.5 * hdd * (1.0 + lax.erf(hdd * 0.7071067811865476))
        hdd = jnp.dot(hdd.astype(jnp.bfloat16), wproj_ref[...],
                      preferred_element_type=jnp.float32)      # (TQ, D)
        o_ref[0] = (x1 + hdd).astype(o_ref.dtype)


# --------------------------------------------------------------------------------------
# Wrapper
# --------------------------------------------------------------------------------------
def block_forward(x, params, *, dim_heads, attn_scale, tq=256, tk=256, tr=512):
    B, S, D = x.shape
    assert D % dim_heads == 0, "dim_model must be divisible by dim_heads"
    nb_heads = D // dim_heads
    hidden = params["w_fc"].shape[1]
    tq, tk, tr = min(tq, S), min(tk, S), min(tr, S)
    assert S % tq == 0 and S % tk == 0 and S % tr == 0, "S must divide the tile sizes"
    assert dim_heads % 8 == 0

    vmem_limit = _vmem_limit_bytes()

    # bf16 weights (matmul inputs); fold the softmax scale into the Q columns of W_qkv.
    scale = attn_scale / float(dim_heads)
    w_qkv = params["w_qkv"].astype(jnp.float32)
    w_qkv = w_qkv.at[:, :D].multiply(scale).astype(jnp.bfloat16)
    w_o = params["w_o"].astype(jnp.bfloat16)
    w_fc = params["w_fc"].astype(jnp.bfloat16)
    w_proj = params["w_proj"].astype(jnp.bfloat16)

    # ---- Kernel 1: LN1 + QKV projection (per-head layout, K pre-transposed) ------------
    q, kt, v = pl.pallas_call(
        functools.partial(_qkv_proj_kernel, dim_model=D, nb_heads=nb_heads,
                          dim_heads=dim_heads),
        out_shape=(
            jax.ShapeDtypeStruct((B, nb_heads, S, dim_heads), jnp.bfloat16),   # Q
            jax.ShapeDtypeStruct((B, nb_heads, dim_heads, S), jnp.bfloat16),   # K^T
            jax.ShapeDtypeStruct((B, nb_heads, S, dim_heads), jnp.bfloat16),   # V
        ),
        grid=(B, S // tr),
        in_specs=[
            pl.BlockSpec((1, tr, D), lambda b, r: (b, r, 0)),        # x row tile
            pl.BlockSpec((D, 3 * D), lambda b, r: (0, 0)),           # W_qkv (constant index)
        ],
        out_specs=[
            pl.BlockSpec((1, nb_heads, tr, dim_heads), lambda b, r: (b, 0, r, 0)),
            pl.BlockSpec((1, nb_heads, dim_heads, tr), lambda b, r: (b, 0, 0, r)),
            pl.BlockSpec((1, nb_heads, tr, dim_heads), lambda b, r: (b, 0, r, 0)),
        ],
        compiler_params=pltpu.CompilerParams(
            dimension_semantics=("parallel", "parallel"),
            vmem_limit_bytes=vmem_limit),
    )(x, w_qkv)

    # ---- Kernel 2: flash attention + out-proj + MLP ------------------------------------
    # K/V index maps are clamped to the last causally-visible K tile so skipped tiles
    # re-use the previous block (no wasted HBM DMA).
    def _last_k(qi):
        return ((qi + 1) * tq - 1) // tk

    kernel = functools.partial(_attn_mlp_kernel, nb_heads=nb_heads,
                               dim_heads=dim_heads, tq=tq, tk=tk)
    out = pl.pallas_call(
        kernel,
        out_shape=jax.ShapeDtypeStruct((B, S, D), x.dtype),
        grid=(B, S // tq, S // tk),
        in_specs=[
            pl.BlockSpec((1, tq, D), lambda b, qi, ki: (b, qi, 0)),                 # x (residual)
            pl.BlockSpec((1, nb_heads, tq, dim_heads),
                         lambda b, qi, ki: (b, 0, qi, 0)),                          # q
            pl.BlockSpec((1, nb_heads, dim_heads, tk),
                         lambda b, qi, ki: (b, 0, 0, jnp.minimum(ki, _last_k(qi)))),  # k^T (clamped)
            pl.BlockSpec((1, nb_heads, tk, dim_heads),
                         lambda b, qi, ki: (b, 0, jnp.minimum(ki, _last_k(qi)), 0)),  # v (clamped)
            pl.BlockSpec((D, D), lambda b, qi, ki: (0, 0)),          # W_o
            pl.BlockSpec((D, hidden), lambda b, qi, ki: (0, 0)),     # W_fc
            pl.BlockSpec((hidden, D), lambda b, qi, ki: (0, 0)),     # W_proj
        ],
        out_specs=pl.BlockSpec((1, tq, D), lambda b, qi, ki: (b, qi, 0)),
        scratch_shapes=[
            pltpu.VMEM((nb_heads, tq, _LREP), jnp.float32),          # running max (lane-repl.)
            pltpu.VMEM((nb_heads, tq, _LREP), jnp.float32),          # running sum (lane-repl.)
            pltpu.VMEM((nb_heads, tq, dim_heads), jnp.float32),      # per-head accumulator
            pltpu.VMEM((tq, D), jnp.float32),                        # lane-dense context slab
        ],
        # Megacore: B is the leading parallel axis, so dual-TC chips shard on batch first
        # (balanced work despite the causal triangle over qi).
        compiler_params=pltpu.CompilerParams(
            dimension_semantics=("parallel", "parallel", "arbitrary"),
            vmem_limit_bytes=vmem_limit),
    )(x, q, kt, v, w_o, w_fc, w_proj)
    return out


# --------------------------------------------------------------------------------------
# Pure-JAX f32 reference (mirrors the PyTorch forward with a causal mask).
# --------------------------------------------------------------------------------------
def block_reference(x, params, *, dim_heads, attn_scale):
    B, S, D = x.shape
    H = D // dim_heads
    x = x.astype(jnp.float32)

    def ln(h):
        mu = jnp.mean(h, -1, keepdims=True)
        var = jnp.mean(jnp.square(h - mu), -1, keepdims=True)
        return (h - mu) / jnp.sqrt(var + _LN_EPS)

    xn = ln(x)
    qkv = xn @ params["w_qkv"].astype(jnp.float32)                 # (B, S, 3D)
    qkv = qkv.reshape(B, S, 3, H, dim_heads)
    q = jnp.transpose(qkv[:, :, 0], (0, 2, 1, 3))                  # (B, H, S, dh)
    k = jnp.transpose(qkv[:, :, 1], (0, 2, 1, 3))
    v = jnp.transpose(qkv[:, :, 2], (0, 2, 1, 3))
    scale = attn_scale / dim_heads
    s = jnp.einsum("bhqd,bhkd->bhqk", q, k) * scale
    causal = jnp.tril(jnp.ones((S, S), dtype=bool))
    s = jnp.where(causal[None, None], s, _NEG_INF)
    p = jax.nn.softmax(s, axis=-1)
    y = jnp.einsum("bhqk,bhkd->bhqd", p, v)
    y = jnp.transpose(y, (0, 2, 1, 3)).reshape(B, S, D)
    y = y @ params["w_o"].astype(jnp.float32)
    x1 = x + y

    xn2 = ln(x1)
    h = xn2 @ params["w_fc"].astype(jnp.float32)
    h = 0.5 * h * (1.0 + lax.erf(h * 0.7071067811865476))
    h = h @ params["w_proj"].astype(jnp.float32)
    return x1 + h


# --------------------------------------------------------------------------------------
if __name__ == "__main__":
    # Small but lane-dense shapes; S=512 with TQ=TK=256 exercises the clamped-skip,
    # fully-visible, diagonal-masked and finalize paths.
    B, S, D = 2, 512, 256
    dim_heads = 128
    mlp_mult = 4
    attn_scale = 2.0
    hidden = mlp_mult * D

    key = jax.random.PRNGKey(0)
    kx, k1, k2, k3, k4 = jax.random.split(key, 5)
    x = jax.random.normal(kx, (B, S, D), dtype=jnp.float32)

    std = 0.05
    params = {
        "w_qkv": std * jax.random.normal(k1, (D, 3 * D), dtype=jnp.float32),
        "w_o":   std * jax.random.normal(k2, (D, D), dtype=jnp.float32),
        "w_fc":  std * jax.random.normal(k3, (D, hidden), dtype=jnp.float32),
        "w_proj": std * jax.random.normal(k4, (hidden, D), dtype=jnp.float32),
    }

    out = block_forward(x, params, dim_heads=dim_heads, attn_scale=attn_scale)
    out = jax.block_until_ready(out)

    ref = block_reference(x, params, dim_heads=dim_heads, attn_scale=attn_scale)
    assert out.shape == (B, S, D)
    max_err = float(jnp.max(jnp.abs(out - ref)))
    assert jnp.allclose(out, ref, atol=3e-2, rtol=3e-2), \
        f"mismatch vs reference (max abs err {max_err})"

    print("KERNEL_OK")
</pallas_src>

<mosaic_0001>
module attributes {stable_mosaic.version = 11 : i64} {
  func.func @_qkv_proj_kernel(%arg0: i32, %arg1: i32, %arg2: memref<1x512x256xf32, #tpu.memory_space<vmem>>, %arg3: memref<256x768xbf16, #tpu.memory_space<vmem>>, %arg4: memref<1x2x512x128xbf16, #tpu.memory_space<vmem>>, %arg5: memref<1x2x128x512xbf16, #tpu.memory_space<vmem>>, %arg6: memref<1x2x512x128xbf16, #tpu.memory_space<vmem>>) attributes {dimension_semantics = [#tpu.dimension_semantics<parallel>, #tpu.dimension_semantics<parallel>], iteration_bounds = array<i64: 2, 1>, scalar_prefetch = 0 : i64, scratch_operands = 0 : i64, tpu.core_type = #tpu.core_type<tc>, window_params = [{transform_indices = @transform_0, window_bounds = array<i64: 1, 512, 256>}, {pipeline_mode = #tpu.pipeline_mode<synchronous>, transform_indices = @transform_1, window_bounds = array<i64: 256, 768>}, {transform_indices = @transform_2, window_bounds = array<i64: 1, 2, 512, 128>}, {transform_indices = @transform_3, window_bounds = array<i64: 1, 2, 128, 512>}, {transform_indices = @transform_4, window_bounds = array<i64: 1, 2, 512, 128>}]} {
    %c0 = arith.constant 0 : index
    %c0_0 = arith.constant 0 : index
    %c0_1 = arith.constant 0 : index
    %0 = vector.load %arg2[%c0, %c0_0, %c0_1] : memref<1x512x256xf32, #tpu.memory_space<vmem>>, vector<1x512x256xf32>
    %1 = vector.shape_cast %0 : vector<1x512x256xf32> to vector<512x256xf32>
    %cst = arith.constant dense<0.000000e+00> : vector<512xf32>
    %2 = vector.multi_reduction <add>, %1, %cst [1] : vector<512x256xf32> to vector<512xf32>
    %3 = vector.shape_cast %2 : vector<512xf32> to vector<512x1xf32>
    %cst_2 = arith.constant 2.560000e+02 : f32
    %4 = vector.broadcast %cst_2 : f32 to vector<512x1xf32>
    %5 = arith.divf %3, %4 : vector<512x1xf32>
    %6 = vector.broadcast %5 : vector<512x1xf32> to vector<512x256xf32>
    %7 = arith.subf %1, %6 : vector<512x256xf32>
    %8 = arith.mulf %7, %7 : vector<512x256xf32>
    %cst_3 = arith.constant dense<0.000000e+00> : vector<512xf32>
    %9 = vector.multi_reduction <add>, %8, %cst_3 [1] : vector<512x256xf32> to vector<512xf32>
    %10 = vector.shape_cast %9 : vector<512xf32> to vector<512x1xf32>
    %cst_4 = arith.constant 2.560000e+02 : f32
    %11 = vector.broadcast %cst_4 : f32 to vector<512x1xf32>
    %12 = arith.divf %10, %11 : vector<512x1xf32>
    %13 = vector.broadcast %5 : vector<512x1xf32> to vector<512x256xf32>
    %14 = arith.subf %1, %13 : vector<512x256xf32>
    %cst_5 = arith.constant 9.99999974E-6 : f32
    %15 = vector.broadcast %cst_5 : f32 to vector<512x1xf32>
    %16 = arith.addf %12, %15 : vector<512x1xf32>
    %17 = math.rsqrt %16 : vector<512x1xf32>
    %18 = vector.broadcast %17 : vector<512x1xf32> to vector<512x256xf32>
    %19 = arith.mulf %14, %18 : vector<512x256xf32>
    %20 = arith.truncf %19 : vector<512x256xf32> to vector<512x256xbf16>
    %c0_6 = arith.constant 0 : index
    %c0_7 = arith.constant 0 : index
    %21 = vector.load %arg3[%c0_6, %c0_7] : memref<256x768xbf16, #tpu.memory_space<vmem>>, vector<256x768xbf16>
    %cst_8 = arith.constant dense<0.000000e+00> : vector<512x768xf32>
    %22 = tpu.matmul %20, %21, %cst_8 {dimension_numbers = #tpu.dot_dimension_numbers<[1], [0], [0], [1], [0, 0, 1, 1], [], []>} : vector<512x256xbf16>, vector<256x768xbf16>, vector<512x768xf32> -> vector<512x768xf32>
    %23 = vector.extract_strided_slice %22 {offsets = [0, 0], sizes = [512, 128], strides = [1, 1]} : vector<512x768xf32> to vector<512x128xf32>
    %24 = arith.truncf %23 : vector<512x128xf32> to vector<512x128xbf16>
    %c0_9 = arith.constant 0 : index
    %c0_10 = arith.constant 0 : index
    %c0_11 = arith.constant 0 : index
    %c0_12 = arith.constant 0 : index
    %25 = vector.load %arg4[%c0_9, %c0_10, %c0_11, %c0_12] : memref<1x2x512x128xbf16, #tpu.memory_space<vmem>>, vector<1x1x512x128xbf16>
    %26 = vector.shape_cast %25 : vector<1x1x512x128xbf16> to vector<512x128xbf16>
    %27 = vector.shape_cast %24 : vector<512x128xbf16> to vector<1x1x512x128xbf16>
    tpu.vector_store %arg4[%c0_9, %c0_10, %c0_11, %c0_12], %27 {strides = array<i32>} : memref<1x2x512x128xbf16, #tpu.memory_space<vmem>>, vector<1x1x512x128xbf16>,
    %28 = vector.extract_strided_slice %22 {offsets = [0, 256], sizes = [512, 128], strides = [1, 1]} : vector<512x768xf32> to vector<512x128xf32>
    %29 = tpu.transpose %28, [1, 0] : vector<512x128xf32> -> vector<128x512xf32>
    %30 = arith.truncf %29 : vector<128x512xf32> to vector<128x512xbf16>
    %c0_13 = arith.constant 0 : index
    %c0_14 = arith.constant 0 : index
    %c0_15 = arith.constant 0 : index
    %c0_16 = arith.constant 0 : index
    %31 = vector.load %arg5[%c0_13, %c0_14, %c0_15, %c0_16] : memref<1x2x128x512xbf16, #tpu.memory_space<vmem>>, vector<1x1x128x512xbf16>
    %32 = vector.shape_cast %31 : vector<1x1x128x512xbf16> to vector<128x512xbf16>
    %33 = vector.shape_cast %30 : vector<128x512xbf16> to vector<1x1x128x512xbf16>
    tpu.vector_store %arg5[%c0_13, %c0_14, %c0_15, %c0_16], %33 {strides = array<i32>} : memref<1x2x128x512xbf16, #tpu.memory_space<vmem>>, vector<1x1x128x512xbf16>,
    %34 = vector.extract_strided_slice %22 {offsets = [0, 512], sizes = [512, 128], strides = [1, 1]} : vector<512x768xf32> to vector<512x128xf32>
    %35 = arith.truncf %34 : vector<512x128xf32> to vector<512x128xbf16>
    %c0_17 = arith.constant 0 : index
    %c0_18 = arith.constant 0 : index
    %c0_19 = arith.constant 0 : index
    %c0_20 = arith.constant 0 : index
    %36 = vector.load %arg6[%c0_17, %c0_18, %c0_19, %c0_20] : memref<1x2x512x128xbf16, #tpu.memory_space<vmem>>, vector<1x1x512x128xbf16>
    %37 = vector.shape_cast %36 : vector<1x1x512x128xbf16> to vector<512x128xbf16>
    %38 = vector.shape_cast %35 : vector<512x128xbf16> to vector<1x1x512x128xbf16>
    tpu.vector_store %arg6[%c0_17, %c0_18, %c0_19, %c0_20], %38 {strides = array<i32>} : memref<1x2x512x128xbf16, #tpu.memory_space<vmem>>, vector<1x1x512x128xbf16>,
    %39 = vector.extract_strided_slice %22 {offsets = [0, 128], sizes = [512, 128], strides = [1, 1]} : vector<512x768xf32> to vector<512x128xf32>
    %40 = arith.truncf %39 : vector<512x128xf32> to vector<512x128xbf16>
    %c0_21 = arith.constant 0 : index
    %c1 = arith.constant 1 : index
    %c0_22 = arith.constant 0 : index
    %c0_23 = arith.constant 0 : index
    %41 = vector.load %arg4[%c0_21, %c1, %c0_22, %c0_23] : memref<1x2x512x128xbf16, #tpu.memory_space<vmem>>, vector<1x1x512x128xbf16>
    %42 = vector.shape_cast %41 : vector<1x1x512x128xbf16> to vector<512x128xbf16>
    %43 = vector.shape_cast %40 : vector<512x128xbf16> to vector<1x1x512x128xbf16>
    tpu.vector_store %arg4[%c0_21, %c1, %c0_22, %c0_23], %43 {strides = array<i32>} : memref<1x2x512x128xbf16, #tpu.memory_space<vmem>>, vector<1x1x512x128xbf16>,
    %44 = vector.extract_strided_slice %22 {offsets = [0, 384], sizes = [512, 128], strides = [1, 1]} : vector<512x768xf32> to vector<512x128xf32>
    %45 = tpu.transpose %44, [1, 0] : vector<512x128xf32> -> vector<128x512xf32>
    %46 = arith.truncf %45 : vector<128x512xf32> to vector<128x512xbf16>
    %c0_24 = arith.constant 0 : index
    %c1_25 = arith.constant 1 : index
    %c0_26 = arith.constant 0 : index
    %c0_27 = arith.constant 0 : index
    %47 = vector.load %arg5[%c0_24, %c1_25, %c0_26, %c0_27] : memref<1x2x128x512xbf16, #tpu.memory_space<vmem>>, vector<1x1x128x512xbf16>
    %48 = vector.shape_cast %47 : vector<1x1x128x512xbf16> to vector<128x512xbf16>
    %49 = vector.shape_cast %46 : vector<128x512xbf16> to vector<1x1x128x512xbf16>
    tpu.vector_store %arg5[%c0_24, %c1_25, %c0_26, %c0_27], %49 {strides = array<i32>} : memref<1x2x128x512xbf16, #tpu.memory_space<vmem>>, vector<1x1x128x512xbf16>,
    %50 = vector.extract_strided_slice %22 {offsets = [0, 640], sizes = [512, 128], strides = [1, 1]} : vector<512x768xf32> to vector<512x128xf32>
    %51 = arith.truncf %50 : vector<512x128xf32> to vector<512x128xbf16>
    %c0_28 = arith.constant 0 : index
    %c1_29 = arith.constant 1 : index
    %c0_30 = arith.constant 0 : index
    %c0_31 = arith.constant 0 : index
    %52 = vector.load %arg6[%c0_28, %c1_29, %c0_30, %c0_31] : memref<1x2x512x128xbf16, #tpu.memory_space<vmem>>, vector<1x1x512x128xbf16>
    %53 = vector.shape_cast %52 : vector<1x1x512x128xbf16> to vector<512x128xbf16>
    %54 = vector.shape_cast %51 : vector<512x128xbf16> to vector<1x1x512x128xbf16>
    tpu.vector_store %arg6[%c0_28, %c1_29, %c0_30, %c0_31], %54 {strides = array<i32>} : memref<1x2x512x128xbf16, #tpu.memory_space<vmem>>, vector<1x1x512x128xbf16>,
    return
  }
  func.func @transform_0(%arg0: i32, %arg1: i32) -> (i32, i32, i32) {
    %c0_i32 = arith.constant 0 : i32
    %c0_i32_0 = arith.constant 0 : i32
    return %arg0, %arg1, %c0_i32 : i32, i32, i32
  }
  func.func @transform_1(%arg0: i32, %arg1: i32) -> (i32, i32) {
    %c0_i32 = arith.constant 0 : i32
    %c0_i32_0 = arith.constant 0 : i32
    %c0_i32_1 = arith.constant 0 : i32
    return %c0_i32, %c0_i32_0 : i32, i32
  }
  func.func @transform_2(%arg0: i32, %arg1: i32) -> (i32, i32, i32, i32) {
    %c0_i32 = arith.constant 0 : i32
    %c0_i32_0 = arith.constant 0 : i32
    %c0_i32_1 = arith.constant 0 : i32
    return %arg0, %c0_i32, %arg1, %c0_i32_0 : i32, i32, i32, i32
  }
  func.func @transform_3(%arg0: i32, %arg1: i32) -> (i32, i32, i32, i32) {
    %c0_i32 = arith.constant 0 : i32
    %c0_i32_0 = arith.constant 0 : i32
    %c0_i32_1 = arith.constant 0 : i32
    return %arg0, %c0_i32, %c0_i32_0, %arg1 : i32, i32, i32, i32
  }
  func.func @transform_4(%arg0: i32, %arg1: i32) -> (i32, i32, i32, i32) {
    %c0_i32 = arith.constant 0 : i32
    %c0_i32_0 = arith.constant 0 : i32
    %c0_i32_1 = arith.constant 0 : i32
    return %arg0, %c0_i32, %arg1, %c0_i32_0 : i32, i32, i32, i32
  }
}

</mosaic_0001>

<bundles_post_ra>
// kernel: tpu_custom_call.1
= control target key start
LH: loop header
LB: loop body
LE: loop exit
PB: predicated region body
PF: predicated region fallthrough
CT: control target
= control target key end

     0   :  { %10 = vsyncpa [#allocation3], 0  ;;  %s10583_s0 = inlined_call_operand.hbm [shape: f32[2,512,256], index: 0, kind: input, shape index: {}]   ;;  %s10584_s1 = inlined_call_operand.hbm [shape: bf16[256,768], index: 1, kind: input, shape index: {}]   ;;  %s10585_s2 = inlined_call_operand.hbm [shape: bf16[2,2,512,128], index: 2, kind: output, shape index: {0}]   ;;  %s10586_s3 = inlined_call_operand.hbm [shape: bf16[2,2,128,512], index: 3, kind: output, shape index: {1}]   ;;  %s10587_s4 = inlined_call_operand.hbm [shape: bf16[2,2,512,128], index: 4, kind: output, shape index: {2}]  }
   0x1   :  { %12 = vsyncpa [#allocation3 + $0x1], 0 }
   0x2   :  { %13 = vsyncpa [#allocation6], 0 }
   0x3   :  { %14 = vsyncpa [#allocation4], 0 }
   0x4   :  { %16 = vsyncpa [#allocation4 + $0x1], 0 }
   0x5   :  { %17 = vsyncpa [#allocation9], 0 }
   0x6   :  { %19 = vsyncpa [#allocation9 + $0x1], 0  ;;  %s8147_s15 = smov 0   ;;  %s8149_s16 = smov 0  }
   0x7   :  { %s8151_s17 = smov 0   ;;  %s8153_s18 = smov 0  }
   0x8   :  { %s8155_s19 = smov 0   ;;  %s8157_s20 = smov 0  }
   0x9 LB: > { %s8178_s21 = sadd.s32 4294967295, %s8107_s20   ;;  %s5342_s22 = sadd.s32 4294967294, %s8107_s20   ;;  %s8107_s20 = sphi %s8157_s20, %s25_s20   ;;  %s8103_s19 = sphi %s8155_s19, %s11092_s19   ;;  %s8099_s18 = sphi %s8153_s18, %s11091_s18   ;;  %s8095_s17 = sphi %s8151_s17, %s11090_s17   ;;  %s8091_s16 = sphi %s8149_s16, %s11089_s16   ;;  %s8087_s15 = sphi %s8147_s15, %s11088_s15  }
   0xa   : > { %p59_p0 = scmp.ne.s32.totalorder %s8091_s16, %s8087_s15  ;;  %p10588_p1 = scmp.eq.s32.totalorder %s8178_s21, 0 }
   0xb   : > { %p112_p3 = scmp.eq.s32.totalorder %s5342_s22, 1  ;;  %p5343_p5 = scmp.ge.s32.totalorder %s8107_s20, 1 }
   0xc   : > { %p8189_p4 = por %p10588_p1, %p59_p0  ;;  %p175_p7 = scmp.lt.s32.totalorder %s8107_s20, 3 }
   0xd   : > { %p8194_p6 = por %p112_p3, %p59_p0  ;;  %s8109_s26 = smov [#allocation5]  }
   0xe   : > { %s10767_s23 = scalar_select %p8189_p4, 1, 0 }
   0xf   : > { %s10768_s24 = scalar_select %p8194_p6, 1, 0 }
  0x10   : > { %p8199_p8 = pnand %p5343_p5, %p175_p7  ;;  %s187_s27 = sshll.u32 %s8109_s26, 4  ;;  %s188_s27 = int_to_ptr.vmem [resolvable:$true] %s187_s27 }
  0x11   : > { %s37_s29 = sadd.s32 1, %s8103_s19  ;;  %s7903_s6 = scalar_lea.hbm %s10584_s1, 12288 }
  0x12   : > { %s10769_s25 = scalar_select %p8199_p8, 1, 0 }
  0x13   : > { %p7076_p9 = pneg %p8199_p8  ;;  %p7904_p12 = scmp.ne.s32.totalorder %s10584_s1, %s7903_s6 }
  0x14   : > { %p7910_p5 = scmp.lt.u32.totalorder %s7903_s6, %s10584_s1 }
  0x15   : > { %p8208_p11 = pnand %p7076_p9, %p10588_p1 }
  0x17   : > { %p7905_p13 = pneg %p8208_p11 }
  0x19   : > { %p7906_p0 = pnand %p7905_p13, %p7904_p12 }
  0x1b   : > { %p7907_p3 = pneg %p7906_p0 }
  0x1d   : > { %p7912_p7 = pnand %p7910_p5, %p7907_p3 }
  0x1f   : > { %7915 = shalt.err (!%p7912_p7)
}
  0x20   : > { %s7916_s11 = scalar_lea.vmem %s188_s27, 12288  ;;  %p7924_p2 = scmp.lt.s32.totalorder %s188_s27, %s188_s27 }
  0x21   : > { %p7917_p9 = scmp.ne.s32.totalorder %s188_s27, %s7916_s11  ;;  %p7925_p6 = scmp.lt.s32.totalorder %s7916_s11, %s7916_s11 }
  0x23   : > { %p7919_p10 = pnand %p7917_p9, %p7905_p13  ;;  %p7926_p4 = por %p7925_p6, %p7924_p2 }
  0x25   : > { %p7920_p1 = pneg %p7919_p10 }
  0x27   : > { %p7927_p8 = pnand %p7926_p4, %p7920_p1 }
  0x29   : > { %7930 = shalt.err (!%p7927_p8)
}
  0x2a   : > { %s8110_s12 = smov 384   ;;  %s8111_s13 = smov 24  }
  0x2b   : > { %7079 = dma.hbm_to_vmem [thread:$0]  (!%p8208_p11), %s10584_s1, 12288, %s188_s27, [#allocation6], %s8110_s12, %s8110_s12, %s8111_s13  }
  0x2c   : > { %p39_p1 = scmp.ge.s32.totalorder %s37_s29, 2  ;;  %s46_s30 = sadd.s32 1, %s8095_s17 }
  0x2d   : > { %p53_p2 = scmp.ne.s32.totalorder %s8095_s17, %s8091_s16  ;;  %p54_p4 = scmp.eq.s32.totalorder %s8107_s20, 0 }
  0x2e   : > { %s11094_s29 = smov (%p39_p1, %s37_s29), 0  ;;  %p10772_p8 = scmp.eq.s32.totalorder %s8178_s21, 1 }
  0x2f   : > { %p8235_p6 = por %p54_p4, %p53_p2  ;;  %s41_s28 = ssub.s32 %s8103_s19, %s11094_s29 }
  0x30   : > { %p8241_p10 = por %p10772_p8, %p53_p2  ;;  %p7095_p12 = scmp.lt.s32.totalorder %s8107_s20, 2 }
  0x31   : > { %p44_p11 = scmp.eq.s32.totalorder %s41_s28, 0  ;;  %s201_s27 = sand.u32 1, %s8095_s17  }
  0x32   : > { %s5346_s7 = sshll.u32 %s201_s27, 10  ;;  %s5942_s9 = sshll.u32 %s8103_s19, 14 }
  0x33   : > { %s8250_s8 = scalar_select %p44_p11, %s8095_s17, %s46_s30  }
  0x34   : > { %s8256_s12 = scalar_lea.hbm %s10583_s0, %s5942_s9  ;;  %s205_s13 = scalar_lea.vmem [#allocation2], %s5346_s7 }
  0x35   : > { %s215_s14 = sshll.u32 %s205_s13, 4  ;;  %p8262_p13 = pnand %p7095_p12, %p8235_p6  ;;  %s8258_s14 = int_to_ptr.vmem [resolvable:$true] %s215_s14 }
  0x36   : > { %s8266_s30 = scalar_lea.sflag [#allocation3], %s201_s27  ;;  %s7931_s28 = scalar_lea.hbm %s8256_s12, 16384 }
  0x37   : > { %p7932_p0 = scmp.ne.s32.totalorder %s8256_s12, %s7931_s28  ;;  %p7933_p3 = pneg %p8262_p13 }
  0x38   : > { %s7936_s5 = scalar_lea.hbm %s10583_s0, 32768  ;;  %p7937_p9 = scmp.lt.u32.totalorder %s8256_s12, %s10583_s0 }
  0x39   : > { %p7934_p5 = pnand %p7933_p3, %p7932_p0  ;;  %p7938_p1 = scmp.lt.u32.totalorder %s7936_s5, %s7931_s28 }
  0x3a   : > { %p7940_p4 = scmp.lt.u32.totalorder %s7931_s28, %s8256_s12 }
  0x3b   : > { %p7935_p7 = pneg %p7934_p5  ;;  %p7939_p2 = por %p7938_p1, %p7937_p9 }
  0x3d   : > { %p7941_p6 = por %p7940_p4, %p7939_p2 }
  0x3f   : > { %p7942_p8 = pnand %p7941_p6, %p7935_p7 }
  0x41   : > { %7945 = shalt.err (!%p7942_p8)
}
  0x42   : > { %s7946_s27 = scalar_lea.vmem %s8258_s14, 16384  ;;  %s8112_s13 = smov [#allocation2]  }
  0x43   : > { %p7947_p12 = scmp.ne.s32.totalorder %s8258_s14, %s7946_s27  ;;  %s7951_s7 = sshll.u32 %s8112_s13, 4  ;;  %s7952_s7 = int_to_ptr.vmem [resolvable:$false] %s7951_s7 }
  0x44   : > { %s7953_s9 = scalar_lea.vmem %s7952_s7, 32768  ;;  %p7954_p5 = scmp.lt.s32.totalorder %s8258_s14, %s7952_s7 }
  0x45   : > { %p7949_p11 = pnand %p7947_p12, %p7933_p3  ;;  %p7955_p9 = scmp.lt.s32.totalorder %s7953_s9, %s7946_s27 }
  0x47   : > { %p7950_p0 = pneg %p7949_p11  ;;  %p7956_p1 = por %p7955_p9, %p7954_p5 }
  0x49   : > { %p7957_p2 = pnand %p7956_p1, %p7950_p0 }
  0x4b   : > { %7960 = shalt.err (!%p7957_p2)
}
  0x4c   : > { %s8113_s28 = smov 256   ;;  %s8114_s5 = smov 16  }
  0x4d   : > { %7083 = dma.hbm_to_vmem [thread:$0]  (!%p8262_p13), %s8256_s12, 16384, %s8258_s14, %s8266_s30, %s8113_s28, %s8113_s28, %s8114_s5  }
  0x4e   : > { %p10775_p3 = scmp.ne.s32.totalorder %s10769_s25, 0 }
  0x50   : > { %227 = sbr.rel (%p10775_p3) target bundleno = 1257 (0x4e9), region = 28 }
  0x57   : > { %s8297_s10 = sand.u32 1, %s8091_s16   ;;  %p10776_p7 = scmp.ne.s32.totalorder %s10767_s23, 0 }
  0x58   : > { %s5350_s11 = sshll.u32 %s8297_s10, 10  ;;  %s230_s27 = scalar_lea.sflag [#allocation3], %s8297_s10 }
  0x59   : > { %s8301_s13 = scalar_lea.vmem [#allocation2], %s5350_s11 }
  0x5a   : > { %8070 = dma.done.wait (%p10776_p7), %s230_s27, 16384  }
  0x5b   : > { %8072 = vsyncadd (%p10776_p7), %s230_s27, 4294950912  ;;  %p10777_p13 = scmp.eq.s32.totalorder %s8178_s21, 0 }
  0x5d   : > { %8074 = dma.done.wait (%p10777_p13), [#allocation6], 12288   ;;  %p10778_p4 = pmov %p10777_p13 }
  0x5e   : > { %v8312_v0 = vld [vmem:[%s8301_s13 + $0x200] sm:$0xff]  ;;  %v8315_v1 = vld [vmem:[%s8301_s13 + $0x208] sm:$0xff]  ;;  %v8318_v2 = vld [vmem:[%s8301_s13 + $0x210] sm:$0xff]  ;;  %s9719_s23 = sshll.u32 %s8297_s10, 9  ;;  %s10398_s26 = sshll.u32 %s8099_s18, 13 }
  0x5f   : > { %8076 = vsyncadd (%p10778_p4), [#allocation6], 4294955008  ;;  %v500_v3 = vadd.f32 %v8315_v1, %v8312_v0  ;;  %v8323_v4 = vld [vmem:[%s8301_s13 + $0x218] sm:$0xff]  ;;  %v8326_v5 = vld [vmem:[%s8301_s13 + $0x220] sm:$0xff]  ;;  %s9730_s25 = scalar_lea.vmem [#allocation7], %s9719_s23  ;;  %s10080_s12 = scalar_lea.vmem [#allocation10], %s9719_s23 }
  0x60   : > { %v8329_v6 = vld [vmem:[%s8301_s13 + $0x228] sm:$0xff]  ;;  %v8334_v8 = vld [vmem:[%s8301_s13 + $0x230] sm:$0xff]  ;;  %v8337_v9 = vld [vmem:[%s8301_s13 + $0x238] sm:$0xff]  ;;  %v503_v10 = vadd.f32 %v8323_v4, %v8318_v2  ;;  %s10226_s14 = scalar_lea.vmem [#allocation8], %s9719_s23  ;;  %s10406_s9 = scalar_lea.hbm %s10585_s2, %s10398_s26 }
  0x61   : > { %v506_v7 = vadd.f32 %v8329_v6, %v8326_v5  ;;  %501 = vadd.xlane.f32.xlu0 %v500_v3  ;;  %v509_v11 = vadd.f32 %v8337_v9, %v8334_v8  ;;  %v8344_v12 = vld [vmem:[%s8301_s13 + $0x240] sm:$0xff]  ;;  %v8347_v13 = vld [vmem:[%s8301_s13 + $0x248] sm:$0xff]  ;;  %v8350_v14 = vld [vmem:[%s8301_s13 + $0x250] sm:$0xff]  ;;  %s5141_s18 = sshll.u32 %s9730_s25, 4  ;;  %s5116_s28 = scalar_lea.sflag [#allocation4], %s8297_s10  ;;  %s10409_s18 = int_to_ptr.vmem [resolvable:$true] %s5141_s18 }
  0x62   : > { %v8353_v15 = vld [vmem:[%s8301_s13 + $0x258] sm:$0xff]  ;;  %v512_v16 = vadd.f32 %v8347_v13, %v8344_v12  ;;  %v8360_v18 = vld [vmem:[%s8301_s13 + $0x260] sm:$0xff]  ;;  %v8363_v19 = vld [vmem:[%s8301_s13 + $0x268] sm:$0xff]  ;;  %s7961_s5 = scalar_lea.vmem %s10409_s18, 8192  ;;  %s8115_s11 = smov [#allocation7]  }
  0x63   : > { %507 = vadd.xlane.f32.xlu1 %v506_v7  ;;  %v515_v17 = vadd.f32 %v8353_v15, %v8350_v14  ;;  %v8366_v20 = vld [vmem:[%s8301_s13 + $0x270] sm:$0xff]  ;;  %v8369_v21 = vld [vmem:[%s8301_s13 + $0x278] sm:$0xff]  ;;  %v518_v22 = vadd.f32 %v8363_v19, %v8360_v18  ;;  %v8376_v24 = vld [vmem:[%s8301_s13 + $0x280] sm:$0xff]  ;;  %p7962_p6 = scmp.ne.s32.totalorder %s10409_s18, %s7961_s5  ;;  %s7965_s27 = sshll.u32 %s8115_s11, 4  ;;  %s7966_s27 = int_to_ptr.vmem [resolvable:$false] %s7965_s27 }
  0x64   : > { %v521_v23 = vadd.f32 %v8369_v21, %v8366_v20  ;;  %v8379_v25 = vld [vmem:[%s8301_s13 + $0x288] sm:$0xff]  ;;  %v8382_v26 = vld [vmem:[%s8301_s13 + $0x290] sm:$0xff]  ;;  %v8385_v27 = vld [vmem:[%s8301_s13 + $0x298] sm:$0xff]  ;;  %p7968_p11 = scmp.lt.s32.totalorder %s10409_s18, %s7966_s27 }
  0x65   : > { %504 = vadd.xlane.f32.xlu0 %v503_v10  ;;  %v524_v28 = vadd.f32 %v8379_v25, %v8376_v24  ;;  %v527_v29 = vadd.f32 %v8385_v27, %v8382_v26  ;;  %v8392_v30 = vld [vmem:[%s8301_s13 + $0x2a0] sm:$0xff]  ;;  %v8395_v31 = vld [vmem:[%s8301_s13 + $0x2a8] sm:$0xff]  ;;  %v8398_v32 = vld [vmem:[%s8301_s13 + $0x2b0] sm:$0xff]  ;;  %p7963_p8 = pnand %p7962_p6, %p8241_p10 }
  0x66   : > { %v8401_v33 = vld [vmem:[%s8301_s13 + $0x2b8] sm:$0xff]  ;;  %v530_v34 = vadd.f32 %v8395_v31, %v8392_v30  ;;  %v8408_v36 = vld [vmem:[%s8301_s13 + $0x2c0] sm:$0xff]  ;;  %v8411_v37 = vld [vmem:[%s8301_s13 + $0x2c8] sm:$0xff] }
  0x67   : > { %510 = vadd.xlane.f32.xlu1 %v509_v11  ;;  %v533_v35 = vadd.f32 %v8401_v33, %v8398_v32  ;;  %v8414_v38 = vld [vmem:[%s8301_s13 + $0x2d0] sm:$0xff]  ;;  %v8417_v39 = vld [vmem:[%s8301_s13 + $0x2d8] sm:$0xff]  ;;  %v536_v40 = vadd.f32 %v8411_v37, %v8408_v36  ;;  %v8424_v42 = vld [vmem:[%s8301_s13 + $0x2e0] sm:$0xff]  ;;  %p7964_p12 = pneg %p7963_p8 }
  0x68   : > { %v539_v41 = vadd.f32 %v8417_v39, %v8414_v38  ;;  %v8427_v43 = vld [vmem:[%s8301_s13 + $0x2e8] sm:$0xff]  ;;  %v8430_v44 = vld [vmem:[%s8301_s13 + $0x2f0] sm:$0xff]  ;;  %v8433_v45 = vld [vmem:[%s8301_s13 + $0x2f8] sm:$0xff] }
  0x69   : > { %513 = vadd.xlane.f32.xlu0 %v512_v16  ;;  %v542_v46 = vadd.f32 %v8427_v43, %v8424_v42  ;;  %v545_v47 = vadd.f32 %v8433_v45, %v8430_v44  ;;  %v8440_v48 = vld [vmem:[%s8301_s13 + $0x300] sm:$0xff]  ;;  %v8443_v49 = vld [vmem:[%s8301_s13 + $0x308] sm:$0xff]  ;;  %v8446_v50 = vld [vmem:[%s8301_s13 + $0x310] sm:$0xff] }
  0x6a   : > { %v8449_v51 = vld [vmem:[%s8301_s13 + $0x318] sm:$0xff]  ;;  %v548_v52 = vadd.f32 %v8443_v49, %v8440_v48  ;;  %v8456_v54 = vld [vmem:[%s8301_s13] sm:$0xff]  ;;  %v8459_v55 = vld [vmem:[%s8301_s13 + $0x8] sm:$0xff] }
  0x6b   : > { %516 = vadd.xlane.f32.xlu1 %v515_v17  ;;  %v551_v53 = vadd.f32 %v8449_v51, %v8446_v50  ;;  %v8462_v56 = vld [vmem:[%s8301_s13 + $0x10] sm:$0xff]  ;;  %v8465_v57 = vld [vmem:[%s8301_s13 + $0x18] sm:$0xff]  ;;  %v8468_v58 = vld [vmem:[%s8301_s13 + $0x320] sm:$0xff]  ;;  %v404_v60 = vadd.f32 %v8459_v55, %v8456_v54 }
  0x6c   : > { %v8471_v59 = vld [vmem:[%s8301_s13 + $0x328] sm:$0xff]  ;;  %v407_v61 = vadd.f32 %v8465_v57, %v8462_v56  ;;  %v8478_v62 = vld [vmem:[%s8301_s13 + $0x330] sm:$0xff]  ;;  %v8481_v63 = vld [vmem:[%s8301_s13 + $0x338] sm:$0xff] }
  0x6d   : > { %519 = vadd.xlane.f32.xlu0 %v518_v22  ;;  %v8484_v3 = vld [vmem:[%s8301_s13 + $0x20] sm:$0xff]  ;;  %v8487_v7 = vld [vmem:[%s8301_s13 + $0x28] sm:$0xff]  ;;  %v554_v10 = vadd.f32 %v8471_v59, %v8468_v58  ;;  %v8492_v11 = vld [vmem:[%s8301_s13 + $0x30] sm:$0xff]  ;;  %v557_v17 = vadd.f32 %v8481_v63, %v8478_v62 }
  0x6e   : > { %10779 = vst [vmem:[#allocation15_spill] sm:$0xff] %v8484_v3  ;;  %10780 = vst [vmem:[#allocation16_spill] sm:$0xff] %v8487_v7  ;;  %v8495_v16 = vld [vmem:[%s8301_s13 + $0x38] sm:$0xff]  ;;  %v8500_v22 = vld [vmem:[%s8301_s13 + $0x340] sm:$0xff] }
  0x6f   : > { %522 = vadd.xlane.f32.xlu1 %v521_v23  ;;  %10781 = vst [vmem:[#allocation17_spill] sm:$0xff] %v8492_v11  ;;  %10782 = vst [vmem:[#allocation18_spill] sm:$0xff] %v8495_v16  ;;  %v8503_v23 = vld [vmem:[%s8301_s13 + $0x348] sm:$0xff] }
  0x70   : > { %10783 = vst [vmem:[#allocation19_spill] sm:$0xff] %v8500_v22  ;;  %10784 = vst [vmem:[#allocation20_spill] sm:$0xff] %v8503_v23 }
  0x71   : > { %525 = vadd.xlane.f32.xlu0 %v524_v28  ;;  %v410_v28 = vadd.f32 %v8487_v7, %v8484_v3 }
  0x73   : > { %528 = vadd.xlane.f32.xlu1 %v527_v29  ;;  %v413_v29 = vadd.f32 %v8495_v16, %v8492_v11  ;;  %v403_v16 = vld [vmem:[%s8301_s13 + $0x3f8] sm:$0xff] }
  0x74   : > { %v307_v11 = vld [vmem:[%s8301_s13 + $0xf8] sm:$0xff] }
  0x75   : > { %531 = vadd.xlane.f32.xlu0 %v530_v34  ;;  %v8510_v34 = vld [vmem:[%s8301_s13 + $0x350] sm:$0xff] }
  0x76   : > { %10785 = vst [vmem:[#allocation21_spill] sm:$0xff] %v8510_v34 }
  0x77   : > { %534 = vadd.xlane.f32.xlu1 %v533_v35  ;;  %v8513_v35 = vld [vmem:[%s8301_s13 + $0x358] sm:$0xff] }
  0x78   : > { %10786 = vst [vmem:[#allocation22_spill] sm:$0xff] %v8513_v35 }
  0x79   : > { %537 = vadd.xlane.f32.xlu0 %v536_v40  ;;  %v8516_v40 = vld [vmem:[%s8301_s13 + $0x40] sm:$0xff] }
  0x7a   : > { %10787 = vst [vmem:[#allocation23_spill] sm:$0xff] %v8516_v40 }
  0x7b   : > { %540 = vadd.xlane.f32.xlu1 %v539_v41  ;;  %v8519_v41 = vld [vmem:[%s8301_s13 + $0x48] sm:$0xff] }
  0x7c   : > { %10788 = vst [vmem:[#allocation24_spill] sm:$0xff] %v8519_v41 }
  0x7d   : > { %543 = vadd.xlane.f32.xlu0 %v542_v46  ;;  %v560_v46 = vadd.f32 %v8503_v23, %v8500_v22  ;;  %v8588_v23 = vld [vmem:[%s8301_s13 + $0x90] sm:$0xff]  ;;  %v401_v22 = vld [vmem:[%s8301_s13 + $0x3e8] sm:$0xff] }
  0x7e   : > { %10805 = vst [vmem:[#allocation41_spill] sm:$0xff] %v8588_v23 }
  0x7f   : > { %546 = vadd.xlane.f32.xlu1 %v545_v47  ;;  %v8524_v47 = vld [vmem:[%s8301_s13 + $0x50] sm:$0xff] }
  0x80   : > { %10789 = vst [vmem:[#allocation25_spill] sm:$0xff] %v8524_v47 }
  0x81   : > { %549 = vadd.xlane.f32.xlu0 %v548_v52  ;;  %v8527_v52 = vld [vmem:[%s8301_s13 + $0x58] sm:$0xff] }
  0x82   : > { %10790 = vst [vmem:[#allocation26_spill] sm:$0xff] %v8527_v52 }
  0x83   : > { %552 = vadd.xlane.f32.xlu1 %v551_v53  ;;  %v563_v53 = vadd.f32 %v8513_v35, %v8510_v34  ;;  %v8548_v35 = vld [vmem:[%s8301_s13 + $0x60] sm:$0xff]  ;;  %v8551_v34 = vld [vmem:[%s8301_s13 + $0x68] sm:$0xff] }
  0x84   : > { %10795 = vst [vmem:[#allocation31_spill] sm:$0xff] %v8548_v35  ;;  %10796 = vst [vmem:[#allocation32_spill] sm:$0xff] %v8551_v34 }
  0x85   : > { %405 = vadd.xlane.f32.xlu0 %v404_v60  ;;  %v8532_v60 = vld [vmem:[%s8301_s13 + $0x360] sm:$0xff] }
  0x86   : > { %10791 = vst [vmem:[#allocation27_spill] sm:$0xff] %v8532_v60 }
  0x87   : > { %408 = vadd.xlane.f32.xlu1 %v407_v61  ;;  %v8535_v61 = vld [vmem:[%s8301_s13 + $0x368] sm:$0xff] }
  0x88   : > { %10792 = vst [vmem:[#allocation28_spill] sm:$0xff] %v8535_v61 }
  0x89   : > { %555 = vadd.xlane.f32.xlu0 %v554_v10  ;;  %v416_v10 = vadd.f32 %v8519_v41, %v8516_v40  ;;  %v8559_v41 = vld [vmem:[%s8301_s13 + $0x78] sm:$0xff]  ;;  %v8567_v40 = vld [vmem:[%s8301_s13 + $0x388] sm:$0xff] }
  0x8a   : > { %10798 = vst [vmem:[#allocation34_spill] sm:$0xff] %v8559_v41  ;;  %10800 = vst [vmem:[#allocation36_spill] sm:$0xff] %v8567_v40 }
  0x8b   : > { %558 = vadd.xlane.f32.xlu1 %v557_v17  ;;  %v419_v17 = vadd.f32 %v8527_v52, %v8524_v47  ;;  %v8564_v47 = vld [vmem:[%s8301_s13 + $0x380] sm:$0xff] }
  0x8c   : > { %10799 = vst [vmem:[#allocation35_spill] sm:$0xff] %v8564_v47 }
  0x8d   : > { %411 = vadd.xlane.f32.xlu0 %v410_v28  ;;  %v8542_v28 = vld [vmem:[%s8301_s13 + $0x370] sm:$0xff] }
  0x8e   : > { %10793 = vst [vmem:[#allocation29_spill] sm:$0xff] %v8542_v28 }
  0x8f   : > { %414 = vadd.xlane.f32.xlu1 %v413_v29  ;;  %v8545_v29 = vld [vmem:[%s8301_s13 + $0x378] sm:$0xff] }
  0x90   : > { %10794 = vst [vmem:[#allocation30_spill] sm:$0xff] %v8545_v29  ;;  %v569_v52 = vadd.f32 %v8545_v29, %v8542_v28  ;;  %v8580_v29 = vld [vmem:[%s8301_s13 + $0x80] sm:$0xff]  ;;  %v8583_v28 = vld [vmem:[%s8301_s13 + $0x88] sm:$0xff] }
  0x91   : > { %561 = vadd.xlane.f32.xlu0 %v560_v46  ;;  %v566_v46 = vadd.f32 %v8535_v61, %v8532_v60  ;;  %v8572_v61 = vld [vmem:[%s8301_s13 + $0x390] sm:$0xff]  ;;  %v8575_v60 = vld [vmem:[%s8301_s13 + $0x398] sm:$0xff]  ;;  %10803 = vst [vmem:[#allocation39_spill] sm:$0xff] %v8580_v29  ;;  %10804 = vst [vmem:[#allocation40_spill] sm:$0xff] %v8583_v28 }
  0x92   : > { %10801 = vst [vmem:[#allocation37_spill] sm:$0xff] %v8572_v61  ;;  %10802 = vst [vmem:[#allocation38_spill] sm:$0xff] %v8575_v60 }
  0x93   : > { %564 = vadd.xlane.f32.xlu1 %v563_v53  ;;  %v8556_v53 = vld [vmem:[%s8301_s13 + $0x70] sm:$0xff] }
  0x94   : > { %10797 = vst [vmem:[#allocation33_spill] sm:$0xff] %v8556_v53 }
  0x95   : > { %417 = vadd.xlane.f32.xlu0 %v416_v10  ;;  %v422_v10 = vadd.f32 %v8551_v34, %v8548_v35  ;;  %v8591_v34 = vld [vmem:[%s8301_s13 + $0x98] sm:$0xff]  ;;  %v400_v35 = vld [vmem:[%s8301_s13 + $0x3e0] sm:$0xff] }
  0x96   : > { %10806 = vst [vmem:[#allocation42_spill] sm:$0xff] %v8591_v34 }
  0x97   : > { %420 = vadd.xlane.f32.xlu1 %v419_v17  ;;  %v425_v17 = vadd.f32 %v8559_v41, %v8556_v53  ;;  %v8596_v41 = vld [vmem:[%s8301_s13 + $0x3a0] sm:$0xff]  ;;  %v8599_v53 = vld [vmem:[%s8301_s13 + $0x3a8] sm:$0xff] }
  0x98   : > { %10807 = vst [vmem:[#allocation43_spill] sm:$0xff] %v8596_v41  ;;  %10808 = vst [vmem:[#allocation44_spill] sm:$0xff] %v8599_v53 }
  0x99   : > { %567 = vadd.xlane.f32.xlu0 %v566_v46  ;;  %v572_v46 = vadd.f32 %v8567_v40, %v8564_v47  ;;  %v431_v40 = vadd.f32 %v8591_v34, %v8588_v23  ;;  %v8609_v47 = vld [vmem:[%s8301_s13 + $0x3b8] sm:$0xff]  ;;  %v8622_v34 = vld [vmem:[%s8301_s13 + $0xb0] sm:$0xff] }
  0x9a   : > { %10810 = vst [vmem:[#allocation46_spill] sm:$0xff] %v8609_v47  ;;  %10813 = vst [vmem:[#allocation49_spill] sm:$0xff] %v8622_v34  ;;  %v8625_v23 = vld [vmem:[%s8301_s13 + $0xb8] sm:$0xff] }
  0x9b   : > { %570 = vadd.xlane.f32.xlu1 %v569_v52  ;;  %v575_v52 = vadd.f32 %v8575_v60, %v8572_v61  ;;  %v578_v60 = vadd.f32 %v8599_v53, %v8596_v41  ;;  %10814 = vst [vmem:[#allocation50_spill] sm:$0xff] %v8625_v23  ;;  %v398_v53 = vld [vmem:[%s8301_s13 + $0x3d0] sm:$0xff]  ;;  %v399_v41 = vld [vmem:[%s8301_s13 + $0x3d8] sm:$0xff] }
  0x9d   : > { %423 = vadd.xlane.f32.xlu0 %v422_v10  ;;  %v428_v10 = vadd.f32 %v8583_v28, %v8580_v29  ;;  %v8619_v28 = vld [vmem:[%s8301_s13 + $0xa8] sm:$0xff] }
  0x9e   : > { %10812 = vst [vmem:[#allocation48_spill] sm:$0xff] %v8619_v28 }
  0x9f   : > { %426 = vadd.xlane.f32.xlu1 %v425_v17  ;;  %v8606_v17 = vld [vmem:[%s8301_s13 + $0x3b0] sm:$0xff] }
  0xa0   : > { %10809 = vst [vmem:[#allocation45_spill] sm:$0xff] %v8606_v17 }
  0xa1   : > { %573 = vadd.xlane.f32.xlu0 %v572_v46  ;;  %v581_v46 = vadd.f32 %v8609_v47, %v8606_v17  ;;  %v8632_v47 = vld [vmem:[%s8301_s13 + $0x3c0] sm:$0xff]  ;;  %v8635_v17 = vld [vmem:[%s8301_s13 + $0x3c8] sm:$0xff] }
  0xa2   : > { %10815 = vst [vmem:[#allocation51_spill] sm:$0xff] %v8632_v47  ;;  %10816 = vst [vmem:[#allocation52_spill] sm:$0xff] %v8635_v17 }
  0xa3   : > { %576 = vadd.xlane.f32.xlu1 %v575_v52  ;;  %v8616_v52 = vld [vmem:[%s8301_s13 + $0xa0] sm:$0xff] }
  0xa4   : > { %10811 = vst [vmem:[#allocation47_spill] sm:$0xff] %v8616_v52 }
  0xa5   : > { %429 = vadd.xlane.f32.xlu0 %v428_v10  ;;  %v434_v10 = vadd.f32 %v8619_v28, %v8616_v52  ;;  %v587_v28 = vadd.f32 %v399_v41, %v398_v53  ;;  %v301_v52 = vld [vmem:[%s8301_s13 + $0xc8] sm:$0xff]  ;;  %v304_v53 = vld [vmem:[%s8301_s13 + $0xe0] sm:$0xff] }
  0xa7   : > { %432 = vadd.xlane.f32.xlu1 %v431_v40  ;;  %v437_v40 = vadd.f32 %v8625_v23, %v8622_v34  ;;  %v302_v23 = vld [vmem:[%s8301_s13 + $0xd0] sm:$0xff]  ;;  %v303_v34 = vld [vmem:[%s8301_s13 + $0xd8] sm:$0xff] }
  0xa8   : > { %v443_v61 = vadd.f32 %v303_v34, %v302_v23  ;;  %v7605_v23 = vld [vmem:[#allocation5] ss:$24 sps:$4 sm:$0xff]   ;;  %v7606_v34 = vld [vmem:[#allocation5 + $0x34] ss:$24 sps:$4 sm:$0xff]  }
  0xa9   : > { %579 = vadd.xlane.f32.xlu0 %v578_v60  ;;  %v584_v60 = vadd.f32 %v8635_v17, %v8632_v47  ;;  %v590_v17 = vadd.f32 %v401_v22, %v400_v35  ;;  %v306_v47 = vld [vmem:[%s8301_s13 + $0xf0] sm:$0xff]  ;;  %v7611_v35 = vld [vmem:[#allocation5 + $0x60] ss:$24 sps:$4 sm:$0xff]  }
  0xaa   : > { %v449_v3 = vadd.f32 %v307_v11, %v306_v47  ;;  %v7608_v22 = vld [vmem:[#allocation5 + $0x30] ss:$24 sps:$4 sm:$0xff]   ;;  %v7615_v11 = vld [vmem:[#allocation5 + $0xc4] ss:$24 sps:$4 sm:$0xff]   ;;  %v7617_v47 = vld [vmem:[#allocation5 + $0xc0] ss:$24 sps:$4 sm:$0xff]  }
  0xab   : > { %582 = vadd.xlane.f32.xlu1 %v581_v46  ;;  %v300_v46 = vld [vmem:[%s8301_s13 + $0xc0] sm:$0xff] }
  0xac   : > { %v440_v29 = vadd.f32 %v301_v52, %v300_v46  ;;  %v7618_v52 = vld [vmem:[#allocation5 + $0xf4] ss:$24 sps:$4 sm:$0xff]  }
  0xad   : > { %435 = vadd.xlane.f32.xlu0 %v434_v10  ;;  %v402_v10 = vld [vmem:[%s8301_s13 + $0x3f0] sm:$0xff] }
  0xae   : > { %v593_v41 = vadd.f32 %v403_v16, %v402_v10  ;;  %v7609_v16 = vld [vmem:[#allocation5 + $0x64] ss:$24 sps:$4 sm:$0xff]  }
  0xaf   : > { %438 = vadd.xlane.f32.xlu1 %v437_v40  ;;  %v305_v40 = vld [vmem:[%s8301_s13 + $0xe8] sm:$0xff] }
  0xb0   : > { %v446_v7 = vadd.f32 %v305_v40, %v304_v53  ;;  %v308_v53 = vld [vmem:[%s8301_s13 + $0x100] sm:$0xff]  ;;  %v309_v40 = vld [vmem:[%s8301_s13 + $0x108] sm:$0xff] }
  0xb1   : > { %585 = vadd.xlane.f32.xlu0 %v584_v60  ;;  %v7620_v60 = vld [vmem:[#allocation5 + $0xf0] ss:$24 sps:$4 sm:$0xff]  }
  0xb3   : > { %588 = vadd.xlane.f32.xlu1 %v587_v28  ;;  %v7603_v28 = vld [vmem:[#allocation5 + $0x4] ss:$24 sps:$4 sm:$0xff]  }
  0xb4   : > { %7032 = vmatprep.subr.bf16.mxu1 %v7603_v28  ;;  %2069 = vmatprep.subr.bf16.mxu0 %v7603_v28 }
  0xb5   : > { %441 = vadd.xlane.f32.xlu0 %v440_v29  ;;  %7048 = vmatpush1.bf16.msra.mxu1 %v7605_v23 }
  0xb6   : > { %2070 = vmatpush1.bf16.msra.mxu0 %v7605_v23  ;;  %7033 = vmatprep.subr.bf16.mxu1 %v7606_v34 }
  0xb7   : > { %444 = vadd.xlane.f32.xlu1 %v443_v61  ;;  %2071 = vmatprep.subr.bf16.mxu0 %v7606_v34 }
  0xb9   : > { %591 = vadd.xlane.f32.xlu0 %v590_v17  ;;  %7049 = vmatpush1.bf16.msra.mxu1 %v7608_v22 }
  0xba   : > { %2072 = vmatpush1.bf16.msra.mxu0 %v7608_v22  ;;  %7034 = vmatprep.subr.bf16.mxu1 %v7609_v16 }
  0xbb   : > { %594 = vadd.xlane.f32.xlu1 %v593_v41  ;;  %2073 = vmatprep.subr.bf16.mxu0 %v7609_v16 }
  0xbd   : > { %447 = vadd.xlane.f32.xlu0 %v446_v7  ;;  %7050 = vmatpush1.bf16.msra.mxu1 %v7611_v35  ;;  %v7612_v7 = vld [vmem:[#allocation5 + $0x94] ss:$24 sps:$4 sm:$0xff]  }
  0xbe   : > { %2074 = vmatpush1.bf16.msra.mxu0 %v7611_v35  ;;  %7035 = vmatprep.subr.bf16.mxu1 %v7612_v7  ;;  %v7621_v35 = vld [vmem:[#allocation5 + $0x124] ss:$24 sps:$4 sm:$0xff]  }
  0xbf   : > { %450 = vadd.xlane.f32.xlu1 %v449_v3  ;;  %v7614_v3 = vld [vmem:[#allocation5 + $0x90] ss:$24 sps:$4 sm:$0xff]   ;;  %2075 = vmatprep.subr.bf16.mxu0 %v7612_v7  ;;  %v7623_v7 = vld [vmem:[#allocation5 + $0x120] ss:$24 sps:$4 sm:$0xff]  }
  0xc1   : > { %7051 = vmatpush1.bf16.msra.mxu1 %v7614_v3 }
  0xc2   : > { %2076 = vmatpush1.bf16.msra.mxu0 %v7614_v3  ;;  %7036 = vmatprep.subr.bf16.mxu1 %v7615_v11 }
  0xc3   : > { %2077 = vmatprep.subr.bf16.mxu0 %v7615_v11  ;;  %v452_v11 = vadd.f32 %v309_v40, %v308_v53  ;;  %v8695_v53 = vld [vmem:[%s8301_s13 + $0x118] sm:$0xff] }
  0xc5   : > { %7052 = vmatpush1.bf16.msra.mxu1 %v7617_v47 }
  0xc6   : > { %2078 = vmatpush1.bf16.msra.mxu0 %v7617_v47  ;;  %7037 = vmatprep.subr.bf16.mxu1 %v7618_v52 }
  0xc7   : > { %2079 = vmatprep.subr.bf16.mxu0 %v7618_v52 }
  0xc9   : > { %7053 = vmatpush1.bf16.msra.mxu1 %v7620_v60 }
  0xca   : > { %2080 = vmatpush1.bf16.msra.mxu0 %v7620_v60  ;;  %7038 = vmatprep.subr.bf16.mxu1 %v7621_v35 }
  0xcb   : > { %2081 = vmatprep.subr.bf16.mxu0 %v7621_v35 }
  0xcd   : > { %7054 = vmatpush1.bf16.msra.mxu1 %v7623_v7 }
  0xce   : > { %2082 = vmatpush1.bf16.msra.mxu0 %v7623_v7 }
  0xee   : > { %v502_v61 = vpop.xlane.xlu0 %501 }
  0xef   : > { %v629_v29 = vmul.f32 0.00390625, %v502_v61 }
  0xf0   : > { %v508_v17 = vpop.xlane.xlu1 %507 }
  0xf1   : > { %v631_v46 = vmul.f32 0.00390625, %v508_v17  ;;  %v8654_v10 = vsub.f32 %v8312_v0, %v629_v29  ;;  %v8657_v41 = vsub.f32 %v8315_v1, %v629_v29  ;;  %v8681_v17 = vld [vmem:[%s8301_s13 + $0x110] sm:$0xff] }
  0xf2   : > { %v505_v28 = vpop.xlane.xlu0 %504 }
  0xf3   : > { %v8662_v23 = vsub.f32 %v8326_v5, %v631_v46  ;;  %v8665_v34 = vsub.f32 %v8329_v6, %v631_v46  ;;  %v630_v22 = vmul.f32 0.00390625, %v505_v28  ;;  %v853_v0 = vmul.f32 %v8654_v10, %v8654_v10  ;;  %v7624_v28 = vld [vmem:[#allocation5 + $0x154] ss:$24 sps:$4 sm:$0xff]  }
  0xf4   : > { %v854_v1 = vmul.f32 %v8657_v41, %v8657_v41  ;;  %v511_v16 = vpop.xlane.xlu1 %510  ;;  %7039 = vmatprep.subr.bf16.mxu1 %v7624_v28  ;;  %2083 = vmatprep.subr.bf16.mxu0 %v7624_v28  ;;  %v7630_v28 = vld [vmem:[#allocation5 + $0x1b4] ss:$24 sps:$4 sm:$0xff]  }
  0xf5   : > { %10817 = vst [vmem:[#allocation53_spill] sm:$0xff] %v8662_v23  ;;  %10818 = vst [vmem:[#allocation54_spill] sm:$0xff] %v8665_v34  ;;  %v632_v3 = vmul.f32 0.00390625, %v511_v16  ;;  %v8672_v5 = vsub.f32 %v8318_v2, %v630_v22  ;;  %v8675_v6 = vsub.f32 %v8323_v4, %v630_v22  ;;  %v857_v52 = vmul.f32 %v8662_v23, %v8662_v23  ;;  %v7626_v22 = vld [vmem:[#allocation5 + $0x150] ss:$24 sps:$4 sm:$0xff]  }
  0xf6   : > { %v1013_v47 = vadd.f32 %v854_v1, %v853_v0  ;;  %v514_v29 = vpop.xlane.xlu0 %513  ;;  %v858_v2 = vmul.f32 %v8665_v34, %v8665_v34  ;;  %v7627_v0 = vld [vmem:[#allocation5 + $0x184] ss:$24 sps:$4 sm:$0xff]   ;;  %7055 = vmatpush1.bf16.msra.mxu1 %v7626_v22  ;;  %2084 = vmatpush1.bf16.msra.mxu0 %v7626_v22  ;;  %v7632_v22 = vld [vmem:[#allocation5 + $0x1b0] ss:$24 sps:$4 sm:$0xff]  }
  0xf7   : > { %v8678_v61 = vsub.f32 %v8334_v8, %v632_v3  ;;  %v8688_v4 = vsub.f32 %v8337_v9, %v632_v3  ;;  %v855_v60 = vmul.f32 %v8672_v5, %v8672_v5  ;;  %v856_v8 = vmul.f32 %v8675_v6, %v8675_v6  ;;  %7040 = vmatprep.subr.bf16.mxu1 %v7627_v0  ;;  %v8724_v23 = vld [vmem:[%s8301_s13 + $0x130] sm:$0xff] }
  0xf8   : > { %1014 = vadd.xlane.f32.xlu0 %v1013_v47  ;;  %v633_v46 = vmul.f32 0.00390625, %v514_v29  ;;  %v517_v40 = vpop.xlane.xlu1 %516  ;;  %v455_v9 = vadd.f32 %v8695_v53, %v8681_v17  ;;  %v1019_v16 = vadd.f32 %v858_v2, %v857_v52  ;;  %v7629_v47 = vld [vmem:[#allocation5 + $0x180] ss:$24 sps:$4 sm:$0xff]   ;;  %v8713_v2 = vld [vmem:[%s8301_s13 + $0x128] sm:$0xff]  ;;  %2085 = vmatprep.subr.bf16.mxu0 %v7627_v0 }
  0xf9   : > { %10819 = vst [vmem:[#allocation55_spill] sm:$0xff] %v8678_v61  ;;  %10820 = vst [vmem:[#allocation56_spill] sm:$0xff] %v8688_v4  ;;  %v1016_v1 = vadd.f32 %v856_v8, %v855_v60  ;;  %v634_v35 = vmul.f32 0.00390625, %v517_v40  ;;  %v859_v7 = vmul.f32 %v8678_v61, %v8678_v61  ;;  %v860_v8 = vmul.f32 %v8688_v4, %v8688_v4  ;;  %v8710_v52 = vld [vmem:[%s8301_s13 + $0x120] sm:$0xff]  ;;  %v8727_v0 = vld [vmem:[%s8301_s13 + $0x138] sm:$0xff] }
  0xfa   : > { %v520_v3 = vpop.xlane.xlu0 %519  ;;  %v8702_v29 = vsub.f32 %v8344_v12, %v633_v46  ;;  %v8705_v60 = vsub.f32 %v8347_v13, %v633_v46  ;;  %v458_v13 = vadd.f32 %v8713_v2, %v8710_v52  ;;  %7056 = vmatpush1.bf16.msra.mxu1 %v7629_v47  ;;  %2086 = vmatpush1.bf16.msra.mxu0 %v7629_v47  ;;  %v7635_v4 = vld [vmem:[#allocation5 + $0x1e0] ss:$24 sps:$4 sm:$0xff]   ;;  %v7638_v34 = vld [vmem:[#allocation5 + $0x210] ss:$24 sps:$4 sm:$0xff]  }
  0xfb   : > { %1017 = vadd.xlane.f32.xlu1 %v1016_v1  ;;  %v8719_v12 = vsub.f32 %v8353_v15, %v634_v35  ;;  %v1022_v1 = vadd.f32 %v860_v8, %v859_v7  ;;  %v635_v61 = vmul.f32 0.00390625, %v520_v3  ;;  %7041 = vmatprep.subr.bf16.mxu1 %v7630_v28 }
  0xfc   : > { %453 = vadd.xlane.f32.xlu0 %v452_v11  ;;  %10821 = vst [vmem:[#allocation57_spill] sm:$0xff] %v8702_v29  ;;  %10822 = vst [vmem:[#allocation58_spill] sm:$0xff] %v8705_v60  ;;  %v523_v40 = vpop.xlane.xlu1 %522  ;;  %v8716_v11 = vsub.f32 %v8350_v14, %v634_v35  ;;  %v861_v14 = vmul.f32 %v8702_v29, %v8702_v29  ;;  %v862_v15 = vmul.f32 %v8705_v60, %v8705_v60  ;;  %v8746_v60 = vld [vmem:[%s8301_s13 + $0x140] sm:$0xff] }
  0xfd   : > { %10824 = vst [vmem:[#allocation60_spill] sm:$0xff] %v8719_v12  ;;  %2087 = vmatprep.subr.bf16.mxu0 %v7630_v28  ;;  %v864_v3 = vmul.f32 %v8719_v12, %v8719_v12  ;;  %v8740_v8 = vsub.f32 %v8360_v18, %v635_v61  ;;  %v8743_v28 = vsub.f32 %v8363_v19, %v635_v61  ;;  %v7633_v12 = vld [vmem:[#allocation5 + $0x1e4] ss:$24 sps:$4 sm:$0xff]  }
  0xfe   : > { %10823 = vst [vmem:[#allocation59_spill] sm:$0xff] %v8716_v11  ;;  %v526_v46 = vpop.xlane.xlu0 %525  ;;  %v863_v7 = vmul.f32 %v8716_v11, %v8716_v11  ;;  %7057 = vmatpush1.bf16.msra.mxu1 %v7632_v22  ;;  %2088 = vmatpush1.bf16.msra.mxu0 %v7632_v22  ;;  %v1025_v29 = vadd.f32 %v862_v15, %v861_v14  ;;  %v8760_v14 = vld [vmem:[%s8301_s13 + $0x150] sm:$0xff]  ;;  %v8763_v15 = vld [vmem:[%s8301_s13 + $0x158] sm:$0xff] }
  0xff   : > { %456 = vadd.xlane.f32.xlu1 %v455_v9  ;;  %v461_v9 = vadd.f32 %v8727_v0, %v8724_v23  ;;  %10825 = vst [vmem:[#allocation61_spill] sm:$0xff] %v8740_v8  ;;  %10826 = vst [vmem:[#allocation62_spill] sm:$0xff] %v8743_v28  ;;  %7042 = vmatprep.subr.bf16.mxu1 %v7633_v12 }
 0x100   : > { %1020 = vadd.xlane.f32.xlu0 %v1019_v16  ;;  %v529_v35 = vpop.xlane.xlu1 %528  ;;  %v636_v16 = vmul.f32 0.00390625, %v523_v40  ;;  %v8749_v40 = vld [vmem:[%s8301_s13 + $0x148] sm:$0xff]  ;;  %2089 = vmatprep.subr.bf16.mxu0 %v7633_v12  ;;  %v1028_v22 = vadd.f32 %v864_v3, %v863_v7  ;;  %10830 = vst [vmem:[#allocation66_spill] sm:$0xff] %v8763_v15 }
 0x101   : > { %10827 = vst [vmem:[#allocation63_spill] sm:$0xff] %v8749_v40  ;;  %v464_v19 = vadd.f32 %v8749_v40, %v8746_v60  ;;  %v638_v40 = vmul.f32 0.00390625, %v529_v35 }
 0x102   : > { %v532_v47 = vpop.xlane.xlu0 %531  ;;  %v8755_v18 = vsub.f32 %v8369_v21, %v636_v16  ;;  %7058 = vmatpush1.bf16.msra.mxu1 %v7635_v4  ;;  %2090 = vmatpush1.bf16.msra.mxu0 %v7635_v4  ;;  %v866_v21 = vmul.f32 %v8743_v28, %v8743_v28  ;;  %v467_v4 = vadd.f32 %v8763_v15, %v8760_v14  ;;  %v7639_v15 = vld [vmem:[#allocation5 + $0x244] ss:$24 sps:$4 sm:$0xff]  }
 0x103   : > { %1023 = vadd.xlane.f32.xlu1 %v1022_v1  ;;  %v637_v1 = vmul.f32 0.00390625, %v526_v46 }
 0x104   : > { %459 = vadd.xlane.f32.xlu0 %v458_v13  ;;  %v535_v11 = vpop.xlane.xlu1 %534  ;;  %v8752_v13 = vsub.f32 %v8366_v20, %v636_v16  ;;  %10829 = vst [vmem:[#allocation65_spill] sm:$0xff] %v8755_v18  ;;  %v865_v20 = vmul.f32 %v8740_v8, %v8740_v8  ;;  %v7636_v16 = vld [vmem:[#allocation5 + $0x214] ss:$24 sps:$4 sm:$0xff]   ;;  %v8782_v8 = vld [vmem:[%s8301_s13 + $0x160] sm:$0xff] }
 0x105   : > { %7043 = vmatprep.subr.bf16.mxu1 %v7636_v16  ;;  %2091 = vmatprep.subr.bf16.mxu0 %v7636_v16  ;;  %v8776_v35 = vsub.f32 %v8376_v24, %v637_v1  ;;  %v8779_v3 = vsub.f32 %v8379_v25, %v637_v1  ;;  %v640_v28 = vmul.f32 0.00390625, %v535_v11 }
 0x106   : > { %10828 = vst [vmem:[#allocation64_spill] sm:$0xff] %v8752_v13  ;;  %v538_v61 = vpop.xlane.xlu0 %537  ;;  %v867_v46 = vmul.f32 %v8752_v13, %v8752_v13  ;;  %7059 = vmatpush1.bf16.msra.mxu1 %v7638_v34  ;;  %2092 = vmatpush1.bf16.msra.mxu0 %v7638_v34  ;;  %v1031_v16 = vadd.f32 %v866_v21, %v865_v20  ;;  %v8815_v21 = vld [vmem:[%s8301_s13 + $0x178] sm:$0xff] }
 0x107   : > { %462 = vadd.xlane.f32.xlu1 %v461_v9  ;;  %v868_v9 = vmul.f32 %v8755_v18, %v8755_v18  ;;  %10831 = vst [vmem:[#allocation67_spill] sm:$0xff] %v8776_v35  ;;  %v8788_v18 = vsub.f32 %v8382_v26, %v638_v40  ;;  %v8791_v34 = vsub.f32 %v8385_v27, %v638_v40  ;;  %v641_v11 = vmul.f32 0.00390625, %v538_v61  ;;  %v8812_v61 = vld [vmem:[%s8301_s13 + $0x170] sm:$0xff] }
 0x108   : > { %1026 = vadd.xlane.f32.xlu0 %v1025_v29  ;;  %v541_v12 = vpop.xlane.xlu1 %540  ;;  %v639_v29 = vmul.f32 0.00390625, %v532_v47  ;;  %v8785_v47 = vld [vmem:[%s8301_s13 + $0x168] sm:$0xff]  ;;  %7044 = vmatprep.subr.bf16.mxu1 %v7639_v15  ;;  %v869_v27 = vmul.f32 %v8776_v35, %v8776_v35  ;;  %v8809_v20 = vsub.f32 %v8401_v33, %v640_v28 }
 0x109   : > { %10832 = vst [vmem:[#allocation68_spill] sm:$0xff] %v8788_v18  ;;  %10833 = vst [vmem:[#allocation69_spill] sm:$0xff] %v8791_v34  ;;  %2093 = vmatprep.subr.bf16.mxu0 %v7639_v15  ;;  %v1034_v26 = vadd.f32 %v868_v9, %v867_v46  ;;  %v7642_v15 = vld [vmem:[#allocation5 + $0x274] ss:$24 sps:$4 sm:$0xff]   ;;  %v872_v46 = vmul.f32 %v8791_v34, %v8791_v34  ;;  %v7644_v9 = vld [vmem:[#allocation5 + $0x270] ss:$24 sps:$4 sm:$0xff]  }
 0x10a   : > { %v544_v7 = vpop.xlane.xlu0 %543  ;;  %v8794_v24 = vsub.f32 %v8392_v30, %v639_v29  ;;  %v8797_v25 = vsub.f32 %v8395_v31, %v639_v29  ;;  %v870_v30 = vmul.f32 %v8779_v3, %v8779_v3  ;;  %v8806_v31 = vsub.f32 %v8398_v32, %v640_v28 }
 0x10b   : > { %1029 = vadd.xlane.f32.xlu1 %v1028_v22  ;;  %v470_v22 = vadd.f32 %v8785_v47, %v8782_v8  ;;  %v871_v29 = vmul.f32 %v8788_v18, %v8788_v18  ;;  %v8822_v32 = vsub.f32 %v8408_v36, %v641_v11  ;;  %v643_v36 = vmul.f32 0.00390625, %v544_v7 }
 0x10c   : > { %465 = vadd.xlane.f32.xlu0 %v464_v19  ;;  %v547_v13 = vpop.xlane.xlu1 %546  ;;  %v7641_v19 = vld [vmem:[#allocation5 + $0x240] ss:$24 sps:$4 sm:$0xff]   ;;  %10834 = vst [vmem:[#allocation70_spill] sm:$0xff] %v8794_v24  ;;  %10835 = vst [vmem:[#allocation71_spill] sm:$0xff] %v8797_v25  ;;  %v873_v33 = vmul.f32 %v8794_v24, %v8794_v24  ;;  %v874_v28 = vmul.f32 %v8797_v25, %v8797_v25  ;;  %v1037_v18 = vadd.f32 %v870_v30, %v869_v27  ;;  %v7645_v25 = vld [vmem:[#allocation5 + $0x2a4] ss:$24 sps:$4 sm:$0xff]  }
 0x10d   : > { %7060 = vmatpush1.bf16.msra.mxu1 %v7641_v19  ;;  %2094 = vmatpush1.bf16.msra.mxu0 %v7641_v19  ;;  %v473_v19 = vadd.f32 %v8815_v21, %v8812_v61  ;;  %v875_v35 = vmul.f32 %v8806_v31, %v8806_v31  ;;  %v876_v24 = vmul.f32 %v8809_v20, %v8809_v20 }
 0x10e   : > { %v550_v1 = vpop.xlane.xlu0 %549  ;;  %7045 = vmatprep.subr.bf16.mxu1 %v7642_v15  ;;  %2095 = vmatprep.subr.bf16.mxu0 %v7642_v15  ;;  %v7647_v15 = vld [vmem:[#allocation5 + $0x2a0] ss:$24 sps:$4 sm:$0xff]   ;;  %v1043_v7 = vadd.f32 %v874_v28, %v873_v33  ;;  %v877_v30 = vmul.f32 %v8822_v32, %v8822_v32 }
 0x10f   : > { %468 = vadd.xlane.f32.xlu1 %v467_v4  ;;  %v642_v4 = vmul.f32 0.00390625, %v541_v12  ;;  %v8829_v12 = vsub.f32 %v8411_v37, %v641_v11  ;;  %v644_v37 = vmul.f32 0.00390625, %v547_v13  ;;  %v645_v27 = vmul.f32 0.00390625, %v550_v1  ;;  %v7648_v1 = vld [vmem:[#allocation5 + $0x2d4] ss:$24 sps:$4 sm:$0xff]  }
 0x110   : > { %1032 = vadd.xlane.f32.xlu0 %v1031_v16  ;;  %v553_v40 = vpop.xlane.xlu1 %552 }
 0x111   : > { %7061 = vmatpush1.bf16.msra.mxu1 %v7644_v9  ;;  %2096 = vmatpush1.bf16.msra.mxu0 %v7644_v9  ;;  %v8841_v34 = vsub.f32 %v8417_v39, %v642_v4  ;;  %v8846_v9 = vsub.f32 %v8424_v42, %v643_v36  ;;  %v878_v13 = vmul.f32 %v8829_v12, %v8829_v12 }
 0x112   : > { %v406_v16 = vpop.xlane.xlu0 %405  ;;  %7046 = vmatprep.subr.bf16.mxu1 %v7645_v25  ;;  %2097 = vmatprep.subr.bf16.mxu0 %v7645_v25  ;;  %v1046_v39 = vadd.f32 %v876_v24, %v875_v35  ;;  %v8857_v25 = vsub.f32 %v8433_v45, %v644_v37  ;;  %v8865_v35 = vsub.f32 %v8443_v49, %v645_v27 }
 0x113   : > { %1035 = vadd.xlane.f32.xlu1 %v1034_v26  ;;  %v8838_v26 = vsub.f32 %v8414_v38, %v642_v4  ;;  %10836 = vst [vmem:[#allocation72_spill] sm:$0xff] %v8846_v9  ;;  %v8849_v38 = vsub.f32 %v8427_v43, %v643_v36  ;;  %v7650_v43 = vld [vmem:[#allocation5 + $0x2d0] ss:$24 sps:$4 sm:$0xff]   ;;  %v597_v24 = vmul.f32 0.00390625, %v406_v16  ;;  %v880_v33 = vmul.f32 %v8841_v34, %v8841_v34 }
 0x114   : > { %471 = vadd.xlane.f32.xlu0 %v470_v22  ;;  %v1040_v22 = vadd.f32 %v872_v46, %v871_v29  ;;  %v409_v11 = vpop.xlane.xlu1 %408  ;;  %v8854_v29 = vsub.f32 %v8430_v44, %v644_v37  ;;  %v8862_v46 = vsub.f32 %v8440_v48, %v645_v27  ;;  %10838 = vst [vmem:[#allocation74_spill] sm:$0xff] %v8865_v35 }
 0x115   : > { %7062 = vmatpush1.bf16.msra.mxu1 %v7647_v15  ;;  %2098 = vmatpush1.bf16.msra.mxu0 %v7647_v15  ;;  %v879_v42 = vmul.f32 %v8838_v26, %v8838_v26  ;;  %v1049_v44 = vadd.f32 %v878_v13, %v877_v30  ;;  %v881_v45 = vmul.f32 %v8846_v9, %v8846_v9  ;;  %v598_v28 = vmul.f32 0.00390625, %v409_v11 }
 0x116   : > { %v556_v4 = vpop.xlane.xlu0 %555  ;;  %10837 = vst [vmem:[#allocation73_spill] sm:$0xff] %v8862_v46  ;;  %7047 = vmatprep.subr.bf16.mxu1 %v7648_v1  ;;  %2099 = vmatprep.subr.bf16.mxu0 %v7648_v1  ;;  %v883_v16 = vmul.f32 %v8854_v29, %v8854_v29  ;;  %v885_v37 = vmul.f32 %v8862_v46, %v8862_v46 }
 0x117   : > { %474 = vadd.xlane.f32.xlu1 %v473_v19  ;;  %v884_v19 = vmul.f32 %v8857_v25, %v8857_v25  ;;  %v886_v11 = vmul.f32 %v8865_v35, %v8865_v35  ;;  %v8891_v15 = vsub.f32 %v8459_v55, %v597_v24  ;;  %v647_v30 = vmul.f32 0.00390625, %v556_v4 }
 0x118   : > { %1038 = vadd.xlane.f32.xlu0 %v1037_v18  ;;  %v646_v18 = vmul.f32 0.00390625, %v553_v40  ;;  %v882_v40 = vmul.f32 %v8849_v38, %v8849_v38  ;;  %v559_v48 = vpop.xlane.xlu1 %558 }
 0x119   : > { %7063 = vmatpush1.bf16.msra.mxu1 %v7650_v43  ;;  %2100 = vmatpush1.bf16.msra.mxu0 %v7650_v43  ;;  %v1058_v13 = vadd.f32 %v884_v19, %v883_v16  ;;  %v648_v1 = vmul.f32 0.00390625, %v559_v48  ;;  %v10846_v19 = vld [vmem:[#allocation16_spill] sm:$0xff] }
 0x11a   : > { %v8874_v49 = vsub.f32 %v8446_v50, %v646_v18  ;;  %v8881_v36 = vsub.f32 %v8449_v51, %v646_v18  ;;  %v412_v50 = vpop.xlane.xlu0 %411  ;;  %v1055_v27 = vadd.f32 %v882_v40, %v881_v45  ;;  %v8894_v51 = vsub.f32 %v8462_v56, %v598_v28 }
 0x11b   : > { %1041 = vadd.xlane.f32.xlu1 %v1040_v22  ;;  %v8884_v22 = vsub.f32 %v8456_v54, %v597_v24  ;;  %v8897_v54 = vsub.f32 %v8465_v57, %v598_v28  ;;  %v8906_v56 = vsub.f32 %v8468_v58, %v647_v30  ;;  %v8909_v57 = vsub.f32 %v8471_v59, %v647_v30  ;;  %v7653_v28 = vld [vmem:[#allocation5 + $0xc] ss:$24 sps:$4 sm:$0xff]   ;;  %v10848_v30 = vld [vmem:[#allocation17_spill] sm:$0xff] }
 0x11c   : > { %1044 = vadd.xlane.f32.xlu0 %v1043_v7  ;;  %10839 = vst [vmem:[#allocation75_spill] sm:$0xff] %v8874_v49  ;;  %v1052_v7 = vadd.f32 %v880_v33, %v879_v42  ;;  %v887_v18 = vmul.f32 %v8874_v49, %v8874_v49  ;;  %v415_v43 = vpop.xlane.xlu1 %414  ;;  %v888_v55 = vmul.f32 %v8881_v36, %v8881_v36  ;;  %v10844_v59 = vld [vmem:[#allocation15_spill] sm:$0xff] }
 0x11d   : > { %v789_v4 = vmul.f32 %v8884_v22, %v8884_v22  ;;  %10840 = vst [vmem:[#allocation76_spill] sm:$0xff] %v8906_v56  ;;  %10841 = vst [vmem:[#allocation77_spill] sm:$0xff] %v8909_v57  ;;  %v790_v42 = vmul.f32 %v8891_v15, %v8891_v15  ;;  %v791_v33 = vmul.f32 %v8894_v51, %v8894_v51  ;;  %v600_v48 = vmul.f32 0.00390625, %v415_v43 }
 0x11e   : > { %v562_v24 = vpop.xlane.xlu0 %561  ;;  %v8916_v45 = vsub.f32 %v8478_v62, %v648_v1  ;;  %v8919_v40 = vsub.f32 %v8481_v63, %v648_v1  ;;  %v792_v58 = vmul.f32 %v8897_v54, %v8897_v54  ;;  %v889_v63 = vmul.f32 %v8906_v56, %v8906_v56  ;;  %2422 = vmatprep.subr.bf16.mxu1 %v7653_v28  ;;  %v10854_v28 = vld [vmem:[#allocation20_spill] sm:$0xff] }
 0x11f   : > { %1047 = vadd.xlane.f32.xlu1 %v1046_v39  ;;  %v1061_v39 = vadd.f32 %v886_v11, %v885_v37  ;;  %v1064_v11 = vadd.f32 %v888_v55, %v887_v18  ;;  %v649_v62 = vmul.f32 0.00390625, %v562_v24  ;;  %v8934_v1 = vsub.f32 %v10848_v30, %v600_v48  ;;  %v10850_v18 = vld [vmem:[#allocation18_spill] sm:$0xff] }
 0x120   : > { %1050 = vadd.xlane.f32.xlu0 %v1049_v44  ;;  %v599_v44 = vmul.f32 0.00390625, %v412_v50  ;;  %10842 = vst [vmem:[#allocation78_spill] sm:$0xff] %v8916_v45  ;;  %10843 = vst [vmem:[#allocation79_spill] sm:$0xff] %v8919_v40  ;;  %v917_v50 = vadd.f32 %v790_v42, %v789_v4  ;;  %v920_v43 = vadd.f32 %v792_v58, %v791_v33  ;;  %v10852_v33 = vld [vmem:[#allocation19_spill] sm:$0xff] }
 0x121   : > { %10849 = vst [vmem:[#allocation17_spill] sm:$0xff] %v8934_v1  ;;  %v8948_v58 = vsub.f32 %v10852_v33, %v649_v62 }
 0x122   : > { %v8924_v16 = vsub.f32 %v10844_v59, %v599_v44  ;;  %v8927_v37 = vsub.f32 %v10846_v19, %v599_v44  ;;  %v891_v44 = vmul.f32 %v8916_v45, %v8916_v45  ;;  %v418_v24 = vpop.xlane.xlu0 %417  ;;  %v8951_v59 = vsub.f32 %v10854_v28, %v649_v62  ;;  %v10858_v62 = vld [vmem:[#allocation22_spill] sm:$0xff]  ;;  %v10860_v28 = vld [vmem:[#allocation23_spill] sm:$0xff] }
 0x123   : > { %1053 = vadd.xlane.f32.xlu1 %v1052_v7  ;;  %v890_v7 = vmul.f32 %v8909_v57, %v8909_v57  ;;  %10853 = vst [vmem:[#allocation19_spill] sm:$0xff] %v8948_v58 }
 0x124   : > { %1056 = vadd.xlane.f32.xlu0 %v1055_v27  ;;  %10845 = vst [vmem:[#allocation15_spill] sm:$0xff] %v8924_v16  ;;  %10847 = vst [vmem:[#allocation16_spill] sm:$0xff] %v8927_v37  ;;  %v565_v27 = vpop.xlane.xlu1 %564  ;;  %v793_v4 = vmul.f32 %v8924_v16, %v8924_v16  ;;  %v794_v42 = vmul.f32 %v8927_v37, %v8927_v37  ;;  %v330_v37 = vld [vmem:[%s8301_s13 + $0x1b0] sm:$0xff] }
 0x125   : > { %v650_v55 = vmul.f32 0.00390625, %v565_v27  ;;  %10855 = vst [vmem:[#allocation20_spill] sm:$0xff] %v8951_v59  ;;  %v1067_v19 = vadd.f32 %v890_v7, %v889_v63  ;;  %v893_v63 = vmul.f32 %v8948_v58, %v8948_v58  ;;  %v894_v7 = vmul.f32 %v8951_v59, %v8951_v59 }
 0x126   : > { %v923_v45 = vadd.f32 %v794_v42, %v793_v4  ;;  %v10862_v4 = vld [vmem:[#allocation24_spill] sm:$0xff] }
 0x127   : > { %1059 = vadd.xlane.f32.xlu1 %v1058_v13  ;;  %v892_v13 = vmul.f32 %v8919_v40, %v8919_v40  ;;  %v8961_v33 = vsub.f32 %v10858_v62, %v650_v55 }
 0x128   : > { %1062 = vadd.xlane.f32.xlu0 %v1061_v39  ;;  %v8941_v39 = vsub.f32 %v10850_v18, %v600_v48  ;;  %v795_v48 = vmul.f32 %v8934_v1, %v8934_v1  ;;  %v421_v27 = vpop.xlane.xlu1 %420  ;;  %v10856_v18 = vld [vmem:[#allocation21_spill] sm:$0xff]  ;;  %v10876_v1 = vld [vmem:[#allocation31_spill] sm:$0xff] }
 0x129   : > { %v1070_v30 = vadd.f32 %v892_v13, %v891_v44  ;;  %v8956_v56 = vsub.f32 %v10856_v18, %v650_v55  ;;  %10859 = vst [vmem:[#allocation22_spill] sm:$0xff] %v8961_v33  ;;  %v568_v44 = vpop.xlane.xlu0 %567  ;;  %v602_v13 = vmul.f32 0.00390625, %v421_v27  ;;  %v8977_v55 = vld [vmem:[%s8301_s13 + $0x188] sm:$0xff] }
 0x12a   : > { %10851 = vst [vmem:[#allocation18_spill] sm:$0xff] %v8941_v39  ;;  %v651_v62 = vmul.f32 0.00390625, %v568_v44 }
 0x12b   : > { %1065 = vadd.xlane.f32.xlu1 %v1064_v11  ;;  %10857 = vst [vmem:[#allocation21_spill] sm:$0xff] %v8956_v56  ;;  %v601_v11 = vmul.f32 0.00390625, %v418_v24  ;;  %v8974_v24 = vld [vmem:[%s8301_s13 + $0x180] sm:$0xff]  ;;  %v895_v27 = vmul.f32 %v8956_v56, %v8956_v56 }
 0x12c   : > { %918 = vadd.xlane.f32.xlu0 %v917_v50  ;;  %v796_v50 = vmul.f32 %v8941_v39, %v8941_v39  ;;  %v571_v58 = vpop.xlane.xlu1 %570 }
 0x12d   : > { %v8968_v18 = vsub.f32 %v10860_v28, %v601_v11  ;;  %v8971_v42 = vsub.f32 %v10862_v4, %v601_v11  ;;  %v896_v28 = vmul.f32 %v8961_v33, %v8961_v33  ;;  %v424_v11 = vpop.xlane.xlu0 %423  ;;  %v10864_v4 = vld [vmem:[#allocation25_spill] sm:$0xff]  ;;  %v10870_v33 = vld [vmem:[#allocation28_spill] sm:$0xff] }
 0x12e   : > { %v8984_v59 = vsub.f32 %v10864_v4, %v602_v13  ;;  %v10868_v4 = vld [vmem:[#allocation27_spill] sm:$0xff]  ;;  %v9005_v40 = vsub.f32 %v10870_v33, %v651_v62 }
 0x12f   : > { %921 = vadd.xlane.f32.xlu1 %v920_v43  ;;  %10861 = vst [vmem:[#allocation23_spill] sm:$0xff] %v8968_v18  ;;  %10863 = vst [vmem:[#allocation24_spill] sm:$0xff] %v8971_v42  ;;  %v926_v43 = vadd.f32 %v796_v50, %v795_v48  ;;  %v476_v48 = vadd.f32 %v8977_v55, %v8974_v24  ;;  %v10866_v50 = vld [vmem:[#allocation26_spill] sm:$0xff]  ;;  %v798_v44 = vmul.f32 %v8971_v42, %v8971_v42 }
 0x130   : > { %1068 = vadd.xlane.f32.xlu0 %v1067_v19  ;;  %v1073_v19 = vadd.f32 %v894_v7, %v893_v63  ;;  %10865 = vst [vmem:[#allocation25_spill] sm:$0xff] %v8984_v59  ;;  %v8989_v57 = vsub.f32 %v10866_v50, %v602_v13  ;;  %v8995_v63 = vld [vmem:[%s8301_s13 + $0x198] sm:$0xff]  ;;  %v797_v7 = vmul.f32 %v8968_v18, %v8968_v18  ;;  %10871 = vst [vmem:[#allocation28_spill] sm:$0xff] %v9005_v40  ;;  %v10872_v18 = vld [vmem:[#allocation29_spill] sm:$0xff] }
 0x131   : > { %v9002_v56 = vsub.f32 %v10868_v4, %v651_v62  ;;  %v1076_v13 = vadd.f32 %v896_v28, %v895_v27  ;;  %v799_v46 = vmul.f32 %v8984_v59, %v8984_v59  ;;  %v574_v33 = vpop.xlane.xlu0 %573  ;;  %v10874_v62 = vld [vmem:[#allocation30_spill] sm:$0xff]  ;;  %v898_v59 = vmul.f32 %v9005_v40, %v9005_v40  ;;  %v10880_v40 = vld [vmem:[#allocation33_spill] sm:$0xff] }
 0x132   : > { %10867 = vst [vmem:[#allocation26_spill] sm:$0xff] %v8989_v57  ;;  %v800_v4 = vmul.f32 %v8989_v57, %v8989_v57  ;;  %v653_v57 = vmul.f32 0.00390625, %v574_v33  ;;  %v10884_v33 = vld [vmem:[#allocation35_spill] sm:$0xff] }
 0x133   : > { %1071 = vadd.xlane.f32.xlu1 %v1070_v30  ;;  %v8992_v30 = vld [vmem:[%s8301_s13 + $0x190] sm:$0xff]  ;;  %10869 = vst [vmem:[#allocation27_spill] sm:$0xff] %v9002_v56  ;;  %v897_v28 = vmul.f32 %v9002_v56, %v9002_v56 }
 0x134   : > { %924 = vadd.xlane.f32.xlu0 %v923_v45  ;;  %v652_v45 = vmul.f32 0.00390625, %v571_v58  ;;  %v427_v58 = vpop.xlane.xlu1 %426  ;;  %v479_v50 = vadd.f32 %v8995_v63, %v8992_v30 }
 0x135   : > { %v1079_v56 = vadd.f32 %v898_v59, %v897_v28  ;;  %v9048_v28 = vsub.f32 %v10884_v33, %v653_v57 }
 0x136   : > { %v9012_v49 = vsub.f32 %v10872_v18, %v652_v45  ;;  %v9017_v27 = vsub.f32 %v10874_v62, %v652_v45  ;;  %v604_v18 = vmul.f32 0.00390625, %v427_v58  ;;  %v329_v45 = vld [vmem:[%s8301_s13 + $0x1a8] sm:$0xff]  ;;  %v430_v62 = vpop.xlane.xlu0 %429 }
 0x137   : > { %927 = vadd.xlane.f32.xlu1 %v926_v43  ;;  %v929_v43 = vadd.f32 %v798_v44, %v797_v7  ;;  %10885 = vst [vmem:[#allocation35_spill] sm:$0xff] %v9048_v28 }
 0x138   : > { %1074 = vadd.xlane.f32.xlu0 %v1073_v19  ;;  %10873 = vst [vmem:[#allocation29_spill] sm:$0xff] %v9012_v49  ;;  %v603_v19 = vmul.f32 0.00390625, %v424_v11  ;;  %10875 = vst [vmem:[#allocation30_spill] sm:$0xff] %v9017_v27  ;;  %v577_v42 = vpop.xlane.xlu1 %576  ;;  %v10878_v11 = vld [vmem:[#allocation32_spill] sm:$0xff]  ;;  %v899_v58 = vmul.f32 %v9012_v49, %v9012_v49  ;;  %v9036_v16 = vsub.f32 %v10880_v40, %v604_v18  ;;  %v10888_v49 = vld [vmem:[#allocation37_spill] sm:$0xff] }
 0x139   : > { %v654_v39 = vmul.f32 0.00390625, %v577_v42  ;;  %v10886_v40 = vld [vmem:[#allocation36_spill] sm:$0xff] }
 0x13a   : > { %v9024_v7 = vsub.f32 %v10876_v1, %v603_v19  ;;  %v9027_v44 = vsub.f32 %v10878_v11, %v603_v19  ;;  %v900_v1 = vmul.f32 %v9017_v27, %v9017_v27  ;;  %10881 = vst [vmem:[#allocation33_spill] sm:$0xff] %v9036_v16  ;;  %v803_v42 = vmul.f32 %v9036_v16, %v9036_v16  ;;  %v10896_v16 = vld [vmem:[#allocation41_spill] sm:$0xff] }
 0x13b   : > { %1077 = vadd.xlane.f32.xlu1 %v1076_v13  ;;  %v932_v13 = vadd.f32 %v800_v4, %v799_v46  ;;  %v10882_v46 = vld [vmem:[#allocation34_spill] sm:$0xff] }
 0x13c   : > { %477 = vadd.xlane.f32.xlu0 %v476_v48  ;;  %10877 = vst [vmem:[#allocation31_spill] sm:$0xff] %v9024_v7  ;;  %10879 = vst [vmem:[#allocation32_spill] sm:$0xff] %v9027_v44  ;;  %v328_v48 = vld [vmem:[%s8301_s13 + $0x1a0] sm:$0xff]  ;;  %v433_v11 = vpop.xlane.xlu1 %432  ;;  %v9039_v4 = vsub.f32 %v10882_v46, %v604_v18  ;;  %v801_v59 = vmul.f32 %v9024_v7, %v9024_v7  ;;  %v580_v18 = vpop.xlane.xlu0 %579  ;;  %v9056_v7 = vsub.f32 %v10888_v49, %v654_v39 }
 0x13d   : > { %v482_v19 = vadd.f32 %v329_v45, %v328_v48  ;;  %v9051_v48 = vsub.f32 %v10886_v40, %v653_v57  ;;  %v1082_v45 = vadd.f32 %v900_v1, %v899_v58  ;;  %v10890_v57 = vld [vmem:[#allocation38_spill] sm:$0xff]  ;;  %v10892_v40 = vld [vmem:[#allocation39_spill] sm:$0xff] }
 0x13e   : > { %10883 = vst [vmem:[#allocation34_spill] sm:$0xff] %v9039_v4  ;;  %10889 = vst [vmem:[#allocation37_spill] sm:$0xff] %v9056_v7  ;;  %v9061_v33 = vsub.f32 %v10890_v57, %v654_v39  ;;  %v332_v39 = vld [vmem:[%s8301_s13 + $0x1c0] sm:$0xff] }
 0x13f   : > { %480 = vadd.xlane.f32.xlu1 %v479_v50  ;;  %v331_v50 = vld [vmem:[%s8301_s13 + $0x1b8] sm:$0xff]  ;;  %10887 = vst [vmem:[#allocation36_spill] sm:$0xff] %v9051_v48  ;;  %v902_v58 = vmul.f32 %v9051_v48, %v9051_v48  ;;  %v903_v48 = vmul.f32 %v9056_v7, %v9056_v7 }
 0x140   : > { %930 = vadd.xlane.f32.xlu0 %v929_v43  ;;  %v802_v43 = vmul.f32 %v9027_v44, %v9027_v44  ;;  %v485_v46 = vadd.f32 %v331_v50, %v330_v37  ;;  %10891 = vst [vmem:[#allocation38_spill] sm:$0xff] %v9061_v33  ;;  %v901_v37 = vmul.f32 %v9048_v28, %v9048_v28  ;;  %v583_v1 = vpop.xlane.xlu1 %582  ;;  %v436_v49 = vpop.xlane.xlu0 %435  ;;  %v606_v50 = vmul.f32 0.00390625, %v433_v11 }
 0x141   : > { %v655_v28 = vmul.f32 0.00390625, %v580_v18  ;;  %v904_v11 = vmul.f32 %v9061_v33, %v9061_v33  ;;  %v10904_v33 = vld [vmem:[#allocation45_spill] sm:$0xff] }
 0x142   : > { %v935_v44 = vadd.f32 %v802_v43, %v801_v59  ;;  %v1085_v57 = vadd.f32 %v902_v58, %v901_v37  ;;  %v10900_v58 = vld [vmem:[#allocation43_spill] sm:$0xff] }
 0x143   : > { %933 = vadd.xlane.f32.xlu1 %v932_v13  ;;  %v605_v13 = vmul.f32 0.00390625, %v430_v62  ;;  %v10894_v62 = vld [vmem:[#allocation40_spill] sm:$0xff]  ;;  %v9092_v7 = vsub.f32 %v10900_v58, %v655_v28 }
 0x144   : > { %1080 = vadd.xlane.f32.xlu0 %v1079_v56  ;;  %v804_v56 = vmul.f32 %v9039_v4, %v9039_v4  ;;  %v9080_v4 = vsub.f32 %v10896_v16, %v606_v50  ;;  %v586_v37 = vpop.xlane.xlu0 %585  ;;  %v10902_v16 = vld [vmem:[#allocation44_spill] sm:$0xff] }
 0x145   : > { %v9068_v59 = vsub.f32 %v10892_v40, %v605_v13  ;;  %v9071_v43 = vsub.f32 %v10894_v62, %v605_v13  ;;  %v439_v40 = vpop.xlane.xlu1 %438  ;;  %v10898_v62 = vld [vmem:[#allocation42_spill] sm:$0xff]  ;;  %10901 = vst [vmem:[#allocation43_spill] sm:$0xff] %v9092_v7 }
 0x146   : > { %10897 = vst [vmem:[#allocation41_spill] sm:$0xff] %v9080_v4  ;;  %v9083_v27 = vsub.f32 %v10898_v62, %v606_v50  ;;  %v1088_v50 = vadd.f32 %v904_v11, %v903_v48  ;;  %v10906_v48 = vld [vmem:[#allocation46_spill] sm:$0xff] }
 0x147   : > { %1083 = vadd.xlane.f32.xlu1 %v1082_v45  ;;  %10893 = vst [vmem:[#allocation39_spill] sm:$0xff] %v9068_v59  ;;  %10895 = vst [vmem:[#allocation40_spill] sm:$0xff] %v9071_v43  ;;  %v333_v45 = vld [vmem:[%s8301_s13 + $0x1c8] sm:$0xff]  ;;  %v806_v18 = vmul.f32 %v9071_v43, %v9071_v43  ;;  %v607_v43 = vmul.f32 0.00390625, %v436_v49 }
 0x148   : > { %483 = vadd.xlane.f32.xlu0 %v482_v19  ;;  %v938_v19 = vadd.f32 %v804_v56, %v803_v42  ;;  %v488_v13 = vadd.f32 %v333_v45, %v332_v39  ;;  %10899 = vst [vmem:[#allocation42_spill] sm:$0xff] %v9083_v27  ;;  %v656_v42 = vmul.f32 0.00390625, %v583_v1  ;;  %v334_v56 = vld [vmem:[%s8301_s13 + $0x1d0] sm:$0xff]  ;;  %v9095_v39 = vsub.f32 %v10902_v16, %v655_v28 }
 0x149   : > { %v807_v1 = vmul.f32 %v9080_v4, %v9080_v4  ;;  %v589_v62 = vpop.xlane.xlu1 %588  ;;  %v657_v16 = vmul.f32 0.00390625, %v586_v37 }
 0x14a   : > { %10903 = vst [vmem:[#allocation44_spill] sm:$0xff] %v9095_v39  ;;  %v906_v28 = vmul.f32 %v9095_v39, %v9095_v39  ;;  %v9109_v11 = vsub.f32 %v10906_v48, %v656_v42  ;;  %v336_v48 = vld [vmem:[%s8301_s13 + $0x1e0] sm:$0xff] }
 0x14b   : > { %486 = vadd.xlane.f32.xlu1 %v485_v46  ;;  %v335_v46 = vld [vmem:[%s8301_s13 + $0x1d8] sm:$0xff] }
 0x14c   : > { %936 = vadd.xlane.f32.xlu0 %v935_v44  ;;  %v805_v44 = vmul.f32 %v9068_v59, %v9068_v59  ;;  %v491_v45 = vadd.f32 %v335_v46, %v334_v56  ;;  %v9100_v59 = vsub.f32 %v10904_v33, %v656_v42  ;;  %10907 = vst [vmem:[#allocation46_spill] sm:$0xff] %v9109_v11  ;;  %v442_v33 = vpop.xlane.xlu0 %441  ;;  %v608_v56 = vmul.f32 0.00390625, %v439_v40  ;;  %v10908_v46 = vld [vmem:[#allocation47_spill] sm:$0xff] }
 0x14d   : > { %v9112_v49 = vsub.f32 %v10908_v46, %v607_v43  ;;  %v445_v40 = vpop.xlane.xlu1 %444  ;;  %v337_v46 = vld [vmem:[%s8301_s13 + $0x1e8] sm:$0xff]  ;;  %v609_v4 = vmul.f32 0.00390625, %v442_v33 }
 0x14e   : > { %10905 = vst [vmem:[#allocation45_spill] sm:$0xff] %v9100_v59  ;;  %v941_v35 = vadd.f32 %v806_v18, %v805_v44  ;;  %v10910_v44 = vld [vmem:[#allocation48_spill] sm:$0xff] }
 0x14f   : > { %939 = vadd.xlane.f32.xlu1 %v938_v19  ;;  %v808_v19 = vmul.f32 %v9083_v27, %v9083_v27  ;;  %10909 = vst [vmem:[#allocation47_spill] sm:$0xff] %v9112_v49  ;;  %v9115_v18 = vsub.f32 %v10910_v44, %v607_v43  ;;  %v10912_v43 = vld [vmem:[#allocation49_spill] sm:$0xff]  ;;  %v809_v37 = vmul.f32 %v9112_v49, %v9112_v49 }
 0x150   : > { %1086 = vadd.xlane.f32.xlu0 %v1085_v57  ;;  %v905_v57 = vmul.f32 %v9092_v7, %v9092_v7  ;;  %v658_v7 = vmul.f32 0.00390625, %v589_v62  ;;  %v9124_v44 = vsub.f32 %v10912_v43, %v608_v56  ;;  %v10916_v62 = vld [vmem:[#allocation52_spill] sm:$0xff]  ;;  %v494_v49 = vadd.f32 %v337_v46, %v336_v48  ;;  %v7875_v27 = vld [vmem:[%s8301_s13 + $0x3d0] sm:$0xff] }
 0x151   : > { %10911 = vst [vmem:[#allocation48_spill] sm:$0xff] %v9115_v18  ;;  %v944_v58 = vadd.f32 %v808_v19, %v807_v1  ;;  %v810_v1 = vmul.f32 %v9115_v18, %v9115_v18  ;;  %v10913_v19 = vld [vmem:[#allocation50_spill] sm:$0xff]  ;;  %v9139_v43 = vsub.f32 %v10916_v62, %v657_v16  ;;  %v7878_v48 = vld [vmem:[%s8301_s13 + $0xc8] sm:$0xff] }
 0x152   : > { %v1091_v42 = vadd.f32 %v906_v28, %v905_v57  ;;  %v338_v57 = vld [vmem:[%s8301_s13 + $0x1f0] sm:$0xff]  ;;  %v339_v28 = vld [vmem:[%s8301_s13 + $0x1f8] sm:$0xff]  ;;  %v9142_v18 = vsub.f32 %v7875_v27, %v658_v7  ;;  %v9159_v46 = vsub.f32 %v7878_v48, %v609_v4 }
 0x153   : > { %1089 = vadd.xlane.f32.xlu1 %v1088_v50  ;;  %v907_v50 = vmul.f32 %v9100_v59, %v9100_v59  ;;  %v9131_v59 = vsub.f32 %v10913_v19, %v608_v56  ;;  %v811_v56 = vmul.f32 %v9124_v44, %v9124_v44  ;;  %v7876_v19 = vld [vmem:[%s8301_s13 + $0x3d8] sm:$0xff]  ;;  %v497_v9 = vadd.f32 %v339_v28, %v338_v57 }
 0x154   : > { %489 = vadd.xlane.f32.xlu0 %v488_v13  ;;  %v908_v13 = vmul.f32 %v9109_v11, %v9109_v11  ;;  %v592_v11 = vpop.xlane.xlu0 %591  ;;  %10917 = vst [vmem:[#allocation50_spill] sm:$0xff] %v9142_v18  ;;  %v947_v27 = vadd.f32 %v810_v1, %v809_v37  ;;  %v911_v57 = vmul.f32 %v9142_v18, %v9142_v18  ;;  %v7879_v37 = vld [vmem:[%s8301_s13 + $0xd0] sm:$0xff]  ;;  %v7880_v62 = vld [vmem:[%s8301_s13 + $0xd8] sm:$0xff] }
 0x156   : > { %v1094_v39 = vadd.f32 %v908_v13, %v907_v50  ;;  %v659_v50 = vmul.f32 0.00390625, %v592_v11  ;;  %v910_v13 = vmul.f32 %v9139_v43, %v9139_v43 }
 0x157   : > { %492 = vadd.xlane.f32.xlu1 %v491_v45 }
 0x158   : > { %942 = vadd.xlane.f32.xlu0 %v941_v35  ;;  %v10914_v35 = vld [vmem:[#allocation51_spill] sm:$0xff]  ;;  %v448_v28 = vpop.xlane.xlu0 %447 }
 0x159   : > { %v9134_v45 = vsub.f32 %v10914_v35, %v657_v16  ;;  %v9147_v35 = vsub.f32 %v7876_v19, %v658_v7  ;;  %v812_v16 = vmul.f32 %v9131_v59, %v9131_v59  ;;  %v7877_v7 = vld [vmem:[%s8301_s13 + $0xc0] sm:$0xff] }
 0x15a   : > { %v7881_v19 = vld [vmem:[%s8301_s13 + $0x3e0] sm:$0xff] }
 0x15b   : > { %10915 = vst [vmem:[#allocation49_spill] sm:$0xff] %v9134_v45  ;;  %945 = vadd.xlane.f32.xlu1 %v944_v58  ;;  %v610_v58 = vmul.f32 0.00390625, %v445_v40  ;;  %v909_v33 = vmul.f32 %v9134_v45, %v9134_v45  ;;  %v9156_v40 = vsub.f32 %v7877_v7, %v609_v4  ;;  %v912_v11 = vmul.f32 %v9147_v35, %v9147_v35  ;;  %v7882_v4 = vld [vmem:[%s8301_s13 + $0x3e8] sm:$0xff] }
 0x15c   : > { %1092 = vadd.xlane.f32.xlu0 %v1091_v42  ;;  %v595_v42 = vpop.xlane.xlu1 %594  ;;  %v9172_v7 = vsub.f32 %v7881_v19, %v659_v50  ;;  %v9175_v48 = vsub.f32 %v7882_v4, %v659_v50  ;;  %v950_v18 = vadd.f32 %v812_v16, %v811_v56  ;;  %v7883_v56 = vld [vmem:[%s8301_s13 + $0x3f0] sm:$0xff] }
 0x15d   : > { %10918 = vst [vmem:[#allocation51_spill] sm:$0xff] %v9156_v40  ;;  %v9166_v1 = vsub.f32 %v7879_v37, %v610_v58  ;;  %v813_v45 = vmul.f32 %v9156_v40, %v9156_v40  ;;  %v814_v37 = vmul.f32 %v9159_v46, %v9159_v46  ;;  %v1100_v4 = vadd.f32 %v912_v11, %v911_v57 }
 0x15e   : > { %10921 = vst [vmem:[#allocation81_spill] sm:$0xff] %v9172_v7  ;;  %10922 = vst [vmem:[#allocation82_spill] sm:$0xff] %v9175_v48 }
 0x15f   : > { %1095 = vadd.xlane.f32.xlu1 %v1094_v39  ;;  %10919 = vst [vmem:[#allocation52_spill] sm:$0xff] %v9166_v1  ;;  %v9169_v39 = vsub.f32 %v7880_v62, %v610_v58  ;;  %v1097_v58 = vadd.f32 %v910_v13, %v909_v33  ;;  %v611_v62 = vmul.f32 0.00390625, %v448_v28  ;;  %v815_v19 = vmul.f32 %v9166_v1, %v9166_v1  ;;  %v7885_v1 = vld [vmem:[%s8301_s13 + $0xe0] sm:$0xff] }
 0x160   : > { %495 = vadd.xlane.f32.xlu0 %v494_v49  ;;  %v660_v49 = vmul.f32 0.00390625, %v595_v42  ;;  %v451_v42 = vpop.xlane.xlu1 %450  ;;  %v914_v33 = vmul.f32 %v9175_v48, %v9175_v48  ;;  %v953_v57 = vadd.f32 %v814_v37, %v813_v45  ;;  %v7888_v45 = vld [vmem:[%s8301_s13 + $0xf8] sm:$0xff] }
 0x161   : > { %10920 = vst [vmem:[#allocation80_spill] sm:$0xff] %v9169_v39  ;;  %v816_v50 = vmul.f32 %v9169_v39, %v9169_v39  ;;  %v612_v28 = vmul.f32 0.00390625, %v451_v42  ;;  %v9196_v40 = vsub.f32 %v7885_v1, %v611_v62 }
 0x162   : > { %v9186_v16 = vsub.f32 %v7883_v56, %v660_v49  ;;  %v7886_v56 = vld [vmem:[%s8301_s13 + $0xe8] sm:$0xff] }
 0x163   : > { %498 = vadd.xlane.f32.xlu1 %v497_v9  ;;  %v913_v9 = vmul.f32 %v9172_v7, %v9172_v7  ;;  %v9199_v39 = vsub.f32 %v7886_v56, %v611_v62  ;;  %v956_v11 = vadd.f32 %v816_v50, %v815_v19  ;;  %v9213_v37 = vsub.f32 %v7888_v45, %v612_v28  ;;  %v7889_v45 = vld [vmem:[%s8301_s13 + $0x100] sm:$0xff] }
 0x164   : > { %948 = vadd.xlane.f32.xlu0 %v947_v27  ;;  %v7884_v27 = vld [vmem:[%s8301_s13 + $0x3f8] sm:$0xff]  ;;  %v915_v7 = vmul.f32 %v9186_v16, %v9186_v16 }
 0x165   : > { %v9193_v13 = vsub.f32 %v7884_v27, %v660_v49  ;;  %v7887_v49 = vld [vmem:[%s8301_s13 + $0xf0] sm:$0xff]  ;;  %v818_v1 = vmul.f32 %v9199_v39, %v9199_v39  ;;  %v820_v19 = vmul.f32 %v9213_v37, %v9213_v37 }
 0x166   : > { %v9206_v27 = vsub.f32 %v7887_v49, %v612_v28 }
 0x167   : > { %951 = vadd.xlane.f32.xlu1 %v950_v18  ;;  %v916_v48 = vmul.f32 %v9193_v13, %v9193_v13  ;;  %v1103_v18 = vadd.f32 %v914_v33, %v913_v9 }
 0x168   : > { %1098 = vadd.xlane.f32.xlu0 %v1097_v58  ;;  %10923 = vst [vmem:[#allocation83_spill] sm:$0xff] %v9206_v27  ;;  %v817_v58 = vmul.f32 %v9196_v40, %v9196_v40  ;;  %v819_v42 = vmul.f32 %v9206_v27, %v9206_v27 }
 0x169   : > { %v1106_v62 = vadd.f32 %v916_v48, %v915_v7 }
 0x16a   : > { %v959_v50 = vadd.f32 %v818_v1, %v817_v58  ;;  %v962_v9 = vadd.f32 %v820_v19, %v819_v42 }
 0x16b   : > { %1101 = vadd.xlane.f32.xlu1 %v1100_v4 }
 0x16c   : > { %954 = vadd.xlane.f32.xlu0 %v953_v57 }
 0x16f   : > { %957 = vadd.xlane.f32.xlu1 %v956_v11  ;;  %v7890_v11 = vld [vmem:[%s8301_s13 + $0x108] sm:$0xff] }
 0x170   : > { %1104 = vadd.xlane.f32.xlu0 %v1103_v18 }
 0x173   : > { %1107 = vadd.xlane.f32.xlu1 %v1106_v62 }
 0x174   : > { %960 = vadd.xlane.f32.xlu0 %v959_v50 }
 0x177   : > { %963 = vadd.xlane.f32.xlu1 %v962_v9 }
 0x185   : > { %v1015_v4 = vpop.xlane.xlu0 %1014 }
 0x186   : > { %v1141_v33 = vmul.f32 0.00390625, %v1015_v4 }
 0x188   : > { %v1205_v28 = vadd.f32 1e-05, %v1141_v33  ;;  %v1018_v56 = vpop.xlane.xlu1 %1017 }
 0x189   : > { %v454_v7 = vpop.xlane.xlu0 %453  ;;  %v1142_v48 = vmul.f32 0.00390625, %v1018_v56 }
 0x18a   : > { %v613_v57 = vmul.f32 0.00390625, %v454_v7  ;;  %7747 = vrsqrt.f32 %v1205_v28 }
 0x18b   : > { %v1206_v49 = vadd.f32 1e-05, %v1142_v48 }
 0x18c   : > { %v9220_v27 = vsub.f32 %v7889_v45, %v613_v57  ;;  %v9223_v18 = vsub.f32 %v7890_v11, %v613_v57  ;;  %v457_v58 = vpop.xlane.xlu1 %456 }
 0x18d   : > { %v1021_v1 = vpop.xlane.xlu0 %1020  ;;  %7749 = vrsqrt.f32 %v1206_v49  ;;  %v614_v19 = vmul.f32 0.00390625, %v457_v58 }
 0x18e   : > { %v821_v62 = vmul.f32 %v9220_v27, %v9220_v27  ;;  %v822_v42 = vmul.f32 %v9223_v18, %v9223_v18  ;;  %v1143_v50 = vmul.f32 0.00390625, %v1021_v1 }
 0x18f   : > { %v9230_v9 = vsub.f32 %v8681_v17, %v614_v19  ;;  %v9233_v4 = vsub.f32 %v8695_v53, %v614_v19 }
 0x190   : > { %v965_v33 = vadd.f32 %v822_v42, %v821_v62  ;;  %v1207_v28 = vadd.f32 1e-05, %v1143_v50  ;;  %v1024_v56 = vpop.xlane.xlu1 %1023 }
 0x191   : > { %v460_v7 = vpop.xlane.xlu0 %459  ;;  %v823_v48 = vmul.f32 %v9230_v9, %v9230_v9  ;;  %v824_v57 = vmul.f32 %v9233_v4, %v9233_v4  ;;  %v1144_v49 = vmul.f32 0.00390625, %v1024_v56 }
 0x192   : > { %v615_v45 = vmul.f32 0.00390625, %v460_v7  ;;  %966 = vadd.xlane.f32.xlu0 %v965_v33  ;;  %7751 = vrsqrt.f32 %v1207_v28 }
 0x193   : > { %v1208_v11 = vadd.f32 1e-05, %v1144_v49  ;;  %v968_v58 = vadd.f32 %v824_v57, %v823_v48 }
 0x194   : > { %v9240_v17 = vsub.f32 %v8710_v52, %v615_v45  ;;  %v9243_v53 = vsub.f32 %v8713_v2, %v615_v45  ;;  %v7748_v1 = vpop.eup %7747  ;;  %v463_v62 = vpop.xlane.xlu1 %462 }
 0x195   : > { %v1027_v42 = vpop.xlane.xlu0 %1026  ;;  %7753 = vrsqrt.f32 %v1208_v11  ;;  %v616_v33 = vmul.f32 0.00390625, %v463_v62  ;;  %969 = vadd.xlane.f32.xlu1 %v968_v58  ;;  %v1366_v48 = vmul.f32 %v7748_v1, %v8657_v41 }
 0x196   : > { %10924 = vst [vmem:[#allocation84_spill] sm:$0xff] %v9240_v17  ;;  %v825_v19 = vmul.f32 %v9240_v17, %v9240_v17  ;;  %v826_v50 = vmul.f32 %v9243_v53, %v9243_v53  ;;  %v1145_v28 = vmul.f32 0.00390625, %v1027_v42  ;;  %v1365_v17 = vmul.f32 %v7748_v1, %v8654_v10 }
 0x197   : > { %v7750_v56 = vpop.eup %7749  ;;  %v9250_v52 = vsub.f32 %v8724_v23, %v616_v33  ;;  %v9253_v2 = vsub.f32 %v8727_v0, %v616_v33 }
 0x198   : > { %v971_v7 = vadd.f32 %v826_v50, %v825_v19  ;;  %v1209_v57 = vadd.f32 1e-05, %v1145_v28  ;;  %v1030_v49 = vpop.xlane.xlu1 %1029  ;;  %v1368_v11 = vmul.f32 %v7750_v56, %v8675_v6  ;;  %v1367_v58 = vmul.f32 %v7750_v56, %v8672_v5  ;;  %v7651_v50 = vld [vmem:[#allocation5 + $0x8] ss:$24 sps:$4 sm:$0xff]   ;;  %v7656_v28 = vld [vmem:[#allocation5 + $0x3c] ss:$24 sps:$4 sm:$0xff]  }
 0x199   : > { %10925 = vst [vmem:[#allocation85_spill] sm:$0xff] %v9250_v52  ;;  %v466_v45 = vpop.xlane.xlu0 %465  ;;  %v827_v62 = vmul.f32 %v9250_v52, %v9250_v52  ;;  %v828_v23 = vmul.f32 %v9253_v2, %v9253_v2  ;;  %v1146_v0 = vmul.f32 0.00390625, %v1030_v49  ;;  %v10929_v5 = vld [vmem:[#allocation63_spill] sm:$0xff]  ;;  %v7654_v49 = vld [vmem:[#allocation5 + $0x38] ss:$24 sps:$4 sm:$0xff]  }
 0x19a   : > { %v617_v42 = vmul.f32 0.00390625, %v466_v45  ;;  %972 = vadd.xlane.f32.xlu0 %v971_v7  ;;  %7755 = vrsqrt.f32 %v1209_v57  ;;  %v9263_v41 = vpack.c.bf16 %v1368_v11, %v1366_v48  ;;  %v9265_v19 = vpack.c.bf16 %v1367_v58, %v1365_v17  ;;  %v10931_v58 = vld [vmem:[#allocation66_spill] sm:$0xff] }
 0x19b   : > { %v1210_v6 = vadd.f32 1e-05, %v1146_v0  ;;  %v974_v33 = vadd.f32 %v828_v23, %v827_v62  ;;  %v10932_v0 = vld [vmem:[#allocation54_spill] sm:$0xff] }
 0x19c   : > { %10926 = vst [vmem:[#allocation86_spill] sm:$0xff] %v9263_v41  ;;  %10927 = vst [vmem:[#allocation87_spill] sm:$0xff] %v9265_v19  ;;  %v9268_v10 = vsub.f32 %v8746_v60, %v617_v42  ;;  %v9271_v1 = vsub.f32 %v10929_v5, %v617_v42  ;;  %v7752_v56 = vpop.eup %7751  ;;  %v469_v52 = vpop.xlane.xlu1 %468  ;;  %2261 = vmatprep.mubr.bf16.mxu1 %v9263_v41  ;;  %v10933_v41 = vld [vmem:[#allocation56_spill] sm:$0xff] }
 0x19d   : > { %v1033_v7 = vpop.xlane.xlu0 %1032  ;;  %7757 = vrsqrt.f32 %v1210_v6  ;;  %v618_v57 = vmul.f32 0.00390625, %v469_v52  ;;  %975 = vadd.xlane.f32.xlu1 %v974_v33  ;;  %2262 = vmatmul.mubr.bf16.vlgmr.msra.gmra.mrb[0].mxu1 %v9265_v19  ;;  %v1370_v42 = vmul.f32 %v7752_v56, %v10932_v0  ;;  %v7659_v6 = vld [vmem:[#allocation5 + $0x6c] ss:$24 sps:$4 sm:$0xff]   ;;  %v7662_v0 = vld [vmem:[#allocation5 + $0x9c] ss:$24 sps:$4 sm:$0xff]  }
 0x19e   : > { %10928 = vst [vmem:[#allocation88_spill] sm:$0xff] %v9268_v10  ;;  %10930 = vst [vmem:[#allocation63_spill] sm:$0xff] %v9271_v1  ;;  %v829_v17 = vmul.f32 %v9268_v10, %v9268_v10  ;;  %v830_v48 = vmul.f32 %v9271_v1, %v9271_v1  ;;  %v1147_v60 = vmul.f32 0.00390625, %v1033_v7  ;;  %2423 = vmatpush1.bf16.msra.mxu1 %v7651_v50  ;;  %v10934_v7 = vld [vmem:[#allocation53_spill] sm:$0xff]  ;;  %v10935_v10 = vld [vmem:[#allocation55_spill] sm:$0xff] }
 0x19f   : > { %v7754_v45 = vpop.eup %7753  ;;  %v9280_v11 = vsub.f32 %v8760_v14, %v618_v57  ;;  %v9283_v62 = vsub.f32 %v10931_v58, %v618_v57  ;;  %2424 = vmatprep.subr.bf16.mxu1 %v7656_v28  ;;  %v1369_v50 = vmul.f32 %v7752_v56, %v10934_v7 }
 0x1a0   : > { %v977_v23 = vadd.f32 %v830_v48, %v829_v17  ;;  %v1211_v5 = vadd.f32 1e-05, %v1147_v60  ;;  %v1036_v52 = vpop.xlane.xlu1 %1035  ;;  %v1372_v19 = vmul.f32 %v7754_v45, %v10933_v41  ;;  %v1371_v1 = vmul.f32 %v7754_v45, %v10935_v10  ;;  %v7657_v41 = vld [vmem:[#allocation5 + $0x68] ss:$24 sps:$4 sm:$0xff]  }
 0x1a1   : > { %v472_v33 = vpop.xlane.xlu0 %471  ;;  %v831_v14 = vmul.f32 %v9280_v11, %v9280_v11  ;;  %v832_v57 = vmul.f32 %v9283_v62, %v9283_v62  ;;  %v1148_v17 = vmul.f32 0.00390625, %v1036_v52 }
 0x1a2   : > { %v619_v48 = vmul.f32 0.00390625, %v472_v33  ;;  %978 = vadd.xlane.f32.xlu0 %v977_v23  ;;  %7759 = vrsqrt.f32 %v1211_v5  ;;  %v9293_v28 = vpack.c.bf16 %v1372_v19, %v1370_v42  ;;  %v9295_v60 = vpack.c.bf16 %v1371_v1, %v1369_v50  ;;  %2425 = vmatpush1.bf16.msra.mxu1 %v7654_v49  ;;  %v7660_v23 = vld [vmem:[#allocation5 + $0x98] ss:$24 sps:$4 sm:$0xff]  }
 0x1a3   : > { %v1212_v58 = vadd.f32 1e-05, %v1148_v17  ;;  %v980_v45 = vadd.f32 %v832_v57, %v831_v14  ;;  %2426 = vmatprep.subr.bf16.mxu1 %v7659_v6  ;;  %v10940_v50 = vld [vmem:[#allocation58_spill] sm:$0xff]  ;;  %v7665_v57 = vld [vmem:[#allocation5 + $0xcc] ss:$24 sps:$4 sm:$0xff]  }
 0x1a4   : > { %10936 = vst [vmem:[#allocation66_spill] sm:$0xff] %v9293_v28  ;;  %10937 = vst [vmem:[#allocation54_spill] sm:$0xff] %v9295_v60  ;;  %v9298_v56 = vsub.f32 %v8782_v8, %v619_v48  ;;  %v9301_v10 = vsub.f32 %v8785_v47, %v619_v48  ;;  %v7756_v52 = vpop.eup %7755  ;;  %v475_v33 = vpop.xlane.xlu1 %474  ;;  %2271 = vmatprep.mubr.bf16.mxu1 %v9293_v28 }
 0x1a5   : > { %v1039_v19 = vpop.xlane.xlu0 %1038  ;;  %7761 = vrsqrt.f32 %v1212_v58  ;;  %v620_v8 = vmul.f32 0.00390625, %v475_v33  ;;  %981 = vadd.xlane.f32.xlu1 %v980_v45  ;;  %2272 = vmatmul.mubr.bf16.gmra.mrb[4].mxu1 %v9295_v60  ;;  %v1374_v14 = vmul.f32 %v7756_v52, %v10940_v50  ;;  %v10941_v45 = vld [vmem:[#allocation60_spill] sm:$0xff]  ;;  %v10943_v60 = vld [vmem:[#allocation59_spill] sm:$0xff] }
 0x1a6   : > { %10938 = vst [vmem:[#allocation56_spill] sm:$0xff] %v9298_v56  ;;  %v833_v1 = vmul.f32 %v9298_v56, %v9298_v56  ;;  %v834_v49 = vmul.f32 %v9301_v10, %v9301_v10  ;;  %v1149_v47 = vmul.f32 0.00390625, %v1039_v19  ;;  %2427 = vmatpush1.bf16.msra.mxu1 %v7657_v41  ;;  %v10942_v19 = vld [vmem:[#allocation57_spill] sm:$0xff] }
 0x1a7   : > { %v7758_v42 = vpop.eup %7757  ;;  %v9310_v6 = vsub.f32 %v8812_v61, %v620_v8  ;;  %v9313_v5 = vsub.f32 %v8815_v21, %v620_v8  ;;  %2428 = vmatprep.subr.bf16.mxu1 %v7662_v0  ;;  %v1373_v41 = vmul.f32 %v7756_v52, %v10942_v19 }
 0x1a8   : > { %v983_v7 = vadd.f32 %v834_v49, %v833_v1  ;;  %v1213_v17 = vadd.f32 1e-05, %v1149_v47  ;;  %v1042_v48 = vpop.xlane.xlu1 %1041  ;;  %v1376_v33 = vmul.f32 %v7758_v42, %v10941_v45  ;;  %v1375_v28 = vmul.f32 %v7758_v42, %v10943_v60  ;;  %v7663_v47 = vld [vmem:[#allocation5 + $0xc8] ss:$24 sps:$4 sm:$0xff]   ;;  %v7668_v60 = vld [vmem:[#allocation5 + $0xfc] ss:$24 sps:$4 sm:$0xff]  }
 0x1a9   : > { %10939 = vst [vmem:[#allocation53_spill] sm:$0xff] %v9310_v6  ;;  %v1045_v58 = vpop.xlane.xlu0 %1044  ;;  %v835_v61 = vmul.f32 %v9310_v6, %v9310_v6  ;;  %v836_v21 = vmul.f32 %v9313_v5, %v9313_v5  ;;  %v1150_v1 = vmul.f32 0.00390625, %v1042_v48 }
 0x1aa   : > { %v1151_v49 = vmul.f32 0.00390625, %v1045_v58  ;;  %984 = vadd.xlane.f32.xlu0 %v983_v7  ;;  %v9323_v0 = vpack.c.bf16 %v1376_v33, %v1374_v14  ;;  %v9325_v8 = vpack.c.bf16 %v1375_v28, %v1373_v41  ;;  %2429 = vmatpush1.bf16.msra.mxu1 %v7660_v23  ;;  %7763 = vrsqrt.f32 %v1213_v17  ;;  %v7666_v28 = vld [vmem:[#allocation5 + $0xf8] ss:$24 sps:$4 sm:$0xff]  }
 0x1ab   : > { %v1214_v50 = vadd.f32 1e-05, %v1150_v1  ;;  %v986_v45 = vadd.f32 %v836_v21, %v835_v61  ;;  %2430 = vmatprep.subr.bf16.mxu1 %v7665_v57  ;;  %v10946_v17 = vld [vmem:[#allocation62_spill] sm:$0xff]  ;;  %v7671_v57 = vld [vmem:[#allocation5 + $0x12c] ss:$24 sps:$4 sm:$0xff]   ;;  %v10947_v21 = vld [vmem:[#allocation65_spill] sm:$0xff] }
 0x1ac   : > { %10944 = vst [vmem:[#allocation55_spill] sm:$0xff] %v9323_v0  ;;  %10945 = vst [vmem:[#allocation58_spill] sm:$0xff] %v9325_v8  ;;  %v1215_v52 = vadd.f32 1e-05, %v1151_v49  ;;  %v7760_v42 = vpop.eup %7759  ;;  %v1048_v19 = vpop.xlane.xlu1 %1047  ;;  %2281 = vmatprep.mubr.bf16.mxu1 %v9323_v0  ;;  %v10948_v49 = vld [vmem:[#allocation61_spill] sm:$0xff] }
 0x1ad   : > { %v1051_v6 = vpop.xlane.xlu0 %1050  ;;  %7765 = vrsqrt.f32 %v1214_v50  ;;  %v1152_v48 = vmul.f32 0.00390625, %v1048_v19  ;;  %987 = vadd.xlane.f32.xlu1 %v986_v45  ;;  %2282 = vmatmul.mubr.bf16.gmra.mrb[8].mxu1 %v9325_v8  ;;  %v1378_v58 = vmul.f32 %v7760_v42, %v10946_v17  ;;  %v1377_v50 = vmul.f32 %v7760_v42, %v10948_v49  ;;  %v10952_v49 = vld [vmem:[#allocation69_spill] sm:$0xff] }
 0x1ae   : > { %v1153_v7 = vmul.f32 0.00390625, %v1051_v6  ;;  %2431 = vmatpush1.bf16.msra.mxu1 %v7663_v47  ;;  %7767 = vrsqrt.f32 %v1215_v52  ;;  %v10949_v6 = vld [vmem:[#allocation64_spill] sm:$0xff] }
 0x1af   : > { %v7762_v23 = vpop.eup %7761  ;;  %v1216_v14 = vadd.f32 1e-05, %v1152_v48  ;;  %2432 = vmatprep.subr.bf16.mxu1 %v7668_v60  ;;  %v7669_v52 = vld [vmem:[#allocation5 + $0x128] ss:$24 sps:$4 sm:$0xff]  }
 0x1b0   : > { %v1217_v33 = vadd.f32 1e-05, %v1153_v7  ;;  %v1054_v41 = vpop.xlane.xlu1 %1053  ;;  %v1380_v1 = vmul.f32 %v7762_v23, %v10947_v21  ;;  %v1379_v45 = vmul.f32 %v7762_v23, %v10949_v6  ;;  %v7674_v7 = vld [vmem:[#allocation5 + $0x15c] ss:$24 sps:$4 sm:$0xff]   ;;  %v10953_v6 = vld [vmem:[#allocation67_spill] sm:$0xff] }
 0x1b1   : > { %v1057_v61 = vpop.xlane.xlu0 %1056  ;;  %7769 = vrsqrt.f32 %v1216_v14  ;;  %v1154_v19 = vmul.f32 0.00390625, %v1054_v41  ;;  %v7672_v14 = vld [vmem:[#allocation5 + $0x158] ss:$24 sps:$4 sm:$0xff]  }
 0x1b2   : > { %v9333_v47 = vpack.c.bf16 %v1380_v1, %v1378_v58  ;;  %v9335_v8 = vpack.c.bf16 %v1379_v45, %v1377_v50  ;;  %2433 = vmatpush1.bf16.msra.mxu1 %v7666_v28  ;;  %v1155_v60 = vmul.f32 0.00390625, %v1057_v61  ;;  %7771 = vrsqrt.f32 %v1217_v33  ;;  %v7677_v1 = vld [vmem:[#allocation5 + $0x18c] ss:$24 sps:$4 sm:$0xff]  }
 0x1b3   : > { %v1218_v48 = vadd.f32 1e-05, %v1154_v19  ;;  %2434 = vmatprep.subr.bf16.mxu1 %v7671_v57  ;;  %v10954_v19 = vld [vmem:[#allocation68_spill] sm:$0xff] }
 0x1b4   : > { %10950 = vst [vmem:[#allocation60_spill] sm:$0xff] %v9333_v47  ;;  %10951 = vst [vmem:[#allocation57_spill] sm:$0xff] %v9335_v8  ;;  %v1060_v17 = vpop.xlane.xlu1 %1059  ;;  %2291 = vmatprep.mubr.bf16.mxu1 %v9333_v47  ;;  %v7764_v42 = vpop.eup %7763  ;;  %v1219_v41 = vadd.f32 1e-05, %v1155_v60 }
 0x1b5   : > { %v1063_v21 = vpop.xlane.xlu0 %1062  ;;  %7773 = vrsqrt.f32 %v1218_v48  ;;  %v1156_v23 = vmul.f32 0.00390625, %v1060_v17  ;;  %2292 = vmatmul.mubr.bf16.gmra.mrb[12].mxu1 %v9335_v8  ;;  %v1382_v33 = vmul.f32 %v7764_v42, %v8779_v3  ;;  %v1381_v45 = vmul.f32 %v7764_v42, %v10953_v6  ;;  %v7680_v3 = vld [vmem:[#allocation5 + $0x1bc] ss:$24 sps:$4 sm:$0xff]  }
 0x1b6   : > { %2435 = vmatpush1.bf16.msra.mxu1 %v7669_v52  ;;  %v1157_v0 = vmul.f32 0.00390625, %v1063_v21 }
 0x1b7   : > { %v7766_v58 = vpop.eup %7765  ;;  %v1220_v28 = vadd.f32 1e-05, %v1156_v23  ;;  %2436 = vmatprep.subr.bf16.mxu1 %v7674_v7  ;;  %v7675_v7 = vld [vmem:[#allocation5 + $0x188] ss:$24 sps:$4 sm:$0xff]  }
 0x1b8   : > { %v1066_v61 = vpop.xlane.xlu1 %1065  ;;  %v1384_v50 = vmul.f32 %v7766_v58, %v10952_v49  ;;  %v1383_v48 = vmul.f32 %v7766_v58, %v10954_v19  ;;  %v7768_v17 = vpop.eup %7767  ;;  %v10957_v58 = vld [vmem:[#allocation71_spill] sm:$0xff] }
 0x1b9   : > { %v919_v57 = vpop.xlane.xlu0 %918  ;;  %7775 = vrsqrt.f32 %v1220_v28  ;;  %v1158_v52 = vmul.f32 0.00390625, %v1066_v61 }
 0x1ba   : > { %v1109_v47 = vmul.f32 0.00390625, %v919_v57  ;;  %v9343_v8 = vpack.c.bf16 %v1384_v50, %v1382_v33  ;;  %v9345_v60 = vpack.c.bf16 %v1383_v48, %v1381_v45  ;;  %2437 = vmatpush1.bf16.msra.mxu1 %v7672_v14  ;;  %7777 = vrsqrt.f32 %v1219_v41  ;;  %v7683_v45 = vld [vmem:[#allocation5 + $0x1ec] ss:$24 sps:$4 sm:$0xff]  }
 0x1bb   : > { %v7770_v23 = vpop.eup %7769  ;;  %2438 = vmatprep.subr.bf16.mxu1 %v7677_v1  ;;  %v1386_v57 = vmul.f32 %v7768_v17, %v10957_v58  ;;  %v1222_v14 = vadd.f32 1e-05, %v1158_v52  ;;  %v1221_v1 = vadd.f32 1e-05, %v1157_v0  ;;  %v10959_v58 = vld [vmem:[#allocation70_spill] sm:$0xff] }
 0x1bc   : > { %10955 = vst [vmem:[#allocation59_spill] sm:$0xff] %v9343_v8  ;;  %10956 = vst [vmem:[#allocation62_spill] sm:$0xff] %v9345_v60  ;;  %v1173_v56 = vadd.f32 1e-05, %v1109_v47  ;;  %v922_v49 = vpop.xlane.xlu1 %921  ;;  %2301 = vmatprep.mubr.bf16.mxu1 %v9343_v8  ;;  %v1388_v28 = vmul.f32 %v7770_v23, %v8809_v20  ;;  %v7772_v33 = vpop.eup %7771  ;;  %v7678_v47 = vld [vmem:[#allocation5 + $0x1b8] ss:$24 sps:$4 sm:$0xff]   ;;  %v1387_v6 = vmul.f32 %v7770_v23, %v8806_v31 }
 0x1bd   : > { %v1069_v42 = vpop.xlane.xlu0 %1068  ;;  %v1110_v61 = vmul.f32 0.00390625, %v922_v49  ;;  %2302 = vmatmul.mubr.bf16.gmra.mrb[16].mxu1 %v9345_v60  ;;  %v7681_v0 = vld [vmem:[#allocation5 + $0x1e8] ss:$24 sps:$4 sm:$0xff]  }
 0x1be   : > { %v9351_v50 = vpack.c.bf16 %v1388_v28, %v1386_v57  ;;  %2439 = vmatpush1.bf16.msra.mxu1 %v7675_v7  ;;  %7779 = vrsqrt.f32 %v1173_v56  ;;  %v1159_v19 = vmul.f32 0.00390625, %v1069_v42  ;;  %v1385_v7 = vmul.f32 %v7768_v17, %v10959_v58  ;;  %v10998_v8 = vld [vmem:[#allocation32_spill] sm:$0xff] }
 0x1bf   : > { %v7774_v21 = vpop.eup %7773  ;;  %v1174_v41 = vadd.f32 1e-05, %v1110_v61  ;;  %2440 = vmatprep.subr.bf16.mxu1 %v7680_v3  ;;  %v1390_v56 = vmul.f32 %v7772_v33, %v8829_v12  ;;  %v7686_v3 = vld [vmem:[#allocation5 + $0x21c] ss:$24 sps:$4 sm:$0xff]  }
 0x1c0   : > { %10958 = vst [vmem:[#allocation65_spill] sm:$0xff] %v9351_v50  ;;  %v1072_v48 = vpop.xlane.xlu1 %1071  ;;  %2311 = vmatprep.mubr.bf16.mxu1 %v9351_v50  ;;  %v1392_v49 = vmul.f32 %v7774_v21, %v8841_v34  ;;  %v9358_v23 = vpack.c.bf16 %v1387_v6, %v1385_v7  ;;  %v1223_v28 = vadd.f32 1e-05, %v1159_v19  ;;  %v7689_v19 = vld [vmem:[#allocation5 + $0x24c] ss:$24 sps:$4 sm:$0xff]  }
 0x1c1   : > { %v925_v20 = vpop.xlane.xlu0 %924  ;;  %7781 = vrsqrt.f32 %v1174_v41  ;;  %v1160_v57 = vmul.f32 0.00390625, %v1072_v48 }
 0x1c2   : > { %v1111_v52 = vmul.f32 0.00390625, %v925_v20  ;;  %7783 = vrsqrt.f32 %v1222_v14  ;;  %2441 = vmatpush1.bf16.msra.mxu1 %v7678_v47  ;;  %10960 = vst [vmem:[#allocation61_spill] sm:$0xff] %v9358_v23  ;;  %v9360_v41 = vpack.c.bf16 %v1392_v49, %v1390_v56  ;;  %v1391_v14 = vmul.f32 %v7774_v21, %v8838_v26  ;;  %v7684_v47 = vld [vmem:[#allocation5 + $0x218] ss:$24 sps:$4 sm:$0xff]   ;;  %v7687_v56 = vld [vmem:[#allocation5 + $0x248] ss:$24 sps:$4 sm:$0xff]  }
 0x1c3   : > { %7785 = vrsqrt.f32 %v1221_v1  ;;  %2442 = vmatprep.subr.bf16.mxu1 %v7683_v45  ;;  %v7776_v42 = vpop.eup %7775  ;;  %v1224_v12 = vadd.f32 1e-05, %v1160_v57 }
 0x1c4   : > { %v1175_v31 = vadd.f32 1e-05, %v1111_v52  ;;  %v928_v61 = vpop.xlane.xlu1 %927  ;;  %10961 = vst [vmem:[#allocation64_spill] sm:$0xff] %v9360_v41  ;;  %v9363_v17 = vpop.eup %7777  ;;  %v1396_v45 = vmul.f32 %v7776_v42, %v8857_v25  ;;  %v1389_v52 = vmul.f32 %v7772_v33, %v8822_v32  ;;  %v7692_v33 = vld [vmem:[#allocation5 + $0x27c] ss:$24 sps:$4 sm:$0xff]  }
 0x1c5   : > { %v1075_v34 = vpop.xlane.xlu0 %1074  ;;  %v1112_v20 = vmul.f32 0.00390625, %v928_v61  ;;  %2312 = vmatmul.mubr.bf16.gmra.mrb[20].mxu1 %v9358_v23  ;;  %v1394_v26 = vmul.f32 %v9363_v17, %v8849_v38  ;;  %v10994_v23 = vld [vmem:[#allocation19_spill] sm:$0xff] }
 0x1c6   : > { %2321 = vmatprep.mubr.bf16.mxu1 %v9360_v41  ;;  %2443 = vmatpush1.bf16.msra.mxu1 %v7681_v0  ;;  %7787 = vrsqrt.f32 %v1175_v31  ;;  %v1161_v6 = vmul.f32 0.00390625, %v1075_v34  ;;  %v9371_v21 = vpack.c.bf16 %v1391_v14, %v1389_v52 }
 0x1c7   : > { %v1176_v1 = vadd.f32 1e-05, %v1112_v20  ;;  %2444 = vmatprep.subr.bf16.mxu1 %v7686_v3  ;;  %7789 = vrsqrt.f32 %v1223_v28  ;;  %v9379_v32 = vpack.c.bf16 %v1396_v45, %v1394_v26 }
 0x1c8   : > { %v1078_v48 = vpop.xlane.xlu1 %1077  ;;  %v7780_v58 = vpop.eup %7779  ;;  %10962 = vst [vmem:[#allocation69_spill] sm:$0xff] %v9371_v21  ;;  %v1225_v0 = vadd.f32 1e-05, %v1161_v6 }
 0x1c9   : > { %v478_v49 = vpop.xlane.xlu0 %477  ;;  %7791 = vrsqrt.f32 %v1176_v1  ;;  %v1162_v7 = vmul.f32 0.00390625, %v1078_v48  ;;  %10963 = vst [vmem:[#allocation67_spill] sm:$0xff] %v9379_v32  ;;  %v1302_v34 = vmul.f32 %v7780_v58, %v8891_v15 }
 0x1ca   : > { %v621_v57 = vmul.f32 0.00390625, %v478_v49  ;;  %7793 = vrsqrt.f32 %v1224_v12  ;;  %2445 = vmatpush1.bf16.msra.mxu1 %v7684_v47  ;;  %v1301_v12 = vmul.f32 %v7780_v58, %v8884_v22  ;;  %v7695_v58 = vld [vmem:[#allocation5 + $0x2ac] ss:$24 sps:$4 sm:$0xff]  }
 0x1cb   : > { %v7782_v25 = vpop.eup %7781  ;;  %2446 = vmatprep.subr.bf16.mxu1 %v7689_v19  ;;  %7795 = vrsqrt.f32 %v1225_v0 }
 0x1cc   : > { %v9374_v31 = vsub.f32 %v8974_v24, %v621_v57  ;;  %v9377_v3 = vsub.f32 %v8977_v55, %v621_v57  ;;  %v9381_v28 = vpop.eup %7783  ;;  %v481_v38 = vpop.xlane.xlu1 %480  ;;  %v1304_v20 = vmul.f32 %v7782_v25, %v8897_v54  ;;  %v1303_v24 = vmul.f32 %v7782_v25, %v8894_v51  ;;  %v7690_v54 = vld [vmem:[#allocation5 + $0x278] ss:$24 sps:$4 sm:$0xff]  }
 0x1cd   : > { %v931_v61 = vpop.xlane.xlu0 %930  ;;  %v9387_v14 = vpop.eup %7785  ;;  %v1226_v55 = vadd.f32 1e-05, %v1162_v7  ;;  %v622_v6 = vmul.f32 0.00390625, %v481_v38  ;;  %2322 = vmatmul.mubr.bf16.gmra.mrb[24].mxu1 %v9371_v21  ;;  %v1395_v51 = vmul.f32 %v7776_v42, %v8854_v29  ;;  %v1400_v52 = vmul.f32 %v9381_v28, %v8881_v36  ;;  %v10964_v42 = vld [vmem:[#allocation72_spill] sm:$0xff]  ;;  %v10983_v21 = vld [vmem:[#allocation25_spill] sm:$0xff] }
 0x1ce   : > { %v837_v47 = vmul.f32 %v9374_v31, %v9374_v31  ;;  %v838_v1 = vmul.f32 %v9377_v3, %v9377_v3  ;;  %v1113_v45 = vmul.f32 0.00390625, %v931_v61  ;;  %2331 = vmatprep.mubr.bf16.mxu1 %v9379_v32  ;;  %v9395_v15 = vpack.c.bf16 %v1304_v20, %v1302_v34  ;;  %2447 = vmatpush1.bf16.msra.mxu1 %v7687_v56  ;;  %v10981_v32 = vld [vmem:[#allocation26_spill] sm:$0xff] }
 0x1cf   : > { %v9397_v22 = vpack.c.bf16 %v1303_v24, %v1301_v12  ;;  %v9401_v19 = vsub.f32 %v8992_v30, %v622_v6  ;;  %v9404_v48 = vsub.f32 %v8995_v63, %v622_v6  ;;  %2448 = vmatprep.subr.bf16.mxu1 %v7692_v33  ;;  %v1393_v26 = vmul.f32 %v9363_v17, %v10964_v42  ;;  %v10965_v30 = vld [vmem:[#allocation74_spill] sm:$0xff]  ;;  %v7693_v17 = vld [vmem:[#allocation5 + $0x2a8] ss:$24 sps:$4 sm:$0xff]  }
 0x1d0   : > { %v989_v49 = vadd.f32 %v838_v1, %v837_v47  ;;  %v1177_v7 = vadd.f32 1e-05, %v1113_v45  ;;  %v934_v57 = vpop.xlane.xlu1 %933  ;;  %2101 = vmatprep.mubr.bf16.mxu0 %v9395_v15  ;;  %v1398_v56 = vmul.f32 %v9387_v14, %v10965_v30  ;;  %v7788_v63 = vpop.eup %7787  ;;  %7797 = vrsqrt.f32 %v1226_v55  ;;  %v7698_v55 = vld [vmem:[#allocation5 + $0x2dc] ss:$24 sps:$4 sm:$0xff]   ;;  %v10968_v45 = vld [vmem:[#allocation16_spill] sm:$0xff] }
 0x1d1   : > { %v1081_v29 = vpop.xlane.xlu0 %1080  ;;  %v839_v25 = vmul.f32 %v9401_v19, %v9401_v19  ;;  %v840_v36 = vmul.f32 %v9404_v48, %v9404_v48  ;;  %v1114_v0 = vmul.f32 0.00390625, %v934_v57  ;;  %2102 = vmatmul.mubr.bf16.vlgmr.msra.gmra.mrb[0].mxu0 %v9397_v22  ;;  %v9418_v33 = vpop.eup %7789  ;;  %v9420_v38 = vpack.c.bf16 %v1395_v51, %v1393_v26  ;;  %v10969_v57 = vld [vmem:[#allocation18_spill] sm:$0xff] }
 0x1d2   : > { %990 = vadd.xlane.f32.xlu0 %v989_v49  ;;  %7799 = vrsqrt.f32 %v1177_v7  ;;  %2449 = vmatpush1.bf16.msra.mxu1 %v7690_v54  ;;  %v1163_v20 = vmul.f32 0.00390625, %v1081_v29  ;;  %v9422_v24 = vpack.c.bf16 %v1400_v52, %v1398_v56  ;;  %v1306_v49 = vmul.f32 %v7788_v63, %v10968_v45  ;;  %v10970_v7 = vld [vmem:[#allocation15_spill] sm:$0xff]  ;;  %v10971_v54 = vld [vmem:[#allocation17_spill] sm:$0xff] }
 0x1d3   : > { %10966 = vst [vmem:[#allocation68_spill] sm:$0xff] %v9420_v38  ;;  %v7792_v61 = vpop.eup %7791  ;;  %v1178_v34 = vadd.f32 1e-05, %v1114_v0  ;;  %v992_v12 = vadd.f32 %v840_v36, %v839_v25  ;;  %2450 = vmatprep.subr.bf16.mxu1 %v7695_v58  ;;  %v1305_v51 = vmul.f32 %v7788_v63, %v10970_v7  ;;  %v10972_v56 = vld [vmem:[#allocation75_spill] sm:$0xff]  ;;  %v7696_v63 = vld [vmem:[#allocation5 + $0x2d8] ss:$24 sps:$4 sm:$0xff]  }
 0x1d4   : > { %10967 = vst [vmem:[#allocation71_spill] sm:$0xff] %v9422_v24  ;;  %v7794_v47 = vpop.eup %7793  ;;  %v1084_v1 = vpop.xlane.xlu1 %1083  ;;  %v1308_v42 = vmul.f32 %v7792_v61, %v10969_v57  ;;  %v1307_v26 = vmul.f32 %v7792_v61, %v10971_v54  ;;  %v1399_v25 = vmul.f32 %v9381_v28, %v10972_v56  ;;  %v1227_v36 = vadd.f32 1e-05, %v1163_v20  ;;  %v7891_v61 = vld [vmem:[%s8301_s13 + $0x1a0] sm:$0xff] }
 0x1d5   : > { %v484_v6 = vpop.xlane.xlu0 %483  ;;  %7801 = vrsqrt.f32 %v1178_v34  ;;  %v1164_v29 = vmul.f32 0.00390625, %v1084_v1  ;;  %993 = vadd.xlane.f32.xlu1 %v992_v12  ;;  %2332 = vmatmul.mubr.bf16.gmra.mrb[28].mxu1 %v9420_v38  ;;  %v7892_v1 = vld [vmem:[%s8301_s13 + $0x1a8] sm:$0xff]  ;;  %v10974_v28 = vld [vmem:[#allocation79_spill] sm:$0xff] }
 0x1d6   : > { %v623_v30 = vmul.f32 0.00390625, %v484_v6  ;;  %2341 = vmatprep.mubr.bf16.mxu1 %v9422_v24  ;;  %v9430_v52 = vpack.c.bf16 %v1308_v42, %v1306_v49  ;;  %v9432_v58 = vpack.c.bf16 %v1307_v26, %v1305_v51  ;;  %2451 = vmatpush1.bf16.msra.mxu1 %v7693_v17  ;;  %v10973_v49 = vld [vmem:[#allocation73_spill] sm:$0xff]  ;;  %v1404_v17 = vmul.f32 %v7794_v47, %v10974_v28 }
 0x1d7   : > { %v1228_v0 = vadd.f32 1e-05, %v1164_v29  ;;  %2452 = vmatprep.subr.bf16.mxu1 %v7698_v55  ;;  %v1397_v57 = vmul.f32 %v9387_v14, %v10973_v49  ;;  %v9451_v55 = vpop.eup %7795  ;;  %v10976_v26 = vld [vmem:[#allocation77_spill] sm:$0xff] }
 0x1d8   : > { %v9437_v34 = vsub.f32 %v7891_v61, %v623_v30  ;;  %v9440_v12 = vsub.f32 %v7892_v1, %v623_v30  ;;  %v487_v6 = vpop.xlane.xlu1 %486  ;;  %2111 = vmatprep.mubr.bf16.mxu0 %v9430_v52  ;;  %v1402_v14 = vmul.f32 %v9418_v33, %v10976_v26  ;;  %v7893_v30 = vld [vmem:[%s8301_s13 + $0x1b0] sm:$0xff] }
 0x1d9   : > { %v937_v45 = vpop.xlane.xlu0 %936  ;;  %7803 = vrsqrt.f32 %v1228_v0  ;;  %v624_v7 = vmul.f32 0.00390625, %v487_v6  ;;  %2112 = vmatmul.mubr.bf16.gmra.mrb[4].mxu0 %v9432_v58  ;;  %v9453_v54 = vpack.c.bf16 %v1399_v25, %v1397_v57  ;;  %v7894_v0 = vld [vmem:[%s8301_s13 + $0x1b8] sm:$0xff] }
 0x1da   : > { %v841_v20 = vmul.f32 %v9437_v34, %v9437_v34  ;;  %v842_v42 = vmul.f32 %v9440_v12, %v9440_v12  ;;  %v1115_v51 = vmul.f32 0.00390625, %v937_v45  ;;  %2453 = vmatpush1.bf16.msra.mxu1 %v7696_v63  ;;  %v9457_v29 = vpop.eup %7797  ;;  %7805 = vrsqrt.f32 %v1227_v36 }
 0x1db   : > { %10975 = vst [vmem:[#allocation70_spill] sm:$0xff] %v9453_v54  ;;  %v9460_v56 = vsub.f32 %v7893_v30, %v624_v7  ;;  %v9463_v61 = vsub.f32 %v7894_v0, %v624_v7  ;;  %v9465_v25 = vpack.c.bf16 %v1404_v17, %v1402_v14  ;;  %v10979_v7 = vld [vmem:[#allocation22_spill] sm:$0xff]  ;;  %v10980_v0 = vld [vmem:[#allocation24_spill] sm:$0xff] }
 0x1dc   : > { %v995_v1 = vadd.f32 %v842_v42, %v841_v20  ;;  %v7800_v6 = vpop.eup %7799  ;;  %v1179_v49 = vadd.f32 1e-05, %v1115_v51  ;;  %v940_v28 = vpop.xlane.xlu1 %939  ;;  %v10978_v20 = vld [vmem:[#allocation78_spill] sm:$0xff]  ;;  %v1408_v51 = vmul.f32 %v9457_v29, %v10979_v7 }
 0x1dd   : > { %v1087_v45 = vpop.xlane.xlu0 %1086  ;;  %10977 = vst [vmem:[#allocation72_spill] sm:$0xff] %v9465_v25  ;;  %v843_v57 = vmul.f32 %v9460_v56, %v9460_v56  ;;  %v844_v63 = vmul.f32 %v9463_v61, %v9463_v61  ;;  %v1116_v36 = vmul.f32 0.00390625, %v940_v28  ;;  %2342 = vmatmul.mubr.bf16.gmra.mrb[32].mxu1 %v9453_v54  ;;  %v1403_v42 = vmul.f32 %v7794_v47, %v10978_v20  ;;  %v10982_v54 = vld [vmem:[#allocation23_spill] sm:$0xff] }
 0x1de   : > { %v1165_v26 = vmul.f32 0.00390625, %v1087_v45  ;;  %996 = vadd.xlane.f32.xlu0 %v995_v1  ;;  %2351 = vmatprep.mubr.bf16.mxu1 %v9465_v25  ;;  %7807 = vrsqrt.f32 %v1179_v49  ;;  %v1310_v24 = vmul.f32 %v7800_v6, %v10980_v0  ;;  %v1309_v25 = vmul.f32 %v7800_v6, %v10982_v54  ;;  %v10984_v49 = vld [vmem:[#allocation76_spill] sm:$0xff]  ;;  %v7895_v54 = vld [vmem:[%s8301_s13 + $0x1c0] sm:$0xff] }
 0x1df   : > { %v7802_v17 = vpop.eup %7801  ;;  %v1180_v14 = vadd.f32 1e-05, %v1116_v36  ;;  %v998_v30 = vadd.f32 %v844_v63, %v843_v57  ;;  %v1401_v57 = vmul.f32 %v9418_v33, %v10984_v49 }
 0x1e0   : > { %v1229_v38 = vadd.f32 1e-05, %v1165_v26  ;;  %v1090_v28 = vpop.xlane.xlu1 %1089  ;;  %v1312_v1 = vmul.f32 %v7802_v17, %v10981_v32  ;;  %v1311_v47 = vmul.f32 %v7802_v17, %v10983_v21  ;;  %v10985_v26 = vld [vmem:[#allocation20_spill] sm:$0xff] }
 0x1e1   : > { %v490_v45 = vpop.xlane.xlu0 %489  ;;  %7809 = vrsqrt.f32 %v1180_v14  ;;  %v1166_v20 = vmul.f32 0.00390625, %v1090_v28  ;;  %999 = vadd.xlane.f32.xlu1 %v998_v30  ;;  %v1406_v0 = vmul.f32 %v9451_v55, %v10985_v26  ;;  %v7896_v21 = vld [vmem:[%s8301_s13 + $0x1c8] sm:$0xff]  ;;  %v9496_v14 = vpack.c.bf16 %v1403_v42, %v1401_v57  ;;  %v7897_v57 = vld [vmem:[%s8301_s13 + $0x1d0] sm:$0xff] }
 0x1e2   : > { %v625_v7 = vmul.f32 0.00390625, %v490_v45  ;;  %v9482_v63 = vpack.c.bf16 %v1312_v1, %v1310_v24  ;;  %v9484_v36 = vpack.c.bf16 %v1311_v47, %v1309_v25  ;;  %7811 = vrsqrt.f32 %v1229_v38  ;;  %v7701_v30 = vld [vmem:[#allocation5 + $0x14] ss:$24 sps:$4 sm:$0xff]   ;;  %v7699_v38 = vld [vmem:[#allocation5 + $0x10] ss:$24 sps:$4 sm:$0xff]  }
 0x1e3   : > { %v9488_v41 = vpop.eup %7803  ;;  %v1230_v32 = vadd.f32 1e-05, %v1166_v20  ;;  %10988 = vst [vmem:[#allocation18_spill] sm:$0xff] %v9496_v14  ;;  %v9499_v25 = vpack.c.bf16 %v1408_v51, %v1406_v0  ;;  %v10990_v51 = vld [vmem:[#allocation21_spill] sm:$0xff]  ;;  %2775 = vmatprep.subr.bf16.mxu0 %v7701_v30  ;;  %v7898_v0 = vld [vmem:[%s8301_s13 + $0x1d8] sm:$0xff] }
 0x1e4   : > { %v9491_v6 = vsub.f32 %v7895_v54, %v625_v7  ;;  %v9494_v17 = vsub.f32 %v7896_v21, %v625_v7  ;;  %v493_v33 = vpop.xlane.xlu1 %492  ;;  %2121 = vmatprep.mubr.bf16.mxu0 %v9482_v63  ;;  %v9501_v28 = vpop.eup %7805  ;;  %v1407_v20 = vmul.f32 %v9457_v29, %v10990_v51  ;;  %v10991_v7 = vld [vmem:[#allocation30_spill] sm:$0xff]  ;;  %2776 = vmatpush1.bf16.msra.mxu0 %v7699_v38  ;;  %v10995_v51 = vld [vmem:[#allocation28_spill] sm:$0xff] }
 0x1e5   : > { %v943_v24 = vpop.xlane.xlu0 %942  ;;  %10989 = vst [vmem:[#allocation15_spill] sm:$0xff] %v9499_v25  ;;  %7813 = vrsqrt.f32 %v1230_v32  ;;  %v626_v1 = vmul.f32 0.00390625, %v493_v33  ;;  %2122 = vmatmul.mubr.bf16.gmra.mrb[8].mxu0 %v9484_v36  ;;  %2352 = vmatmul.mubr.bf16.gmra.mrb[36].mxu1 %v9496_v14  ;;  %v1412_v49 = vmul.f32 %v9488_v41, %v10991_v7  ;;  %v7702_v21 = vld [vmem:[#allocation5 + $0x40] ss:$24 sps:$4 sm:$0xff]   ;;  %v7704_v33 = vld [vmem:[#allocation5 + $0x44] ss:$24 sps:$4 sm:$0xff]   ;;  %v1405_v29 = vmul.f32 %v9451_v55, %v10994_v23 }
 0x1e6   : > { %10986 = vst [vmem:[#allocation74_spill] sm:$0xff] %v9491_v6  ;;  %10987 = vst [vmem:[#allocation16_spill] sm:$0xff] %v9494_v17  ;;  %v845_v45 = vmul.f32 %v9491_v6, %v9491_v6  ;;  %v846_v42 = vmul.f32 %v9494_v17, %v9494_v17  ;;  %v1117_v47 = vmul.f32 0.00390625, %v943_v24  ;;  %2361 = vmatprep.mubr.bf16.mxu1 %v9499_v25  ;;  %2777 = vmatprep.subr.bf16.mxu0 %v7704_v33  ;;  %v10999_v6 = vld [vmem:[#allocation34_spill] sm:$0xff] }
 0x1e7   : > { %v9515_v26 = vsub.f32 %v7897_v57, %v626_v1  ;;  %v9518_v32 = vsub.f32 %v7898_v0, %v626_v1  ;;  %v1410_v7 = vmul.f32 %v9501_v28, %v10995_v51  ;;  %v9528_v38 = vpack.c.bf16 %v1407_v20, %v1405_v29  ;;  %v7707_v20 = vld [vmem:[#allocation5 + $0x74] ss:$24 sps:$4 sm:$0xff]  }
 0x1e8   : > { %v1001_v54 = vadd.f32 %v846_v42, %v845_v45  ;;  %v1181_v24 = vadd.f32 1e-05, %v1117_v47  ;;  %v946_v14 = vpop.xlane.xlu1 %945  ;;  %v7808_v30 = vpop.eup %7807  ;;  %2778 = vmatpush1.bf16.msra.mxu0 %v7702_v21  ;;  %v7705_v21 = vld [vmem:[#allocation5 + $0x70] ss:$24 sps:$4 sm:$0xff]  }
 0x1e9   : > { %10992 = vst [vmem:[#allocation17_spill] sm:$0xff] %v9515_v26  ;;  %10993 = vst [vmem:[#allocation75_spill] sm:$0xff] %v9518_v32  ;;  %v1093_v25 = vpop.xlane.xlu0 %1092  ;;  %v847_v57 = vmul.f32 %v9515_v26, %v9515_v26  ;;  %v848_v1 = vmul.f32 %v9518_v32, %v9518_v32  ;;  %v1118_v45 = vmul.f32 0.00390625, %v946_v14  ;;  %v9530_v47 = vpack.c.bf16 %v1412_v49, %v1410_v7  ;;  %v11000_v14 = vld [vmem:[#allocation31_spill] sm:$0xff]  ;;  %v11002_v7 = vld [vmem:[#allocation29_spill] sm:$0xff] }
 0x1ea   : > { %v1167_v42 = vmul.f32 0.00390625, %v1093_v25  ;;  %1002 = vadd.xlane.f32.xlu0 %v1001_v54  ;;  %10996 = vst [vmem:[#allocation73_spill] sm:$0xff] %v9528_v38  ;;  %7815 = vrsqrt.f32 %v1181_v24  ;;  %v1314_v26 = vmul.f32 %v7808_v30, %v10998_v8  ;;  %v1313_v25 = vmul.f32 %v7808_v30, %v11000_v14  ;;  %v11001_v54 = vld [vmem:[#allocation33_spill] sm:$0xff]  ;;  %2779 = vmatprep.subr.bf16.mxu0 %v7707_v20 }
 0x1eb   : > { %10997 = vst [vmem:[#allocation79_spill] sm:$0xff] %v9530_v47  ;;  %v7810_v0 = vpop.eup %7809  ;;  %v1182_v23 = vadd.f32 1e-05, %v1118_v45  ;;  %v1004_v51 = vadd.f32 %v848_v1, %v847_v57  ;;  %v1411_v30 = vmul.f32 %v9488_v41, %v11002_v7  ;;  %v7900_v45 = vld [vmem:[%s8301_s13 + $0x1e8] sm:$0xff]  ;;  %v7902_v7 = vld [vmem:[%s8301_s13 + $0x1f8] sm:$0xff] }
 0x1ec   : > { %v1231_v55 = vadd.f32 1e-05, %v1167_v42  ;;  %v1096_v50 = vpop.xlane.xlu1 %1095  ;;  %v1316_v32 = vmul.f32 %v7810_v0, %v10999_v6  ;;  %v1315_v33 = vmul.f32 %v7810_v0, %v11001_v54  ;;  %v9537_v29 = vpop.eup %7811  ;;  %2780 = vmatpush1.bf16.msra.mxu0 %v7705_v21 }
 0x1ed   : > { %v496_v60 = vpop.xlane.xlu0 %495  ;;  %7817 = vrsqrt.f32 %v1182_v23  ;;  %v1168_v49 = vmul.f32 0.00390625, %v1096_v50  ;;  %1005 = vadd.xlane.f32.xlu1 %v1004_v51  ;;  %2362 = vmatmul.mubr.bf16.gmra.mrb[40].mxu1 %v9528_v38  ;;  %v11006_v23 = vld [vmem:[#allocation38_spill] sm:$0xff] }
 0x1ee   : > { %v627_v24 = vmul.f32 0.00390625, %v496_v60  ;;  %2371 = vmatprep.mubr.bf16.mxu1 %v9530_v47  ;;  %v9540_v8 = vpack.c.bf16 %v1316_v32, %v1314_v26  ;;  %v9542_v6 = vpack.c.bf16 %v1315_v33, %v1313_v25  ;;  %7819 = vrsqrt.f32 %v1231_v55  ;;  %v7899_v60 = vld [vmem:[%s8301_s13 + $0x1e0] sm:$0xff] }
 0x1ef   : > { %v7814_v57 = vpop.eup %7813  ;;  %v1232_v50 = vadd.f32 1e-05, %v1168_v49  ;;  %v11005_v32 = vld [vmem:[#allocation27_spill] sm:$0xff]  ;;  %v11007_v49 = vld [vmem:[#allocation36_spill] sm:$0xff] }
 0x1f0   : > { %v9547_v1 = vsub.f32 %v7899_v60, %v627_v24  ;;  %v9550_v42 = vsub.f32 %v7900_v45, %v627_v24  ;;  %v499_v0 = vpop.xlane.xlu1 %498  ;;  %2131 = vmatprep.mubr.bf16.mxu0 %v9540_v8  ;;  %v1409_v41 = vmul.f32 %v9501_v28, %v11005_v32  ;;  %v1416_v51 = vmul.f32 %v7814_v57, %v11006_v23  ;;  %v7710_v55 = vld [vmem:[#allocation5 + $0xa4] ss:$24 sps:$4 sm:$0xff]   ;;  %v7708_v33 = vld [vmem:[#allocation5 + $0xa0] ss:$24 sps:$4 sm:$0xff]   ;;  %v7901_v28 = vld [vmem:[%s8301_s13 + $0x1f0] sm:$0xff]  ;;  %s7967_s13 = scalar_lea.vmem %s7966_s27, 16384 }
 0x1f1   : > { %v949_v26 = vpop.xlane.xlu0 %948  ;;  %7821 = vrsqrt.f32 %v1232_v50  ;;  %v628_v54 = vmul.f32 0.00390625, %v499_v0  ;;  %2132 = vmatmul.mubr.bf16.gmra.mrb[12].mxu0 %v9542_v6  ;;  %v1414_v24 = vmul.f32 %v9537_v29, %v11007_v49  ;;  %2781 = vmatprep.subr.bf16.mxu0 %v7710_v55  ;;  %p7969_p0 = scmp.lt.s32.totalorder %s7967_s13, %s7961_s5 }
 0x1f2   : > { %11003 = vst [vmem:[#allocation77_spill] sm:$0xff] %v9547_v1  ;;  %11004 = vst [vmem:[#allocation78_spill] sm:$0xff] %v9550_v42  ;;  %v849_v14 = vmul.f32 %v9547_v1, %v9547_v1  ;;  %v850_v25 = vmul.f32 %v9550_v42, %v9550_v42  ;;  %v1119_v20 = vmul.f32 0.00390625, %v949_v26  ;;  %v9569_v60 = vpack.c.bf16 %v1411_v30, %v1409_v41  ;;  %v7713_v26 = vld [vmem:[#allocation5 + $0xd4] ss:$24 sps:$4 sm:$0xff]  }
 0x1f3   : > { %v9564_v21 = vsub.f32 %v7901_v28, %v628_v54  ;;  %v9567_v50 = vsub.f32 %v7902_v7, %v628_v54  ;;  %2782 = vmatpush1.bf16.msra.mxu0 %v7708_v33  ;;  %v9571_v47 = vpack.c.bf16 %v1416_v51, %v1414_v24  ;;  %v7711_v30 = vld [vmem:[#allocation5 + $0xd0] ss:$24 sps:$4 sm:$0xff]   ;;  %p7970_p5 = por %p7969_p0, %p7968_p11 }
 0x1f4   : > { %11010 = vst [vmem:[#allocation26_spill] sm:$0xff] %v9569_v60  ;;  %v1007_v45 = vadd.f32 %v850_v25, %v849_v14  ;;  %v1183_v32 = vadd.f32 1e-05, %v1119_v20  ;;  %v952_v0 = vpop.xlane.xlu1 %951  ;;  %v7816_v38 = vpop.eup %7815  ;;  %v11012_v41 = vld [vmem:[#allocation37_spill] sm:$0xff]  ;;  %2783 = vmatprep.subr.bf16.mxu0 %v7713_v26 }
 0x1f5   : > { %11008 = vst [vmem:[#allocation22_spill] sm:$0xff] %v9564_v21  ;;  %11009 = vst [vmem:[#allocation24_spill] sm:$0xff] %v9567_v50  ;;  %v1099_v23 = vpop.xlane.xlu0 %1098  ;;  %v851_v55 = vmul.f32 %v9564_v21, %v9564_v21  ;;  %v852_v49 = vmul.f32 %v9567_v50, %v9567_v50  ;;  %v1120_v28 = vmul.f32 0.00390625, %v952_v0  ;;  %2372 = vmatmul.mubr.bf16.gmra.mrb[44].mxu1 %v9569_v60  ;;  %v11013_v21 = vld [vmem:[#allocation40_spill] sm:$0xff]  ;;  %v11015_v60 = vld [vmem:[#allocation39_spill] sm:$0xff]  ;;  %p7971_p9 = pnand %p7970_p5, %p7964_p12 }
 0x1f6   : > { %11011 = vst [vmem:[#allocation23_spill] sm:$0xff] %v9571_v47  ;;  %v1169_v54 = vmul.f32 0.00390625, %v1099_v23  ;;  %1008 = vadd.xlane.f32.xlu0 %v1007_v45  ;;  %2381 = vmatprep.mubr.bf16.mxu1 %v9571_v47  ;;  %v1415_v14 = vmul.f32 %v7814_v57, %v11012_v41  ;;  %7823 = vrsqrt.f32 %v1183_v32  ;;  %v1318_v0 = vmul.f32 %v7816_v38, %v11013_v21  ;;  %v11014_v23 = vld [vmem:[#allocation42_spill] sm:$0xff]  ;;  %v11016_v50 = vld [vmem:[#allocation41_spill] sm:$0xff]  ;;  %v11017_v32 = vld [vmem:[#allocation35_spill] sm:$0xff] }
 0x1f7   : > { %v7818_v51 = vpop.eup %7817  ;;  %v1184_v25 = vadd.f32 1e-05, %v1120_v28  ;;  %v1010_v20 = vadd.f32 %v852_v49, %v851_v55  ;;  %2784 = vmatpush1.bf16.msra.mxu0 %v7711_v30  ;;  %v1317_v45 = vmul.f32 %v7816_v38, %v11015_v60  ;;  %v7716_v47 = vld [vmem:[#allocation5 + $0x104] ss:$24 sps:$4 sm:$0xff]   ;;  %v1413_v55 = vmul.f32 %v9537_v29, %v11017_v32  ;;  %v7714_v49 = vld [vmem:[#allocation5 + $0x100] ss:$24 sps:$4 sm:$0xff]  }
 0x1f8   : > { %v1233_v33 = vadd.f32 1e-05, %v1169_v54  ;;  %v1102_v24 = vpop.xlane.xlu1 %1101  ;;  %v1320_v1 = vmul.f32 %v7818_v51, %v11014_v23  ;;  %v1319_v42 = vmul.f32 %v7818_v51, %v11016_v50  ;;  %v7820_v17 = vpop.eup %7819  ;;  %2785 = vmatprep.subr.bf16.mxu0 %v7716_v47  ;;  %v11018_v51 = vld [vmem:[#allocation44_spill] sm:$0xff]  ;;  %v11019_v29 = vld [vmem:[#allocation46_spill] sm:$0xff] }
 0x1f9   : > { %v955_v7 = vpop.xlane.xlu0 %954  ;;  %7825 = vrsqrt.f32 %v1184_v25  ;;  %v1170_v57 = vmul.f32 0.00390625, %v1102_v24  ;;  %1011 = vadd.xlane.f32.xlu1 %v1010_v20  ;;  %v9590_v50 = vpack.c.bf16 %v1415_v14, %v1413_v55  ;;  %v1418_v25 = vmul.f32 %v7820_v17, %v11018_v51  ;;  %v7717_v47 = vld [vmem:[#allocation5 + $0x130] ss:$24 sps:$4 sm:$0xff]   ;;  %v7722_v32 = vld [vmem:[#allocation5 + $0x164] ss:$24 sps:$4 sm:$0xff]  }
 0x1fa   : > { %v1121_v26 = vmul.f32 0.00390625, %v955_v7  ;;  %v9586_v28 = vpack.c.bf16 %v1320_v1, %v1318_v0  ;;  %v9588_v54 = vpack.c.bf16 %v1319_v42, %v1317_v45  ;;  %7827 = vrsqrt.f32 %v1233_v33  ;;  %v7719_v1 = vld [vmem:[#allocation5 + $0x134] ss:$24 sps:$4 sm:$0xff]   ;;  %v7720_v45 = vld [vmem:[#allocation5 + $0x160] ss:$24 sps:$4 sm:$0xff]  }
 0x1fb   : > { %v7822_v21 = vpop.eup %7821  ;;  %v1234_v38 = vadd.f32 1e-05, %v1170_v57  ;;  %2786 = vmatpush1.bf16.msra.mxu0 %v7714_v49  ;;  %v11020_v0 = vld [vmem:[#allocation45_spill] sm:$0xff] }
 0x1fc   : > { %v1185_v60 = vadd.f32 1e-05, %v1121_v26  ;;  %v958_v30 = vpop.xlane.xlu1 %957  ;;  %2141 = vmatprep.mubr.bf16.mxu0 %v9586_v28  ;;  %v1420_v20 = vmul.f32 %v7822_v21, %v11019_v29  ;;  %2787 = vmatprep.subr.bf16.mxu0 %v7719_v1  ;;  %v1419_v23 = vmul.f32 %v7822_v21, %v11020_v0  ;;  %v7725_v0 = vld [vmem:[#allocation5 + $0x194] ss:$24 sps:$4 sm:$0xff]  }
 0x1fd   : > { %v1105_v41 = vpop.xlane.xlu0 %1104  ;;  %7829 = vrsqrt.f32 %v1234_v38  ;;  %v1122_v42 = vmul.f32 0.00390625, %v958_v30  ;;  %2142 = vmatmul.mubr.bf16.gmra.mrb[16].mxu0 %v9588_v54  ;;  %2382 = vmatmul.mubr.bf16.gmra.mrb[48].mxu1 %v9590_v50  ;;  %v11021_v30 = vld [vmem:[#allocation43_spill] sm:$0xff] }
 0x1fe   : > { %v1171_v24 = vmul.f32 0.00390625, %v1105_v41  ;;  %v9597_v14 = vpack.c.bf16 %v1420_v20, %v1418_v25  ;;  %7831 = vrsqrt.f32 %v1185_v60  ;;  %v1417_v41 = vmul.f32 %v7820_v17, %v11021_v30  ;;  %v11023_v20 = vld [vmem:[#allocation48_spill] sm:$0xff] }
 0x1ff   : > { %v1186_v33 = vadd.f32 1e-05, %v1122_v42  ;;  %2788 = vmatpush1.bf16.msra.mxu0 %v7717_v47 }
 0x200   : > { %v1235_v7 = vadd.f32 1e-05, %v1171_v24  ;;  %v1108_v57 = vpop.xlane.xlu1 %1107  ;;  %2391 = vmatprep.mubr.bf16.mxu1 %v9597_v14  ;;  %v7824_v55 = vpop.eup %7823  ;;  %2789 = vmatprep.subr.bf16.mxu0 %v7722_v32  ;;  %v9602_v29 = vpack.c.bf16 %v1419_v23, %v1417_v41  ;;  %v11024_v24 = vld [vmem:[#allocation47_spill] sm:$0xff] }
 0x201   : > { %v961_v26 = vpop.xlane.xlu0 %960  ;;  %7833 = vrsqrt.f32 %v1186_v33  ;;  %v1172_v49 = vmul.f32 0.00390625, %v1108_v57  ;;  %v1322_v1 = vmul.f32 %v7824_v55, %v11023_v20  ;;  %v1321_v47 = vmul.f32 %v7824_v55, %v11024_v24  ;;  %v11025_v55 = vld [vmem:[#allocation49_spill] sm:$0xff]  ;;  %v7728_v41 = vld [vmem:[#allocation5 + $0x1c4] ss:$24 sps:$4 sm:$0xff]  }
 0x202   : > { %v1123_v38 = vmul.f32 0.00390625, %v961_v26  ;;  %7835 = vrsqrt.f32 %v1235_v7  ;;  %11022 = vst [vmem:[#allocation25_spill] sm:$0xff] %v9602_v29  ;;  %v7723_v7 = vld [vmem:[#allocation5 + $0x190] ss:$24 sps:$4 sm:$0xff]  }
 0x203   : > { %v7826_v51 = vpop.eup %7825  ;;  %v1236_v60 = vadd.f32 1e-05, %v1172_v49  ;;  %2790 = vmatpush1.bf16.msra.mxu0 %v7720_v45 }
 0x204   : > { %v1187_v25 = vadd.f32 1e-05, %v1123_v38  ;;  %v964_v21 = vpop.xlane.xlu1 %963  ;;  %v1324_v42 = vmul.f32 %v7826_v51, %v9131_v59  ;;  %v1323_v33 = vmul.f32 %v7826_v51, %v9124_v44  ;;  %v7828_v57 = vpop.eup %7827  ;;  %2791 = vmatprep.subr.bf16.mxu0 %v7725_v0  ;;  %v11026_v38 = vld [vmem:[#allocation50_spill] sm:$0xff]  ;;  %v7731_v0 = vld [vmem:[#allocation5 + $0x1f4] ss:$24 sps:$4 sm:$0xff]  }
 0x205   : > { %7837 = vrsqrt.f32 %v1236_v60  ;;  %v1124_v17 = vmul.f32 0.00390625, %v964_v21  ;;  %2392 = vmatmul.mubr.bf16.gmra.mrb[52].mxu1 %v9602_v29  ;;  %v1422_v59 = vmul.f32 %v7828_v57, %v9139_v43  ;;  %v1421_v49 = vmul.f32 %v7828_v57, %v11025_v55  ;;  %v7726_v60 = vld [vmem:[#allocation5 + $0x1c0] ss:$24 sps:$4 sm:$0xff]  }
 0x206   : > { %v9609_v26 = vpack.c.bf16 %v1324_v42, %v1322_v1  ;;  %v9611_v23 = vpack.c.bf16 %v1323_v33, %v1321_v47  ;;  %7839 = vrsqrt.f32 %v1187_v25  ;;  %v11030_v42 = vld [vmem:[#allocation51_spill] sm:$0xff]  ;;  %v11031_v47 = vld [vmem:[#allocation52_spill] sm:$0xff] }
 0x207   : > { %v7830_v45 = vpop.eup %7829  ;;  %v1188_v32 = vadd.f32 1e-05, %v1124_v17  ;;  %2792 = vmatpush1.bf16.msra.mxu0 %v7723_v7  ;;  %v7729_v17 = vld [vmem:[#allocation5 + $0x1f0] ss:$24 sps:$4 sm:$0xff]  }
 0x208   : > { %2151 = vmatprep.mubr.bf16.mxu0 %v9609_v26  ;;  %v1424_v44 = vmul.f32 %v7830_v45, %v9147_v35  ;;  %v1423_v30 = vmul.f32 %v7830_v45, %v11026_v38  ;;  %v7832_v51 = vpop.eup %7831  ;;  %2793 = vmatprep.subr.bf16.mxu0 %v7728_v41  ;;  %v11029_v35 = vld [vmem:[#allocation80_spill] sm:$0xff]  ;;  %v11033_v38 = vld [vmem:[#allocation81_spill] sm:$0xff] }
 0x209   : > { %7841 = vrsqrt.f32 %v1188_v32  ;;  %2152 = vmatmul.mubr.bf16.gmra.mrb[20].mxu0 %v9611_v23  ;;  %v1326_v43 = vmul.f32 %v7832_v51, %v9159_v46  ;;  %v1325_v24 = vmul.f32 %v7832_v51, %v11030_v42  ;;  %v7734_v46 = vld [vmem:[#allocation5 + $0x224] ss:$24 sps:$4 sm:$0xff]  }
 0x20a   : > { %v9619_v21 = vpack.c.bf16 %v1424_v44, %v1422_v59  ;;  %v9621_v25 = vpack.c.bf16 %v1423_v30, %v1421_v49  ;;  %v7732_v59 = vld [vmem:[#allocation5 + $0x220] ss:$24 sps:$4 sm:$0xff]  }
 0x20b   : > { %v7834_v20 = vpop.eup %7833  ;;  %2794 = vmatpush1.bf16.msra.mxu0 %v7726_v60  ;;  %v11032_v44 = vld [vmem:[#allocation82_spill] sm:$0xff]  ;;  %v11036_v42 = vld [vmem:[#allocation83_spill] sm:$0xff] }
 0x20c   : > { %11027 = vst [vmem:[#allocation76_spill] sm:$0xff] %v9619_v21  ;;  %11028 = vst [vmem:[#allocation20_spill] sm:$0xff] %v9621_v25  ;;  %2401 = vmatprep.mubr.bf16.mxu1 %v9619_v21  ;;  %v1328_v1 = vmul.f32 %v7834_v20, %v11029_v35  ;;  %v1327_v33 = vmul.f32 %v7834_v20, %v11031_v47  ;;  %v7836_v57 = vpop.eup %7835  ;;  %2795 = vmatprep.subr.bf16.mxu0 %v7731_v0  ;;  %v7735_v47 = vld [vmem:[#allocation5 + $0x250] ss:$24 sps:$4 sm:$0xff]  }
 0x20d   : > { %2402 = vmatmul.mubr.bf16.gmra.mrb[56].mxu1 %v9621_v25  ;;  %v1426_v55 = vmul.f32 %v7836_v57, %v11032_v44  ;;  %v1425_v30 = vmul.f32 %v7836_v57, %v11033_v38  ;;  %v7740_v57 = vld [vmem:[#allocation5 + $0x284] ss:$24 sps:$4 sm:$0xff]  }
 0x20e   : > { %v9629_v7 = vpack.c.bf16 %v1328_v1, %v1326_v43  ;;  %v9631_v45 = vpack.c.bf16 %v1327_v33, %v1325_v24  ;;  %v7737_v24 = vld [vmem:[#allocation5 + $0x254] ss:$24 sps:$4 sm:$0xff]  }
 0x20f   : > { %v7838_v32 = vpop.eup %7837  ;;  %2796 = vmatpush1.bf16.msra.mxu0 %v7729_v17 }
 0x210   : > { %2161 = vmatprep.mubr.bf16.mxu0 %v9629_v7  ;;  %v1428_v49 = vmul.f32 %v7838_v32, %v9193_v13  ;;  %v1427_v41 = vmul.f32 %v7838_v32, %v9186_v16  ;;  %v7840_v51 = vpop.eup %7839  ;;  %2797 = vmatprep.subr.bf16.mxu0 %v7734_v46  ;;  %v7746_v32 = vld [vmem:[#allocation5 + $0x2e4] ss:$24 sps:$4 sm:$0xff]   ;;  %v7744_v46 = vld [vmem:[#allocation5 + $0x2e0] ss:$24 sps:$4 sm:$0xff]  }
 0x211   : > { %2162 = vmatmul.mubr.bf16.gmra.mrb[24].mxu0 %v9631_v45  ;;  %v1330_v35 = vmul.f32 %v7840_v51, %v9199_v39  ;;  %v1329_v1 = vmul.f32 %v7840_v51, %v9196_v40  ;;  %v7738_v39 = vld [vmem:[#allocation5 + $0x280] ss:$24 sps:$4 sm:$0xff]   ;;  %v7743_v40 = vld [vmem:[#allocation5 + $0x2b4] ss:$24 sps:$4 sm:$0xff]  }
 0x212   : > { %v9639_v60 = vpack.c.bf16 %v1428_v49, %v1426_v55  ;;  %v9641_v20 = vpack.c.bf16 %v1427_v41, %v1425_v30 }
 0x213   : > { %v7842_v43 = vpop.eup %7841  ;;  %2798 = vmatpush1.bf16.msra.mxu0 %v7732_v59 }
 0x214   : > { %11034 = vst [vmem:[#allocation21_spill] sm:$0xff] %v9639_v60  ;;  %11035 = vst [vmem:[#allocation30_spill] sm:$0xff] %v9641_v20  ;;  %2411 = vmatprep.mubr.bf16.mxu1 %v9639_v60  ;;  %v1332_v13 = vmul.f32 %v7842_v43, %v9213_v37  ;;  %v1331_v16 = vmul.f32 %v7842_v43, %v11036_v42  ;;  %2799 = vmatprep.subr.bf16.mxu0 %v7737_v24  ;;  %v7741_v37 = vld [vmem:[#allocation5 + $0x2b0] ss:$24 sps:$4 sm:$0xff]  }
 0x215   : > { %2412 = vmatmul.mubr.bf16.gmra.mrb[60].mxu1 %v9641_v20 }
 0x216   : > { %2454 = vmatprep.mubr.bf16.mxu1 %v9395_v15  ;;  %v9650_v33 = vpack.c.bf16 %v1332_v13, %v1330_v35  ;;  %v9652_v0 = vpack.c.bf16 %v1331_v16, %v1329_v1 }
 0x217   : > { %2800 = vmatpush1.bf16.msra.mxu0 %v7735_v47 }
 0x218   : > { %2171 = vmatprep.mubr.bf16.mxu0 %v9650_v33  ;;  %2801 = vmatprep.subr.bf16.mxu0 %v7740_v57 }
 0x219   : > { %2172 = vmatmul.mubr.bf16.gmra.mrb[28].mxu0 %v9652_v0 }
 0x21b   : > { %2802 = vmatpush1.bf16.msra.mxu0 %v7738_v39 }
 0x21c   : > { %2803 = vmatprep.subr.bf16.mxu0 %v7743_v40 }
 0x21d   : > { %2455 = vmatmul.mubr.bf16.vlgmr.msra.gmra.mrb[64].mxu1 %v9397_v22 }
 0x21e   : > { %2464 = vmatprep.mubr.bf16.mxu1 %v9430_v52 }
 0x21f   : > { %v967_v17 = vpop.xlane.xlu0 %966  ;;  %2804 = vmatpush1.bf16.msra.mxu0 %v7741_v37 }
 0x220   : > { %v1125_v59 = vmul.f32 0.00390625, %v967_v17  ;;  %2805 = vmatprep.subr.bf16.mxu0 %v7746_v32 }
 0x222   : > { %v1189_v44 = vadd.f32 1e-05, %v1125_v59  ;;  %v970_v55 = vpop.xlane.xlu1 %969 }
 0x223   : > { %v1126_v49 = vmul.f32 0.00390625, %v970_v55  ;;  %2806 = vmatpush1.bf16.msra.mxu0 %v7744_v46 }
 0x224   : > { %7843 = vrsqrt.f32 %v1189_v44 }
 0x225   : > { %v1190_v38 = vadd.f32 1e-05, %v1126_v49  ;;  %2465 = vmatmul.mubr.bf16.gmra.mrb[68].mxu1 %v9432_v58 }
 0x226   : > { %2474 = vmatprep.mubr.bf16.mxu1 %v9482_v63 }
 0x227   : > { %v973_v30 = vpop.xlane.xlu0 %972  ;;  %7845 = vrsqrt.f32 %v1190_v38 }
 0x228   : > { %v1127_v41 = vmul.f32 0.00390625, %v973_v30 }
 0x22a   : > { %v1191_v51 = vadd.f32 1e-05, %v1127_v41  ;;  %v976_v43 = vpop.xlane.xlu1 %975  ;;  %v11037_v41 = vld [vmem:[#allocation84_spill] sm:$0xff] }
 0x22b   : > { %v1128_v35 = vmul.f32 0.00390625, %v976_v43  ;;  %v11038_v43 = vld [vmem:[#allocation85_spill] sm:$0xff] }
 0x22c   : > { %7847 = vrsqrt.f32 %v1191_v51 }
 0x22d   : > { %v1192_v13 = vadd.f32 1e-05, %v1128_v35  ;;  %2475 = vmatmul.mubr.bf16.gmra.mrb[72].mxu1 %v9484_v36 }
 0x22e   : > { %2484 = vmatprep.mubr.bf16.mxu1 %v9540_v8  ;;  %v7844_v42 = vpop.eup %7843 }
 0x22f   : > { %v979_v1 = vpop.xlane.xlu0 %978  ;;  %7849 = vrsqrt.f32 %v1192_v13  ;;  %v1334_v39 = vmul.f32 %v7844_v42, %v9223_v18  ;;  %v1333_v37 = vmul.f32 %v7844_v42, %v9220_v27 }
 0x230   : > { %v1129_v16 = vmul.f32 0.00390625, %v979_v1 }
 0x231   : > { %v7846_v24 = vpop.eup %7845 }
 0x232   : > { %v1193_v47 = vadd.f32 1e-05, %v1129_v16  ;;  %v982_v57 = vpop.xlane.xlu1 %981  ;;  %v1336_v40 = vmul.f32 %v7846_v24, %v9233_v4  ;;  %v1335_v17 = vmul.f32 %v7846_v24, %v9230_v9  ;;  %v11039_v24 = vld [vmem:[#allocation63_spill] sm:$0xff] }
 0x233   : > { %v1130_v32 = vmul.f32 0.00390625, %v982_v57 }
 0x234   : > { %v9666_v59 = vpack.c.bf16 %v1336_v40, %v1334_v39  ;;  %v9668_v46 = vpack.c.bf16 %v1335_v17, %v1333_v37  ;;  %7851 = vrsqrt.f32 %v1193_v47  ;;  %v11040_v39 = vld [vmem:[#allocation88_spill] sm:$0xff] }
 0x235   : > { %v1194_v44 = vadd.f32 1e-05, %v1130_v32  ;;  %2485 = vmatmul.mubr.bf16.gmra.mrb[76].mxu1 %v9542_v6 }
 0x236   : > { %2181 = vmatprep.mubr.bf16.mxu0 %v9666_v59  ;;  %2494 = vmatprep.mubr.bf16.mxu1 %v9586_v28  ;;  %v7848_v55 = vpop.eup %7847 }
 0x237   : > { %v985_v18 = vpop.xlane.xlu0 %984  ;;  %7853 = vrsqrt.f32 %v1194_v44  ;;  %2182 = vmatmul.mubr.bf16.gmra.mrb[32].mxu0 %v9668_v46  ;;  %v1338_v38 = vmul.f32 %v7848_v55, %v9243_v53  ;;  %v1337_v51 = vmul.f32 %v7848_v55, %v11037_v41 }
 0x238   : > { %v1131_v4 = vmul.f32 0.00390625, %v985_v18 }
 0x239   : > { %v7850_v27 = vpop.eup %7849 }
 0x23a   : > { %v1195_v9 = vadd.f32 1e-05, %v1131_v4  ;;  %v988_v49 = vpop.xlane.xlu1 %987  ;;  %v1340_v30 = vmul.f32 %v7850_v27, %v9253_v2  ;;  %v1339_v35 = vmul.f32 %v7850_v27, %v11038_v43  ;;  %v11041_v4 = vld [vmem:[#allocation56_spill] sm:$0xff]  ;;  %v11042_v27 = vld [vmem:[#allocation53_spill] sm:$0xff] }
 0x23b   : > { %v1132_v13 = vmul.f32 0.00390625, %v988_v49 }
 0x23c   : > { %v9678_v1 = vpack.c.bf16 %v1340_v30, %v1338_v38  ;;  %v9680_v42 = vpack.c.bf16 %v1339_v35, %v1337_v51  ;;  %7855 = vrsqrt.f32 %v1195_v9 }
 0x23d   : > { %v1196_v16 = vadd.f32 1e-05, %v1132_v13  ;;  %2495 = vmatmul.mubr.bf16.gmra.mrb[80].mxu1 %v9588_v54 }
 0x23e   : > { %2191 = vmatprep.mubr.bf16.mxu0 %v9678_v1  ;;  %2504 = vmatprep.mubr.bf16.mxu1 %v9609_v26  ;;  %v7852_v53 = vpop.eup %7851 }
 0x23f   : > { %7857 = vrsqrt.f32 %v1196_v16  ;;  %2192 = vmatmul.mubr.bf16.gmra.mrb[36].mxu0 %v9680_v42  ;;  %v1342_v47 = vmul.f32 %v7852_v53, %v11039_v24  ;;  %v1341_v40 = vmul.f32 %v7852_v53, %v11040_v39 }
 0x241   : > { %v7854_v2 = vpop.eup %7853 }
 0x242   : > { %v1344_v57 = vmul.f32 %v7854_v2, %v9283_v62  ;;  %v1343_v37 = vmul.f32 %v7854_v2, %v9280_v11 }
 0x244   : > { %v9690_v17 = vpack.c.bf16 %v1344_v57, %v1342_v47  ;;  %v9692_v32 = vpack.c.bf16 %v1343_v37, %v1341_v40 }
 0x245   : > { %2505 = vmatmul.mubr.bf16.gmra.mrb[84].mxu1 %v9611_v23 }
 0x246   : > { %2201 = vmatprep.mubr.bf16.mxu0 %v9690_v17  ;;  %2514 = vmatprep.mubr.bf16.mxu1 %v9629_v7  ;;  %v7856_v44 = vpop.eup %7855 }
 0x247   : > { %2202 = vmatmul.mubr.bf16.gmra.mrb[40].mxu0 %v9692_v32  ;;  %v1346_v62 = vmul.f32 %v7856_v44, %v9301_v10  ;;  %v1345_v11 = vmul.f32 %v7856_v44, %v11041_v4 }
 0x249   : > { %v7858_v18 = vpop.eup %7857 }
 0x24a   : > { %v1348_v55 = vmul.f32 %v7858_v18, %v9313_v5  ;;  %v1347_v9 = vmul.f32 %v7858_v18, %v11042_v27 }
 0x24c   : > { %v9702_v49 = vpack.c.bf16 %v1348_v55, %v1346_v62  ;;  %v9704_v38 = vpack.c.bf16 %v1347_v9, %v1345_v11 }
 0x24d   : > { %2515 = vmatmul.mubr.bf16.gmra.mrb[88].mxu1 %v9631_v45 }
 0x24e   : > { %2211 = vmatprep.mubr.bf16.mxu0 %v9702_v49  ;;  %2524 = vmatprep.mubr.bf16.mxu1 %v9650_v33 }
 0x24f   : > { %2212 = vmatmul.mubr.bf16.gmra.mrb[44].mxu0 %v9704_v38 }
 0x255   : > { %2525 = vmatmul.mubr.bf16.gmra.mrb[92].mxu1 %v9652_v0 }
 0x256   : > { %2534 = vmatprep.mubr.bf16.mxu1 %v9666_v59 }
 0x25d   : > { %2535 = vmatmul.mubr.bf16.gmra.mrb[96].mxu1 %v9668_v46 }
 0x25e   : > { %2544 = vmatprep.mubr.bf16.mxu1 %v9678_v1 }
 0x25f   : > { %v991_v10 = vpop.xlane.xlu0 %990 }
 0x260   : > { %v1133_v5 = vmul.f32 0.00390625, %v991_v10 }
 0x262   : > { %v1197_v30 = vadd.f32 1e-05, %v1133_v5  ;;  %v994_v41 = vpop.xlane.xlu1 %993 }
 0x263   : > { %v1134_v51 = vmul.f32 0.00390625, %v994_v41 }
 0x264   : > { %7859 = vrsqrt.f32 %v1197_v30 }
 0x265   : > { %v1198_v43 = vadd.f32 1e-05, %v1134_v51  ;;  %2545 = vmatmul.mubr.bf16.gmra.mrb[100].mxu1 %v9680_v42 }
 0x266   : > { %2554 = vmatprep.mubr.bf16.mxu1 %v9690_v17 }
 0x267   : > { %7861 = vrsqrt.f32 %v1198_v43 }
 0x26b   : > { %v997_v35 = vpop.xlane.xlu0 %996 }
 0x26c   : > { %v1135_v13 = vmul.f32 0.00390625, %v997_v35 }
 0x26d   : > { %2555 = vmatmul.mubr.bf16.gmra.mrb[104].mxu1 %v9692_v32 }
 0x26e   : > { %v1199_v16 = vadd.f32 1e-05, %v1135_v13  ;;  %v1000_v53 = vpop.xlane.xlu1 %999  ;;  %2564 = vmatprep.mubr.bf16.mxu1 %v9702_v49  ;;  %v7860_v2 = vpop.eup %7859 }
 0x26f   : > { %v1136_v24 = vmul.f32 0.00390625, %v1000_v53  ;;  %v1350_v44 = vmul.f32 %v7860_v2, %v9377_v3  ;;  %v1349_v62 = vmul.f32 %v7860_v2, %v9374_v31 }
 0x270   : > { %v2263_v47 = vpop.f32.mrb[0].mxu1  ;;  %7863 = vrsqrt.f32 %v1199_v16 }
 0x271   : > { %v7862_v57 = vpop.eup %7861  ;;  %v1200_v39 = vadd.f32 1e-05, %v1136_v24  ;;  %v2265_v40 = vpop.f32.mrb[1].mxu1 }
 0x272   : > { %v2267_v37 = vpop.f32.mrb[2].mxu1  ;;  %v1352_v18 = vmul.f32 %v7862_v57, %v9404_v48  ;;  %v1351_v55 = vmul.f32 %v7862_v57, %v9401_v19 }
 0x273   : > { %7865 = vrsqrt.f32 %v1200_v39  ;;  %v6349_v4 = vpack.c.bf16 %v2267_v37, %v2263_v47  ;;  %v2269_v11 = vpop.f32.mrb[3].mxu1 }
 0x274   : > { %v6669_v27 = vpack.c.bf16 %v2269_v11, %v2265_v40  ;;  %v9725_v9 = vpack.c.bf16 %v1352_v18, %v1350_v44  ;;  %v9727_v10 = vpack.c.bf16 %v1351_v55, %v1349_v62 }
 0x275   : > { %6921 = vst [vmem:[%s9730_s25 + $0x80] sm:$0xff] %v6349_v4   ;;  %2565 = vmatmul.mubr.bf16.gmra.mrb[108].mxu1 %v9704_v38 }
 0x276   : > { %6984 = vst [vmem:[%s9730_s25 + $0x180] sm:$0xff] %v6669_v27   ;;  %2221 = vmatprep.mubr.bf16.mxu0 %v9725_v9  ;;  %2574 = vmatprep.mubr.bf16.mxu1 %v9725_v9 }
 0x277   : > { %v1003_v31 = vpop.xlane.xlu0 %1002  ;;  %2222 = vmatmul.mubr.bf16.gmra.mrb[48].mxu0 %v9727_v10 }
 0x278   : > { %v1137_v3 = vmul.f32 0.00390625, %v1003_v31  ;;  %v2273_v19 = vpop.f32.mrb[4].mxu1 }
 0x279   : > { %v2275_v5 = vpop.f32.mrb[5].mxu1 }
 0x27a   : > { %v1201_v48 = vadd.f32 1e-05, %v1137_v3  ;;  %v1006_v30 = vpop.xlane.xlu1 %1005  ;;  %v2277_v41 = vpop.f32.mrb[6].mxu1 }
 0x27b   : > { %v7864_v51 = vpop.eup %7863  ;;  %v1138_v43 = vmul.f32 0.00390625, %v1006_v30  ;;  %v6354_v35 = vpack.c.bf16 %v2277_v41, %v2273_v19  ;;  %v2279_v13 = vpop.f32.mrb[7].mxu1  ;;  %v11043_v41 = vld [vmem:[#allocation16_spill] sm:$0xff] }
 0x27c   : > { %v6674_v16 = vpack.c.bf16 %v2279_v13, %v2275_v5  ;;  %7867 = vrsqrt.f32 %v1201_v48  ;;  %v1354_v24 = vmul.f32 %v7864_v51, %v9440_v12  ;;  %v1353_v57 = vmul.f32 %v7864_v51, %v9437_v34  ;;  %v11045_v13 = vld [vmem:[#allocation74_spill] sm:$0xff] }
 0x27d   : > { %v7866_v53 = vpop.eup %7865  ;;  %v1202_v2 = vadd.f32 1e-05, %v1138_v43  ;;  %6922 = vst [vmem:[%s9730_s25 + $0x88] sm:$0xff] %v6354_v35   ;;  %2575 = vmatmul.mubr.bf16.gmra.mrb[112].mxu1 %v9727_v10  ;;  %v11044_v43 = vld [vmem:[#allocation75_spill] sm:$0xff] }
 0x27e   : > { %6985 = vst [vmem:[%s9730_s25 + $0x188] sm:$0xff] %v6674_v16   ;;  %v1356_v47 = vmul.f32 %v7866_v53, %v9463_v61  ;;  %v1355_v39 = vmul.f32 %v7866_v53, %v9460_v56  ;;  %v11046_v53 = vld [vmem:[#allocation17_spill] sm:$0xff] }
 0x27f   : > { %7869 = vrsqrt.f32 %v1202_v2 }
 0x280   : > { %v2283_v40 = vpop.f32.mrb[8].mxu1  ;;  %v9745_v37 = vpack.c.bf16 %v1356_v47, %v1354_v24  ;;  %v9747_v44 = vpack.c.bf16 %v1355_v39, %v1353_v57 }
 0x281   : > { %v2285_v18 = vpop.f32.mrb[9].mxu1 }
 0x282   : > { %2231 = vmatprep.mubr.bf16.mxu0 %v9745_v37  ;;  %v2287_v62 = vpop.f32.mrb[10].mxu1  ;;  %2584 = vmatprep.mubr.bf16.mxu1 %v9745_v37 }
 0x283   : > { %v1009_v12 = vpop.xlane.xlu0 %1008  ;;  %v6359_v61 = vpack.c.bf16 %v2287_v62, %v2283_v40  ;;  %2232 = vmatmul.mubr.bf16.gmra.mrb[52].mxu0 %v9747_v44  ;;  %v2289_v34 = vpop.f32.mrb[11].mxu1 }
 0x284   : > { %v1139_v55 = vmul.f32 0.00390625, %v1009_v12  ;;  %v6679_v56 = vpack.c.bf16 %v2289_v34, %v2285_v18 }
 0x285   : > { %6923 = vst [vmem:[%s9730_s25 + $0x90] sm:$0xff] %v6359_v61   ;;  %2585 = vmatmul.mubr.bf16.gmra.mrb[116].mxu1 %v9747_v44 }
 0x286   : > { %v1203_v4 = vadd.f32 1e-05, %v1139_v55  ;;  %6986 = vst [vmem:[%s9730_s25 + $0x190] sm:$0xff] %v6679_v56   ;;  %v1012_v11 = vpop.xlane.xlu1 %1011  ;;  %v7868_v27 = vpop.eup %7867 }
 0x287   : > { %v1140_v31 = vmul.f32 0.00390625, %v1012_v11  ;;  %v1358_v51 = vmul.f32 %v7868_v27, %v11043_v41  ;;  %v1357_v16 = vmul.f32 %v7868_v27, %v11045_v13  ;;  %v11047_v11 = vld [vmem:[#allocation78_spill] sm:$0xff] }
 0x288   : > { %v2293_v3 = vpop.f32.mrb[12].mxu1  ;;  %7871 = vrsqrt.f32 %v1203_v4 }
 0x289   : > { %v7870_v19 = vpop.eup %7869  ;;  %v1204_v48 = vadd.f32 1e-05, %v1140_v31  ;;  %v2295_v5 = vpop.f32.mrb[13].mxu1  ;;  %v11048_v31 = vld [vmem:[#allocation24_spill] sm:$0xff] }
 0x28a   : > { %v2297_v30 = vpop.f32.mrb[14].mxu1  ;;  %v1360_v35 = vmul.f32 %v7870_v19, %v11044_v43  ;;  %v1359_v2 = vmul.f32 %v7870_v19, %v11046_v53  ;;  %v11049_v19 = vld [vmem:[#allocation77_spill] sm:$0xff] }
 0x28b   : > { %7873 = vrsqrt.f32 %v1204_v48  ;;  %v6364_v24 = vpack.c.bf16 %v2297_v30, %v2293_v3  ;;  %v2299_v47 = vpop.f32.mrb[15].mxu1 }
 0x28c   : > { %v6684_v57 = vpack.c.bf16 %v2299_v47, %v2295_v5  ;;  %v9759_v39 = vpack.c.bf16 %v1360_v35, %v1358_v51  ;;  %v9761_v40 = vpack.c.bf16 %v1359_v2, %v1357_v16  ;;  %v11050_v5 = vld [vmem:[#allocation22_spill] sm:$0xff] }
 0x28d   : > { %6924 = vst [vmem:[%s9730_s25 + $0x98] sm:$0xff] %v6364_v24   ;;  %v11051_v24 = vld [vmem:[#allocation86_spill] sm:$0xff] }
 0x28e   : > { %6987 = vst [vmem:[%s9730_s25 + $0x198] sm:$0xff] %v6684_v57   ;;  %2241 = vmatprep.mubr.bf16.mxu0 %v9759_v39  ;;  %2594 = vmatprep.mubr.bf16.mxu1 %v9759_v39 }
 0x28f   : > { %2242 = vmatmul.mubr.bf16.gmra.mrb[56].mxu0 %v9761_v40  ;;  %2595 = vmatmul.mubr.bf16.gmra.mrb[120].mxu1 %v9761_v40 }
 0x290   : > { %v2303_v18 = vpop.f32.mrb[16].mxu1 }
 0x291   : > { %v2305_v62 = vpop.f32.mrb[17].mxu1 }
 0x292   : > { %v2307_v12 = vpop.f32.mrb[18].mxu1  ;;  %v7872_v61 = vpop.eup %7871 }
 0x293   : > { %v6369_v55 = vpack.c.bf16 %v2307_v12, %v2303_v18  ;;  %v2309_v34 = vpop.f32.mrb[19].mxu1  ;;  %v1362_v27 = vmul.f32 %v7872_v61, %v11047_v11  ;;  %v1361_v48 = vmul.f32 %v7872_v61, %v11049_v19  ;;  %v11052_v61 = vld [vmem:[#allocation87_spill] sm:$0xff] }
 0x294   : > { %v6689_v56 = vpack.c.bf16 %v2309_v34, %v2305_v62 }
 0x295   : > { %v7874_v4 = vpop.eup %7873  ;;  %6925 = vst [vmem:[%s9730_s25 + $0xa0] sm:$0xff] %v6369_v55  }
 0x296   : > { %6988 = vst [vmem:[%s9730_s25 + $0x1a0] sm:$0xff] %v6689_v56   ;;  %v1364_v3 = vmul.f32 %v7874_v4, %v11048_v31  ;;  %v1363_v30 = vmul.f32 %v7874_v4, %v11050_v5  ;;  %v11053_v56 = vld [vmem:[#allocation66_spill] sm:$0xff] }
 0x298   : > { %v2313_v41 = vpop.f32.mrb[20].mxu1  ;;  %v9775_v51 = vpack.c.bf16 %v1364_v3, %v1362_v27  ;;  %v9777_v43 = vpack.c.bf16 %v1363_v30, %v1361_v48  ;;  %v11054_v30 = vld [vmem:[#allocation54_spill] sm:$0xff] }
 0x299   : > { %v2315_v35 = vpop.f32.mrb[21].mxu1 }
 0x29a   : > { %2251 = vmatprep.mubr.bf16.mxu0 %v9775_v51  ;;  %v2317_v13 = vpop.f32.mrb[22].mxu1  ;;  %2604 = vmatprep.mubr.bf16.mxu1 %v9775_v51 }
 0x29b   : > { %v6374_v16 = vpack.c.bf16 %v2317_v13, %v2313_v41  ;;  %2252 = vmatmul.mubr.bf16.gmra.mrb[60].mxu0 %v9777_v43  ;;  %v2319_v53 = vpop.f32.mrb[23].mxu1  ;;  %2605 = vmatmul.mubr.bf16.gmra.mrb[124].mxu1 %v9777_v43 }
 0x29c   : > { %v6694_v2 = vpack.c.bf16 %v2319_v53, %v2315_v35  ;;  %2614 = vmatprep.mubr.bf16.mxu1 %v11051_v24  ;;  %2807 = vmatprep.mubr.bf16.mxu0 %v9395_v15  ;;  %v11055_v35 = vld [vmem:[#allocation55_spill] sm:$0xff] }
 0x29d   : > { %6926 = vst [vmem:[%s9730_s25 + $0xa8] sm:$0xff] %v6374_v16  }
 0x29e   : > { %6989 = vst [vmem:[%s9730_s25 + $0x1a8] sm:$0xff] %v6694_v2  }
 0x2a0   : > { %v2323_v47 = vpop.f32.mrb[24].mxu1 }
 0x2a1   : > { %v2325_v57 = vpop.f32.mrb[25].mxu1 }
 0x2a2   : > { %v2327_v18 = vpop.f32.mrb[26].mxu1 }
 0x2a3   : > { %v6379_v62 = vpack.c.bf16 %v2327_v18, %v2323_v47  ;;  %v2329_v12 = vpop.f32.mrb[27].mxu1  ;;  %2615 = vmatmul.mubr.bf16.gmra.mrb[128].mxu1 %v11052_v61  ;;  %2808 = vmatmul.mubr.bf16.vlgmr.msra.gmra.mrb[64].mxu0 %v9397_v22 }
 0x2a4   : > { %v6699_v55 = vpack.c.bf16 %v2329_v12, %v2325_v57  ;;  %v2103_v34 = vpop.f32.mrb[0].mxu0  ;;  %2624 = vmatprep.mubr.bf16.mxu1 %v11053_v56  ;;  %2817 = vmatprep.mubr.bf16.mxu0 %v9430_v52 }
 0x2a5   : > { %6927 = vst [vmem:[%s9730_s25 + $0xb0] sm:$0xff] %v6379_v62   ;;  %v2105_v15 = vpop.f32.mrb[1].mxu0 }
 0x2a6   : > { %6990 = vst [vmem:[%s9730_s25 + $0x1b0] sm:$0xff] %v6699_v55   ;;  %v2107_v4 = vpop.f32.mrb[2].mxu0  ;;  %v11056_v55 = vld [vmem:[#allocation58_spill] sm:$0xff] }
 0x2a7   : > { %v6269_v11 = vpack.c.bf16 %v2107_v4, %v2103_v34  ;;  %v2109_v27 = vpop.f32.mrb[3].mxu0  ;;  %v11057_v34 = vld [vmem:[#allocation60_spill] sm:$0xff] }
 0x2a8   : > { %v6589_v31 = vpack.c.bf16 %v2109_v27, %v2105_v15  ;;  %v2333_v3 = vpop.f32.mrb[28].mxu1 }
 0x2a9   : > { %6270 = vst [vmem:[%s9730_s25] sm:$0xff] %v6269_v11   ;;  %v2335_v19 = vpop.f32.mrb[29].mxu1 }
 0x2aa   : > { %6968 = vst [vmem:[%s9730_s25 + $0x100] sm:$0xff] %v6589_v31   ;;  %v2337_v22 = vpop.f32.mrb[30].mxu1 }
 0x2ab   : > { %v6384_v48 = vpack.c.bf16 %v2337_v22, %v2333_v3  ;;  %v2339_v5 = vpop.f32.mrb[31].mxu1  ;;  %2625 = vmatmul.mubr.bf16.gmra.mrb[132].mxu1 %v11054_v30  ;;  %2818 = vmatmul.mubr.bf16.gmra.mrb[68].mxu0 %v9432_v58 }
 0x2ac   : > { %v6704_v52 = vpack.c.bf16 %v2339_v5, %v2335_v19  ;;  %v2113_v41 = vpop.f32.mrb[4].mxu0  ;;  %2634 = vmatprep.mubr.bf16.mxu1 %v11055_v35  ;;  %2827 = vmatprep.mubr.bf16.mxu0 %v9482_v63  ;;  %v11058_v5 = vld [vmem:[#allocation57_spill] sm:$0xff] }
 0x2ad   : > { %6928 = vst [vmem:[%s9730_s25 + $0xb8] sm:$0xff] %v6384_v48   ;;  %v2115_v13 = vpop.f32.mrb[5].mxu0 }
 0x2ae   : > { %6991 = vst [vmem:[%s9730_s25 + $0x1b8] sm:$0xff] %v6704_v52   ;;  %v2117_v16 = vpop.f32.mrb[6].mxu0 }
 0x2af   : > { %v6274_v53 = vpack.c.bf16 %v2117_v16, %v2113_v41  ;;  %v2119_v2 = vpop.f32.mrb[7].mxu0  ;;  %v11059_v41 = vld [vmem:[#allocation59_spill] sm:$0xff] }
 0x2b0   : > { %v6594_v47 = vpack.c.bf16 %v2119_v2, %v2115_v13  ;;  %v2343_v57 = vpop.f32.mrb[32].mxu1 }
 0x2b1   : > { %6906 = vst [vmem:[%s9730_s25 + $0x8] sm:$0xff] %v6274_v53   ;;  %v2345_v18 = vpop.f32.mrb[33].mxu1 }
 0x2b2   : > { %6969 = vst [vmem:[%s9730_s25 + $0x108] sm:$0xff] %v6594_v47   ;;  %v2347_v58 = vpop.f32.mrb[34].mxu1 }
 0x2b3   : > { %v6389_v62 = vpack.c.bf16 %v2347_v58, %v2343_v57  ;;  %v2349_v12 = vpop.f32.mrb[35].mxu1  ;;  %2635 = vmatmul.mubr.bf16.gmra.mrb[136].mxu1 %v11056_v55  ;;  %2828 = vmatmul.mubr.bf16.gmra.mrb[72].mxu0 %v9484_v36  ;;  %v11060_v57 = vld [vmem:[#allocation62_spill] sm:$0xff] }
 0x2b4   : > { %v6709_v63 = vpack.c.bf16 %v2349_v12, %v2345_v18  ;;  %2644 = vmatprep.mubr.bf16.mxu1 %v11057_v34  ;;  %2837 = vmatprep.mubr.bf16.mxu0 %v9540_v8 }
 0x2b5   : > { %6929 = vst [vmem:[%s9730_s25 + $0xc0] sm:$0xff] %v6389_v62  }
 0x2b6   : > { %6992 = vst [vmem:[%s9730_s25 + $0x1c0] sm:$0xff] %v6709_v63  }
 0x2b8   : > { %v2123_v15 = vpop.f32.mrb[8].mxu0  ;;  %v2353_v4 = vpop.f32.mrb[36].mxu1 }
 0x2b9   : > { %v2125_v11 = vpop.f32.mrb[9].mxu0  ;;  %v2355_v27 = vpop.f32.mrb[37].mxu1 }
 0x2ba   : > { %v2127_v31 = vpop.f32.mrb[10].mxu0  ;;  %v2357_v3 = vpop.f32.mrb[38].mxu1 }
 0x2bb   : > { %v6279_v19 = vpack.c.bf16 %v2127_v31, %v2123_v15  ;;  %v6394_v22 = vpack.c.bf16 %v2357_v3, %v2353_v4  ;;  %v2129_v36 = vpop.f32.mrb[11].mxu0  ;;  %v2359_v48 = vpop.f32.mrb[39].mxu1  ;;  %2645 = vmatmul.mubr.bf16.gmra.mrb[140].mxu1 %v11058_v5  ;;  %2838 = vmatmul.mubr.bf16.gmra.mrb[76].mxu0 %v9542_v6  ;;  %v11062_v3 = vld [vmem:[#allocation61_spill] sm:$0xff] }
 0x2bc   : > { %v6599_v8 = vpack.c.bf16 %v2129_v36, %v2125_v11  ;;  %v6714_v52 = vpack.c.bf16 %v2359_v48, %v2355_v27  ;;  %2654 = vmatprep.mubr.bf16.mxu1 %v11059_v41  ;;  %2847 = vmatprep.mubr.bf16.mxu0 %v9586_v28  ;;  %v11061_v28 = vld [vmem:[#allocation65_spill] sm:$0xff] }
 0x2bd   : > { %6907 = vst [vmem:[%s9730_s25 + $0x10] sm:$0xff] %v6279_v19   ;;  %6930 = vst [vmem:[%s9730_s25 + $0xc8] sm:$0xff] %v6394_v22   ;;  %v11063_v19 = vld [vmem:[#allocation64_spill] sm:$0xff] }
 0x2be   : > { %6970 = vst [vmem:[%s9730_s25 + $0x110] sm:$0xff] %v6599_v8   ;;  %6993 = vst [vmem:[%s9730_s25 + $0x1c8] sm:$0xff] %v6714_v52  }
 0x2c0   : > { %v2363_v13 = vpop.f32.mrb[40].mxu1 }
 0x2c1   : > { %v2365_v16 = vpop.f32.mrb[41].mxu1 }
 0x2c2   : > { %v2367_v53 = vpop.f32.mrb[42].mxu1 }
 0x2c3   : > { %v6399_v2 = vpack.c.bf16 %v2367_v53, %v2363_v13  ;;  %v2369_v47 = vpop.f32.mrb[43].mxu1  ;;  %2655 = vmatmul.mubr.bf16.gmra.mrb[144].mxu1 %v11060_v57  ;;  %2848 = vmatmul.mubr.bf16.gmra.mrb[80].mxu0 %v9588_v54 }
 0x2c4   : > { %v6719_v6 = vpack.c.bf16 %v2369_v47, %v2365_v16  ;;  %v2133_v18 = vpop.f32.mrb[12].mxu0  ;;  %2664 = vmatprep.mubr.bf16.mxu1 %v11061_v28  ;;  %2857 = vmatprep.mubr.bf16.mxu0 %v9609_v26  ;;  %v11064_v47 = vld [vmem:[#allocation69_spill] sm:$0xff] }
 0x2c5   : > { %6931 = vst [vmem:[%s9730_s25 + $0xd0] sm:$0xff] %v6399_v2   ;;  %v2135_v58 = vpop.f32.mrb[13].mxu0 }
 0x2c6   : > { %6994 = vst [vmem:[%s9730_s25 + $0x1d0] sm:$0xff] %v6719_v6   ;;  %v2137_v62 = vpop.f32.mrb[14].mxu0 }
 0x2c7   : > { %v6284_v12 = vpack.c.bf16 %v2137_v62, %v2133_v18  ;;  %v2139_v63 = vpop.f32.mrb[15].mxu0  ;;  %v11065_v18 = vld [vmem:[#allocation67_spill] sm:$0xff] }
 0x2c8   : > { %v6604_v15 = vpack.c.bf16 %v2139_v63, %v2135_v58  ;;  %v2373_v4 = vpop.f32.mrb[44].mxu1 }
 0x2c9   : > { %6908 = vst [vmem:[%s9730_s25 + $0x18] sm:$0xff] %v6284_v12   ;;  %v2375_v11 = vpop.f32.mrb[45].mxu1 }
 0x2ca   : > { %6971 = vst [vmem:[%s9730_s25 + $0x118] sm:$0xff] %v6604_v15   ;;  %v2377_v54 = vpop.f32.mrb[46].mxu1 }
 0x2cb   : > { %v6404_v27 = vpack.c.bf16 %v2377_v54, %v2373_v4  ;;  %v2379_v31 = vpop.f32.mrb[47].mxu1  ;;  %2665 = vmatmul.mubr.bf16.gmra.mrb[148].mxu1 %v11062_v3  ;;  %2858 = vmatmul.mubr.bf16.gmra.mrb[84].mxu0 %v9611_v23  ;;  %v11066_v4 = vld [vmem:[#allocation68_spill] sm:$0xff] }
 0x2cc   : > { %v6724_v26 = vpack.c.bf16 %v2379_v31, %v2375_v11  ;;  %2674 = vmatprep.mubr.bf16.mxu1 %v11063_v19  ;;  %2867 = vmatprep.mubr.bf16.mxu0 %v9629_v7 }
 0x2cd   : > { %6932 = vst [vmem:[%s9730_s25 + $0xd8] sm:$0xff] %v6404_v27  }
 0x2ce   : > { %6995 = vst [vmem:[%s9730_s25 + $0x1d8] sm:$0xff] %v6724_v26  }
 0x2d0   : > { %v2143_v22 = vpop.f32.mrb[16].mxu0  ;;  %v2383_v36 = vpop.f32.mrb[48].mxu1 }
 0x2d1   : > { %v2145_v48 = vpop.f32.mrb[17].mxu0  ;;  %v2385_v8 = vpop.f32.mrb[49].mxu1 }
 0x2d2   : > { %v2147_v52 = vpop.f32.mrb[18].mxu0  ;;  %v2387_v13 = vpop.f32.mrb[50].mxu1 }
 0x2d3   : > { %v6289_v16 = vpack.c.bf16 %v2147_v52, %v2143_v22  ;;  %v6409_v53 = vpack.c.bf16 %v2387_v13, %v2383_v36  ;;  %v2149_v23 = vpop.f32.mrb[19].mxu0  ;;  %v2389_v2 = vpop.f32.mrb[51].mxu1  ;;  %2675 = vmatmul.mubr.bf16.gmra.mrb[152].mxu1 %v11064_v47  ;;  %2868 = vmatmul.mubr.bf16.gmra.mrb[88].mxu0 %v9631_v45  ;;  %v11068_v13 = vld [vmem:[#allocation70_spill] sm:$0xff] }
 0x2d4   : > { %v6609_v7 = vpack.c.bf16 %v2149_v23, %v2145_v48  ;;  %v6729_v6 = vpack.c.bf16 %v2389_v2, %v2385_v8  ;;  %2684 = vmatprep.mubr.bf16.mxu1 %v11065_v18  ;;  %2877 = vmatprep.mubr.bf16.mxu0 %v9650_v33  ;;  %v11067_v33 = vld [vmem:[#allocation71_spill] sm:$0xff] }
 0x2d5   : > { %6909 = vst [vmem:[%s9730_s25 + $0x20] sm:$0xff] %v6289_v16   ;;  %6933 = vst [vmem:[%s9730_s25 + $0xe0] sm:$0xff] %v6409_v53   ;;  %v11069_v53 = vld [vmem:[#allocation72_spill] sm:$0xff] }
 0x2d6   : > { %6972 = vst [vmem:[%s9730_s25 + $0x120] sm:$0xff] %v6609_v7   ;;  %6996 = vst [vmem:[%s9730_s25 + $0x1e0] sm:$0xff] %v6729_v6  }
 0x2d8   : > { %v2393_v58 = vpop.f32.mrb[52].mxu1 }
 0x2d9   : > { %v2395_v62 = vpop.f32.mrb[53].mxu1 }
 0x2da   : > { %v2397_v12 = vpop.f32.mrb[54].mxu1 }
 0x2db   : > { %v6414_v63 = vpack.c.bf16 %v2397_v12, %v2393_v58  ;;  %v2399_v15 = vpop.f32.mrb[55].mxu1  ;;  %2685 = vmatmul.mubr.bf16.gmra.mrb[156].mxu1 %v11066_v4  ;;  %2878 = vmatmul.mubr.bf16.gmra.mrb[92].mxu0 %v9652_v0 }
 0x2dc   : > { %v6734_v45 = vpack.c.bf16 %v2399_v15, %v2395_v62  ;;  %v2153_v11 = vpop.f32.mrb[20].mxu0  ;;  %2694 = vmatprep.mubr.bf16.mxu1 %v11067_v33  ;;  %2887 = vmatprep.mubr.bf16.mxu0 %v9666_v59 }
 0x2dd   : > { %6934 = vst [vmem:[%s9730_s25 + $0xe8] sm:$0xff] %v6414_v63   ;;  %v2155_v54 = vpop.f32.mrb[21].mxu0 }
 0x2de   : > { %6997 = vst [vmem:[%s9730_s25 + $0x1e8] sm:$0xff] %v6734_v45   ;;  %v2157_v27 = vpop.f32.mrb[22].mxu0  ;;  %v11070_v45 = vld [vmem:[#allocation18_spill] sm:$0xff] }
 0x2df   : > { %v6294_v31 = vpack.c.bf16 %v2157_v27, %v2153_v11  ;;  %v2159_v26 = vpop.f32.mrb[23].mxu0 }
 0x2e0   : > { %v6614_v22 = vpack.c.bf16 %v2159_v26, %v2155_v54  ;;  %v2403_v36 = vpop.f32.mrb[56].mxu1  ;;  %v11071_v54 = vld [vmem:[#allocation15_spill] sm:$0xff] }
 0x2e1   : > { %6910 = vst [vmem:[%s9730_s25 + $0x28] sm:$0xff] %v6294_v31   ;;  %v2405_v48 = vpop.f32.mrb[57].mxu1 }
 0x2e2   : > { %6973 = vst [vmem:[%s9730_s25 + $0x128] sm:$0xff] %v6614_v22   ;;  %v2407_v0 = vpop.f32.mrb[58].mxu1 }
 0x2e3   : > { %v6419_v8 = vpack.c.bf16 %v2407_v0, %v2403_v36  ;;  %v2409_v52 = vpop.f32.mrb[59].mxu1  ;;  %2695 = vmatmul.mubr.bf16.gmra.mrb[160].mxu1 %v11068_v13  ;;  %2888 = vmatmul.mubr.bf16.gmra.mrb[96].mxu0 %v9668_v46 }
 0x2e4   : > { %v6739_v59 = vpack.c.bf16 %v2409_v52, %v2405_v48  ;;  %v2163_v16 = vpop.f32.mrb[24].mxu0  ;;  %2704 = vmatprep.mubr.bf16.mxu1 %v11069_v53  ;;  %2897 = vmatprep.mubr.bf16.mxu0 %v9678_v1  ;;  %v11072_v52 = vld [vmem:[#allocation73_spill] sm:$0xff] }
 0x2e5   : > { %6935 = vst [vmem:[%s9730_s25 + $0xf0] sm:$0xff] %v6419_v8   ;;  %v2165_v23 = vpop.f32.mrb[25].mxu0 }
 0x2e6   : > { %6998 = vst [vmem:[%s9730_s25 + $0x1f0] sm:$0xff] %v6739_v59   ;;  %v2167_v2 = vpop.f32.mrb[26].mxu0 }
 0x2e7   : > { %v6299_v7 = vpack.c.bf16 %v2167_v2, %v2163_v16  ;;  %v2169_v6 = vpop.f32.mrb[27].mxu0 }
 0x2e8   : > { %v6619_v58 = vpack.c.bf16 %v2169_v6, %v2165_v23  ;;  %v2413_v62 = vpop.f32.mrb[60].mxu1  ;;  %v11075_v6 = vld [vmem:[#allocation23_spill] sm:$0xff] }
 0x2e9   : > { %6911 = vst [vmem:[%s9730_s25 + $0x30] sm:$0xff] %v6299_v7   ;;  %v2415_v12 = vpop.f32.mrb[61].mxu1  ;;  %v11074_v7 = vld [vmem:[#allocation26_spill] sm:$0xff] }
 0x2ea   : > { %6974 = vst [vmem:[%s9730_s25 + $0x130] sm:$0xff] %v6619_v58   ;;  %v2417_v46 = vpop.f32.mrb[62].mxu1 }
 0x2eb   : > { %v6424_v63 = vpack.c.bf16 %v2417_v46, %v2413_v62  ;;  %v2419_v15 = vpop.f32.mrb[63].mxu1  ;;  %2705 = vmatmul.mubr.bf16.gmra.mrb[164].mxu1 %v11070_v45  ;;  %2898 = vmatmul.mubr.bf16.gmra.mrb[100].mxu0 %v9680_v42 }
 0x2ec   : > { %v6744_v1 = vpack.c.bf16 %v2419_v15, %v2415_v12  ;;  %v2173_v11 = vpop.f32.mrb[28].mxu0  ;;  %2714 = vmatprep.mubr.bf16.mxu1 %v11071_v54  ;;  %2907 = vmatprep.mubr.bf16.mxu0 %v9690_v17  ;;  %v11073_v17 = vld [vmem:[#allocation79_spill] sm:$0xff] }
 0x2ed   : > { %6936 = vst [vmem:[%s9730_s25 + $0xf8] sm:$0xff] %v6424_v63   ;;  %v2175_v27 = vpop.f32.mrb[29].mxu0 }
 0x2ee   : > { %6999 = vst [vmem:[%s9730_s25 + $0x1f8] sm:$0xff] %v6744_v1   ;;  %v2177_v31 = vpop.f32.mrb[30].mxu0 }
 0x2ef   : > { %v6304_v26 = vpack.c.bf16 %v2177_v31, %v2173_v11  ;;  %v2179_v22 = vpop.f32.mrb[31].mxu0 }
 0x2f0   : > { %v6624_v36 = vpack.c.bf16 %v2179_v22, %v2175_v27  ;;  %v9861_v48 = vpop.f32.mrb[64].mxu1 }
 0x2f1   : > { %6912 = vst [vmem:[%s9730_s25 + $0x38] sm:$0xff] %v6304_v26   ;;  %v9864_v0 = vpop.f32.mrb[65].mxu1 }
 0x2f2   : > { %6975 = vst [vmem:[%s9730_s25 + $0x138] sm:$0xff] %v6624_v36   ;;  %v9867_v42 = vpop.f32.mrb[66].mxu1 }
 0x2f3   : > { %v9869_v8 = vpop.f32.mrb[67].mxu1  ;;  %2715 = vmatmul.mubr.bf16.gmra.mrb[168].mxu1 %v11072_v52  ;;  %2908 = vmatmul.mubr.bf16.gmra.mrb[104].mxu0 %v9692_v32 }
 0x2f4   : > { %2724 = vmatprep.mubr.bf16.mxu1 %v11073_v17  ;;  %2917 = vmatprep.mubr.bf16.mxu0 %v9702_v49 }
 0x2f8   : > { %v9875_v59 = vpop.f32.mrb[68].mxu1 }
 0x2f9   : > { %v9877_v16 = vpop.f32.mrb[69].mxu1 }
 0x2fa   : > { %v9879_v23 = vpop.f32.mrb[70].mxu1 }
 0x2fb   : > { %v9881_v2 = vpop.f32.mrb[71].mxu1  ;;  %2725 = vmatmul.mubr.bf16.gmra.mrb[172].mxu1 %v11074_v7  ;;  %2918 = vmatmul.mubr.bf16.gmra.mrb[108].mxu0 %v9704_v38 }
 0x2fc   : > { %2734 = vmatprep.mubr.bf16.mxu1 %v11075_v6  ;;  %2927 = vmatprep.mubr.bf16.mxu0 %v9725_v9 }
 0x300   : > { %v9887_v32 = vpop.f32.mrb[72].mxu1 }
 0x301   : > { %v9889_v58 = vpop.f32.mrb[73].mxu1 }
 0x302   : > { %v9891_v49 = vpop.f32.mrb[74].mxu1 }
 0x303   : > { %v9893_v62 = vpop.f32.mrb[75].mxu1  ;;  %2735 = vmatmul.mubr.bf16.gmra.mrb[176].mxu1 %v9590_v50  ;;  %2928 = vmatmul.mubr.bf16.gmra.mrb[112].mxu0 %v9727_v10 }
 0x304   : > { %2744 = vmatprep.mubr.bf16.mxu1 %v9597_v14  ;;  %2937 = vmatprep.mubr.bf16.mxu0 %v9745_v37 }
 0x308   : > { %v9899_v38 = vpop.f32.mrb[76].mxu1 }
 0x309   : > { %v9901_v9 = vpop.f32.mrb[77].mxu1 }
 0x30a   : > { %v2183_v12 = vpop.f32.mrb[32].mxu0  ;;  %v9903_v46 = vpop.f32.mrb[78].mxu1 }
 0x30b   : > { %v2185_v63 = vpop.f32.mrb[33].mxu0  ;;  %v9905_v15 = vpop.f32.mrb[79].mxu1  ;;  %2745 = vmatmul.mubr.bf16.gmra.mrb[180].mxu1 %v9602_v29  ;;  %2938 = vmatmul.mubr.bf16.gmra.mrb[116].mxu0 %v9747_v44 }
 0x30c   : > { %v2187_v10 = vpop.f32.mrb[34].mxu0  ;;  %2754 = vmatprep.mubr.bf16.mxu1 %v9619_v21  ;;  %2947 = vmatprep.mubr.bf16.mxu0 %v9759_v39 }
 0x30d   : > { %v6309_v37 = vpack.c.bf16 %v2187_v10, %v2183_v12  ;;  %v2189_v1 = vpop.f32.mrb[35].mxu0 }
 0x30e   : > { %v6629_v11 = vpack.c.bf16 %v2189_v1, %v2185_v63 }
 0x30f   : > { %6913 = vst [vmem:[%s9730_s25 + $0x40] sm:$0xff] %v6309_v37  }
 0x310   : > { %6976 = vst [vmem:[%s9730_s25 + $0x140] sm:$0xff] %v6629_v11   ;;  %v9913_v27 = vpop.f32.mrb[80].mxu1 }
 0x311   : > { %v9915_v31 = vpop.f32.mrb[81].mxu1 }
 0x312   : > { %v2193_v26 = vpop.f32.mrb[36].mxu0  ;;  %v9917_v22 = vpop.f32.mrb[82].mxu1 }
 0x313   : > { %v2195_v44 = vpop.f32.mrb[37].mxu0  ;;  %v9919_v36 = vpop.f32.mrb[83].mxu1  ;;  %2755 = vmatmul.mubr.bf16.gmra.mrb[184].mxu1 %v9621_v25  ;;  %2948 = vmatmul.mubr.bf16.gmra.mrb[120].mxu0 %v9761_v40 }
 0x314   : > { %v2197_v39 = vpop.f32.mrb[38].mxu0  ;;  %2764 = vmatprep.mubr.bf16.mxu1 %v9639_v60  ;;  %2957 = vmatprep.mubr.bf16.mxu0 %v9775_v51 }
 0x315   : > { %v6314_v12 = vpack.c.bf16 %v2197_v39, %v2193_v26  ;;  %v2199_v63 = vpop.f32.mrb[39].mxu0 }
 0x316   : > { %v6634_v10 = vpack.c.bf16 %v2199_v63, %v2195_v44 }
 0x317   : > { %6914 = vst [vmem:[%s9730_s25 + $0x48] sm:$0xff] %v6314_v12  }
 0x318   : > { %6977 = vst [vmem:[%s9730_s25 + $0x148] sm:$0xff] %v6634_v10   ;;  %v9927_v37 = vpop.f32.mrb[84].mxu1 }
 0x319   : > { %v9929_v1 = vpop.f32.mrb[85].mxu1 }
 0x31a   : > { %v2203_v11 = vpop.f32.mrb[40].mxu0  ;;  %v9931_v25 = vpop.f32.mrb[86].mxu1 }
 0x31b   : > { %v2205_v40 = vpop.f32.mrb[41].mxu0  ;;  %v9933_v21 = vpop.f32.mrb[87].mxu1  ;;  %2765 = vmatmul.mubr.bf16.gmra.mrb[188].mxu1 %v9641_v20  ;;  %2958 = vmatmul.mubr.bf16.gmra.mrb[124].mxu0 %v9777_v43 }
 0x31c   : > { %v2207_v51 = vpop.f32.mrb[42].mxu0  ;;  %2967 = vmatprep.mubr.bf16.mxu0 %v11051_v24 }
 0x31d   : > { %v6319_v26 = vpack.c.bf16 %v2207_v51, %v2203_v11  ;;  %v2209_v44 = vpop.f32.mrb[43].mxu0 }
 0x31e   : > { %v6639_v39 = vpack.c.bf16 %v2209_v44, %v2205_v40 }
 0x31f   : > { %6915 = vst [vmem:[%s9730_s25 + $0x50] sm:$0xff] %v6319_v26  }
 0x320   : > { %6978 = vst [vmem:[%s9730_s25 + $0x150] sm:$0xff] %v6639_v39   ;;  %v9940_v12 = vpop.f32.mrb[88].mxu1 }
 0x321   : > { %v9942_v63 = vpop.f32.mrb[89].mxu1 }
 0x322   : > { %v2213_v10 = vpop.f32.mrb[44].mxu0  ;;  %v9944_v60 = vpop.f32.mrb[90].mxu1 }
 0x323   : > { %v2215_v20 = vpop.f32.mrb[45].mxu0  ;;  %v9946_v29 = vpop.f32.mrb[91].mxu1  ;;  %2968 = vmatmul.mubr.bf16.gmra.mrb[128].mxu0 %v11052_v61 }
 0x324   : > { %v2217_v43 = vpop.f32.mrb[46].mxu0  ;;  %2977 = vmatprep.mubr.bf16.mxu0 %v11053_v56 }
 0x325   : > { %v6324_v24 = vpack.c.bf16 %v2217_v43, %v2213_v10  ;;  %v2219_v11 = vpop.f32.mrb[47].mxu0 }
 0x326   : > { %v6644_v40 = vpack.c.bf16 %v2219_v11, %v2215_v20 }
 0x327   : > { %6916 = vst [vmem:[%s9730_s25 + $0x58] sm:$0xff] %v6324_v24  }
 0x328   : > { %6979 = vst [vmem:[%s9730_s25 + $0x158] sm:$0xff] %v6644_v40   ;;  %v9952_v51 = vpop.f32.mrb[92].mxu1 }
 0x329   : > { %v9954_v26 = vpop.f32.mrb[93].mxu1 }
 0x32a   : > { %v9956_v44 = vpop.f32.mrb[94].mxu1 }
 0x32b   : > { %v9958_v39 = vpop.f32.mrb[95].mxu1  ;;  %2978 = vmatmul.mubr.bf16.gmra.mrb[132].mxu0 %v11054_v30 }
 0x32c   : > { %2987 = vmatprep.mubr.bf16.mxu0 %v11055_v35 }
 0x330   : > { %v2536_v61 = vpop.f32.mrb[96].mxu1 }
 0x331   : > { %v7155_v56 = vpack.i.bf16 %v2536_v61, %v9861_v48  ;;  %v9963_v10 = vpop.f32.mrb[97].mxu1 }
 0x332   : > { %v7379_v20 = vpack.i.bf16 %v9963_v10, %v9864_v0  ;;  %v2540_v43 = vpop.f32.mrb[98].mxu1 }
 0x333   : > { %v7157_v24 = vpack.i.bf16 %v2540_v43, %v9867_v42  ;;  %7156 = vxpose.xlu0.b32.start [1/16] %v7155_v56, 128  ;;  %v9968_v11 = vpop.f32.mrb[99].mxu1  ;;  %2988 = vmatmul.mubr.bf16.gmra.mrb[136].mxu0 %v11056_v55 }
 0x334   : > { %v7381_v30 = vpack.i.bf16 %v9968_v11, %v9869_v8  ;;  %2997 = vmatprep.mubr.bf16.mxu0 %v11057_v34 }
 0x337   : > { %7158 = vxpose.xlu0.b32.cont [2/16] %v7157_v24, 128 }
 0x338   : > { %v2546_v35 = vpop.f32.mrb[100].mxu1 }
 0x339   : > { %v7159_v48 = vpack.i.bf16 %v2546_v35, %v9875_v59  ;;  %v9975_v40 = vpop.f32.mrb[101].mxu1 }
 0x33a   : > { %v7383_v61 = vpack.i.bf16 %v9975_v40, %v9877_v16  ;;  %v2550_v42 = vpop.f32.mrb[102].mxu1 }
 0x33b   : > { %v7161_v56 = vpack.i.bf16 %v2550_v42, %v9879_v23  ;;  %7160 = vxpose.xlu0.b32.cont [3/16] %v7159_v48, 128  ;;  %v9980_v43 = vpop.f32.mrb[103].mxu1  ;;  %2998 = vmatmul.mubr.bf16.gmra.mrb[140].mxu0 %v11058_v5 }
 0x33c   : > { %3007 = vmatprep.mubr.bf16.mxu0 %v11059_v41  ;;  %v11076_v8 = vpack.i.bf16 %v9980_v43, %v9881_v2  ;;  %v11078_v2 = vld [vmem:[#allocation25_spill] sm:$0xff]  ;;  %v11079_v43 = vld [vmem:[#allocation76_spill] sm:$0xff] }
 0x33f   : > { %7162 = vxpose.xlu0.b32.cont [4/16] %v7161_v56, 128 }
 0x340   : > { %v2556_v34 = vpop.f32.mrb[104].mxu1 }
 0x341   : > { %v7163_v59 = vpack.i.bf16 %v2556_v34, %v9887_v32  ;;  %v9987_v24 = vpop.f32.mrb[105].mxu1 }
 0x342   : > { %v2560_v23 = vpop.f32.mrb[106].mxu1 }
 0x343   : > { %v7165_v48 = vpack.i.bf16 %v2560_v23, %v9891_v49  ;;  %7164 = vxpose.xlu0.b32.cont [5/16] %v7163_v59, 128  ;;  %v9992_v42 = vpop.f32.mrb[107].mxu1  ;;  %3008 = vmatmul.mubr.bf16.gmra.mrb[144].mxu0 %v11060_v57 }
 0x344   : > { %3017 = vmatprep.mubr.bf16.mxu0 %v11061_v28 }
 0x347   : > { %7166 = vxpose.xlu0.b32.cont [6/16] %v7165_v48, 128 }
 0x348   : > { %v2566_v41 = vpop.f32.mrb[108].mxu1 }
 0x349   : > { %v7167_v32 = vpack.i.bf16 %v2566_v41, %v9899_v38  ;;  %v9999_v56 = vpop.f32.mrb[109].mxu1 }
 0x34a   : > { %v2223_v34 = vpop.f32.mrb[48].mxu0  ;;  %v2570_v59 = vpop.f32.mrb[110].mxu1 }
 0x34b   : > { %v7169_v57 = vpack.i.bf16 %v2570_v59, %v9903_v46  ;;  %7168 = vxpose.xlu0.b32.cont [7/16] %v7167_v32, 128  ;;  %v2225_v23 = vpop.f32.mrb[49].mxu0  ;;  %v10004_v5 = vpop.f32.mrb[111].mxu1  ;;  %3018 = vmatmul.mubr.bf16.gmra.mrb[148].mxu0 %v11062_v3 }
 0x34c   : > { %v2227_v38 = vpop.f32.mrb[50].mxu0  ;;  %3027 = vmatprep.mubr.bf16.mxu0 %v11063_v19 }
 0x34d   : > { %v6329_v48 = vpack.c.bf16 %v2227_v38, %v2223_v34  ;;  %v2229_v41 = vpop.f32.mrb[51].mxu0 }
 0x34e   : > { %v6649_v49 = vpack.c.bf16 %v2229_v41, %v2225_v23 }
 0x34f   : > { %6917 = vst [vmem:[%s9730_s25 + $0x60] sm:$0xff] %v6329_v48   ;;  %7170 = vxpose.xlu0.b32.cont [8/16] %v7169_v57, 128 }
 0x350   : > { %6980 = vst [vmem:[%s9730_s25 + $0x160] sm:$0xff] %v6649_v49   ;;  %v2576_v35 = vpop.f32.mrb[112].mxu1 }
 0x351   : > { %v7171_v46 = vpack.i.bf16 %v2576_v35, %v9913_v27  ;;  %v10013_v32 = vpop.f32.mrb[113].mxu1 }
 0x352   : > { %v7395_v3 = vpack.i.bf16 %v10013_v32, %v9915_v31  ;;  %v2580_v59 = vpop.f32.mrb[114].mxu1 }
 0x353   : > { %v7173_v28 = vpack.i.bf16 %v2580_v59, %v9917_v22  ;;  %7172 = vxpose.xlu0.b32.cont [9/16] %v7171_v46, 128  ;;  %v10018_v55 = vpop.f32.mrb[115].mxu1  ;;  %3028 = vmatmul.mubr.bf16.gmra.mrb[152].mxu0 %v11064_v47 }
 0x354   : > { %v7397_v19 = vpack.i.bf16 %v10018_v55, %v9919_v36  ;;  %3037 = vmatprep.mubr.bf16.mxu0 %v11065_v18 }
 0x356   : > { %v2233_v27 = vpop.f32.mrb[52].mxu0 }
 0x357   : > { %7174 = vxpose.xlu0.b32.cont [10/16] %v7173_v28, 128  ;;  %v2235_v35 = vpop.f32.mrb[53].mxu0 }
 0x358   : > { %v2237_v49 = vpop.f32.mrb[54].mxu0  ;;  %v2586_v34 = vpop.f32.mrb[116].mxu1 }
 0x359   : > { %v6334_v57 = vpack.c.bf16 %v2237_v49, %v2233_v27  ;;  %v7175_v22 = vpack.i.bf16 %v2586_v34, %v9927_v37  ;;  %v2239_v23 = vpop.f32.mrb[55].mxu0  ;;  %v10025_v38 = vpop.f32.mrb[117].mxu1 }
 0x35a   : > { %v6654_v48 = vpack.c.bf16 %v2239_v23, %v2235_v35  ;;  %v7399_v47 = vpack.i.bf16 %v10025_v38, %v9929_v1  ;;  %v2590_v41 = vpop.f32.mrb[118].mxu1 }
 0x35b   : > { %6918 = vst [vmem:[%s9730_s25 + $0x68] sm:$0xff] %v6334_v57   ;;  %v7177_v18 = vpack.i.bf16 %v2590_v41, %v9931_v25  ;;  %7176 = vxpose.xlu0.b32.cont [11/16] %v7175_v22, 128  ;;  %v10031_v28 = vpop.f32.mrb[119].mxu1  ;;  %3038 = vmatmul.mubr.bf16.gmra.mrb[156].mxu0 %v11066_v4 }
 0x35c   : > { %6981 = vst [vmem:[%s9730_s25 + $0x168] sm:$0xff] %v6654_v48   ;;  %v7401_v37 = vpack.i.bf16 %v10031_v28, %v9933_v21  ;;  %3047 = vmatprep.mubr.bf16.mxu0 %v11067_v33 }
 0x35f   : > { %7178 = vxpose.xlu0.b32.cont [12/16] %v7177_v18, 128 }
 0x362   : > { %v2243_v46 = vpop.f32.mrb[56].mxu0  ;;  %v2596_v59 = vpop.f32.mrb[120].mxu1 }
 0x363   : > { %v7179_v27 = vpack.i.bf16 %v2596_v59, %v9940_v12  ;;  %v2245_v35 = vpop.f32.mrb[57].mxu0  ;;  %v10039_v25 = vpop.f32.mrb[121].mxu1  ;;  %3048 = vmatmul.mubr.bf16.gmra.mrb[160].mxu0 %v11068_v13 }
 0x364   : > { %v7403_v4 = vpack.i.bf16 %v10039_v25, %v9942_v63  ;;  %v2247_v49 = vpop.f32.mrb[58].mxu0  ;;  %v2600_v34 = vpop.f32.mrb[122].mxu1  ;;  %3057 = vmatprep.mubr.bf16.mxu0 %v11069_v53 }
 0x365   : > { %v6339_v33 = vpack.c.bf16 %v2247_v49, %v2243_v46  ;;  %v7181_v57 = vpack.i.bf16 %v2600_v34, %v9944_v60  ;;  %7180 = vxpose.xlu0.b32.cont [13/16] %v7179_v27, 128  ;;  %v2249_v22 = vpop.f32.mrb[59].mxu0  ;;  %v10046_v23 = vpop.f32.mrb[123].mxu1 }
 0x366   : > { %v6659_v12 = vpack.c.bf16 %v2249_v22, %v2245_v35  ;;  %v7405_v48 = vpack.i.bf16 %v10046_v23, %v9946_v29 }
 0x367   : > { %6919 = vst [vmem:[%s9730_s25 + $0x70] sm:$0xff] %v6339_v33  }
 0x368   : > { %6982 = vst [vmem:[%s9730_s25 + $0x170] sm:$0xff] %v6659_v12  }
 0x369   : > { %7182 = vxpose.xlu0.b32.cont [14/16] %v7181_v57, 128 }
 0x36b   : > { %3058 = vmatmul.mubr.bf16.gmra.mrb[164].mxu0 %v11070_v45 }
 0x36c   : > { %3067 = vmatprep.mubr.bf16.mxu0 %v11071_v54 }
 0x36e   : > { %v2253_v13 = vpop.f32.mrb[60].mxu0  ;;  %v2606_v53 = vpop.f32.mrb[124].mxu1 }
 0x36f   : > { %v7183_v60 = vpack.i.bf16 %v2606_v53, %v9952_v51  ;;  %v2255_v41 = vpop.f32.mrb[61].mxu0  ;;  %v10055_v18 = vpop.f32.mrb[125].mxu1 }
 0x370   : > { %v7407_v46 = vpack.i.bf16 %v10055_v18, %v9954_v26  ;;  %v2257_v59 = vpop.f32.mrb[62].mxu0  ;;  %v2610_v27 = vpop.f32.mrb[126].mxu1 }
 0x371   : > { %v6344_v35 = vpack.c.bf16 %v2257_v59, %v2253_v13  ;;  %v7185_v49 = vpack.i.bf16 %v2610_v27, %v9956_v44  ;;  %7184 = vxpose.xlu0.b32.cont [15/16] %v7183_v60, 128  ;;  %v2259_v45 = vpop.f32.mrb[63].mxu0  ;;  %v10060_v54 = vpop.f32.mrb[127].mxu1 }
 0x372   : > { %v6664_v34 = vpack.c.bf16 %v2259_v45, %v2255_v41  ;;  %v7409_v33 = vpack.i.bf16 %v10060_v54, %v9958_v39 }
 0x373   : > { %6920 = vst [vmem:[%s9730_s25 + $0x78] sm:$0xff] %v6344_v35   ;;  %3068 = vmatmul.mubr.bf16.gmra.mrb[168].mxu0 %v11072_v52 }
 0x374   : > { %6983 = vst [vmem:[%s9730_s25 + $0x178] sm:$0xff] %v6664_v34   ;;  %3077 = vmatprep.mubr.bf16.mxu0 %v11073_v17 }
 0x375   : > { %7186 = vxpose.xlu0.b32.end [16/16] %v7185_v49, 128 }
 0x376   : > { %v10068_v51 = vpop.f32.mrb[128].mxu1  ;;  %v2809_v57 = vpop.f32.mrb[64].mxu0 }
 0x377   : > { %v10070_v44 = vpop.f32.mrb[129].mxu1  ;;  %v2811_v22 = vpop.f32.mrb[65].mxu0 }
 0x378   : > { %v10072_v12 = vpop.f32.mrb[130].mxu1  ;;  %v2813_v13 = vpop.f32.mrb[66].mxu0 }
 0x379   : > { %v6429_v53 = vpack.c.bf16 %v2813_v13, %v2809_v57  ;;  %7380 = vxpose.xlu0.b32.start [1/16] %v7379_v20, 128  ;;  %v10077_v60 = vpop.f32.mrb[131].mxu1  ;;  %v2815_v52 = vpop.f32.mrb[67].mxu0  ;;  %v11080_v13 = vpack.i.bf16 %v9992_v42, %v9893_v62  ;;  %v11082_v62 = vld [vmem:[#allocation20_spill] sm:$0xff]  ;;  %v11083_v42 = vld [vmem:[#allocation21_spill] sm:$0xff] }
 0x37a   : > { %v6749_v41 = vpack.c.bf16 %v2815_v52, %v2811_v22 }
 0x37b   : > { %6430 = vst [vmem:[%s10080_s12] sm:$0xff] %v6429_v53   ;;  %3078 = vmatmul.mubr.bf16.gmra.mrb[172].mxu0 %v11074_v7 }
 0x37c   : > { %7000 = vst [vmem:[%s10080_s12 + $0x100] sm:$0xff] %v6749_v41   ;;  %3087 = vmatprep.mubr.bf16.mxu0 %v11075_v6 }
 0x37d   : > { %7382 = vxpose.xlu0.b32.cont [2/16] %v7381_v30, 128 }
 0x37e   : > { %v10089_v0 = vpop.f32.mrb[132].mxu1  ;;  %v2819_v17 = vpop.f32.mrb[68].mxu0 }
 0x37f   : > { %v10091_v10 = vpop.f32.mrb[133].mxu1  ;;  %v2821_v20 = vpop.f32.mrb[69].mxu0 }
 0x380   : > { %v10093_v59 = vpop.f32.mrb[134].mxu1  ;;  %v2823_v27 = vpop.f32.mrb[70].mxu0 }
 0x381   : > { %v6434_v35 = vpack.c.bf16 %v2823_v27, %v2819_v17  ;;  %7384 = vxpose.xlu0.b32.cont [3/16] %v7383_v61, 128  ;;  %v10098_v7 = vpop.f32.mrb[135].mxu1  ;;  %v2825_v6 = vpop.f32.mrb[71].mxu0  ;;  %v11081_v27 = vpack.i.bf16 %v9999_v56, %v9901_v9 }
 0x382   : > { %v6754_v49 = vpack.c.bf16 %v2825_v6, %v2821_v20 }
 0x383   : > { %6937 = vst [vmem:[%s10080_s12 + $0x8] sm:$0xff] %v6434_v35   ;;  %3088 = vmatmul.mubr.bf16.gmra.mrb[176].mxu0 %v9590_v50  ;;  %v11077_v50 = vpack.i.bf16 %v9987_v24, %v9889_v58 }
 0x384   : > { %7001 = vst [vmem:[%s10080_s12 + $0x108] sm:$0xff] %v6754_v49   ;;  %3097 = vmatprep.mubr.bf16.mxu0 %v9597_v14 }
 0x385   : > { %7386 = vxpose.xlu0.b32.cont [4/16] %v11076_v8, 128  ;;  %v11084_v8 = vpack.i.bf16 %v10004_v5, %v9905_v15  ;;  %v11085_v15 = vld [vmem:[#allocation30_spill] sm:$0xff] }
 0x386   : > { %v10107_v11 = vpop.f32.mrb[136].mxu1  ;;  %v2829_v16 = vpop.f32.mrb[72].mxu0 }
 0x387   : > { %v10109_v30 = vpop.f32.mrb[137].mxu1  ;;  %v2831_v40 = vpop.f32.mrb[73].mxu0 }
 0x388   : > { %v10111_v61 = vpop.f32.mrb[138].mxu1  ;;  %v2833_v45 = vpop.f32.mrb[74].mxu0 }
 0x389   : > { %v6439_v34 = vpack.c.bf16 %v2833_v45, %v2829_v16  ;;  %7388 = vxpose.xlu0.b32.cont [5/16] %v11077_v50, 128  ;;  %v10116_v57 = vpop.f32.mrb[139].mxu1  ;;  %v2835_v14 = vpop.f32.mrb[75].mxu0 }
 0x38a   : > { %v6759_v22 = vpack.c.bf16 %v2835_v14, %v2831_v40 }
 0x38b   : > { %6938 = vst [vmem:[%s10080_s12 + $0x10] sm:$0xff] %v6439_v34   ;;  %3098 = vmatmul.mubr.bf16.gmra.mrb[180].mxu0 %v11078_v2 }
 0x38c   : > { %7002 = vst [vmem:[%s10080_s12 + $0x110] sm:$0xff] %v6759_v22   ;;  %3107 = vmatprep.mubr.bf16.mxu0 %v11079_v43 }
 0x38d   : > { %7390 = vxpose.xlu0.b32.cont [6/16] %v11080_v13, 128 }
 0x38e   : > { %v10125_v53 = vpop.f32.mrb[140].mxu1  ;;  %v2839_v58 = vpop.f32.mrb[76].mxu0 }
 0x38f   : > { %v10127_v24 = vpop.f32.mrb[141].mxu1  ;;  %v2841_v52 = vpop.f32.mrb[77].mxu0 }
 0x390   : > { %v10129_v41 = vpop.f32.mrb[142].mxu1  ;;  %v2843_v17 = vpop.f32.mrb[78].mxu0 }
 0x391   : > { %v6444_v20 = vpack.c.bf16 %v2843_v17, %v2839_v58  ;;  %7392 = vxpose.xlu0.b32.cont [7/16] %v11081_v27, 128  ;;  %v10134_v35 = vpop.f32.mrb[143].mxu1  ;;  %v2845_v6 = vpop.f32.mrb[79].mxu0 }
 0x392   : > { %v6764_v49 = vpack.c.bf16 %v2845_v6, %v2841_v52 }
 0x393   : > { %6939 = vst [vmem:[%s10080_s12 + $0x18] sm:$0xff] %v6444_v20   ;;  %3108 = vmatmul.mubr.bf16.gmra.mrb[184].mxu0 %v11082_v62 }
 0x394   : > { %7003 = vst [vmem:[%s10080_s12 + $0x118] sm:$0xff] %v6764_v49   ;;  %3117 = vmatprep.mubr.bf16.mxu0 %v11083_v42 }
 0x395   : > { %7394 = vxpose.xlu0.b32.cont [8/16] %v11084_v8, 128 }
 0x396   : > { %v10143_v16 = vpop.f32.mrb[144].mxu1  ;;  %v2849_v9 = vpop.f32.mrb[80].mxu0 }
 0x397   : > { %v10145_v56 = vpop.f32.mrb[145].mxu1  ;;  %v2851_v40 = vpop.f32.mrb[81].mxu0 }
 0x398   : > { %v10147_v45 = vpop.f32.mrb[146].mxu1  ;;  %v2853_v34 = vpop.f32.mrb[82].mxu0 }
 0x399   : > { %v6449_v50 = vpack.c.bf16 %v2853_v34, %v2849_v9  ;;  %7396 = vxpose.xlu0.b32.cont [9/16] %v7395_v3, 128  ;;  %v10152_v14 = vpop.f32.mrb[147].mxu1  ;;  %v2855_v22 = vpop.f32.mrb[83].mxu0 }
 0x39a   : > { %v6769_v2 = vpack.c.bf16 %v2855_v22, %v2851_v40 }
 0x39b   : > { %6940 = vst [vmem:[%s10080_s12 + $0x20] sm:$0xff] %v6449_v50   ;;  %3118 = vmatmul.mubr.bf16.gmra.mrb[188].mxu0 %v11085_v15 }
 0x39c   : > { %7004 = vst [vmem:[%s10080_s12 + $0x120] sm:$0xff] %v6769_v2  }
 0x39d   : > { %7398 = vxpose.xlu0.b32.cont [10/16] %v7397_v19, 128 }
 0x39e   : > { %v10160_v5 = vpop.f32.mrb[148].mxu1  ;;  %v2859_v43 = vpop.f32.mrb[84].mxu0 }
 0x39f   : > { %v10162_v13 = vpop.f32.mrb[149].mxu1  ;;  %v2861_v31 = vpop.f32.mrb[85].mxu0 }
 0x3a0   : > { %v10164_v32 = vpop.f32.mrb[150].mxu1  ;;  %v2863_v3 = vpop.f32.mrb[86].mxu0 }
 0x3a1   : > { %v6454_v58 = vpack.c.bf16 %v2863_v3, %v2859_v43  ;;  %7400 = vxpose.xlu0.b32.cont [11/16] %v7399_v47, 128  ;;  %v10169_v52 = vpop.f32.mrb[151].mxu1  ;;  %v2865_v17 = vpop.f32.mrb[87].mxu0 }
 0x3a2   : > { %v6774_v36 = vpack.c.bf16 %v2865_v17, %v2861_v31 }
 0x3a3   : > { %6941 = vst [vmem:[%s10080_s12 + $0x28] sm:$0xff] %v6454_v58  }
 0x3a4   : > { %7005 = vst [vmem:[%s10080_s12 + $0x128] sm:$0xff] %v6774_v36  }
 0x3a5   : > { %7402 = vxpose.xlu0.b32.cont [12/16] %v7401_v37, 128 }
 0x3a6   : > { %v10176_v55 = vpop.f32.mrb[152].mxu1  ;;  %v2869_v19 = vpop.f32.mrb[88].mxu0 }
 0x3a7   : > { %v10178_v20 = vpop.f32.mrb[153].mxu1  ;;  %v2871_v27 = vpop.f32.mrb[89].mxu0 }
 0x3a8   : > { %v10180_v1 = vpop.f32.mrb[154].mxu1  ;;  %v2873_v38 = vpop.f32.mrb[90].mxu0 }
 0x3a9   : > { %v6459_v47 = vpack.c.bf16 %v2873_v38, %v2869_v19  ;;  %7404 = vxpose.xlu0.b32.cont [13/16] %v7403_v4, 128  ;;  %v10185_v6 = vpop.f32.mrb[155].mxu1  ;;  %v2875_v49 = vpop.f32.mrb[91].mxu0 }
 0x3aa   : > { %v6779_v21 = vpack.c.bf16 %v2875_v49, %v2871_v27 }
 0x3ab   : > { %6942 = vst [vmem:[%s10080_s12 + $0x30] sm:$0xff] %v6459_v47  }
 0x3ac   : > { %7006 = vst [vmem:[%s10080_s12 + $0x130] sm:$0xff] %v6779_v21  }
 0x3ad   : > { %7406 = vxpose.xlu0.b32.cont [14/16] %v7405_v48, 128 }
 0x3ae   : > { %v10192_v28 = vpop.f32.mrb[156].mxu1  ;;  %v2879_v37 = vpop.f32.mrb[92].mxu0 }
 0x3af   : > { %v10194_v62 = vpop.f32.mrb[157].mxu1  ;;  %v2881_v42 = vpop.f32.mrb[93].mxu0 }
 0x3b0   : > { %v10196_v63 = vpop.f32.mrb[158].mxu1  ;;  %v2883_v25 = vpop.f32.mrb[94].mxu0 }
 0x3b1   : > { %v6464_v4 = vpack.c.bf16 %v2883_v25, %v2879_v37  ;;  %7408 = vxpose.xlu0.b32.cont [15/16] %v7407_v46, 128  ;;  %v10201_v8 = vpop.f32.mrb[159].mxu1  ;;  %v2885_v9 = vpop.f32.mrb[95].mxu0 }
 0x3b2   : > { %v6784_v40 = vpack.c.bf16 %v2885_v9, %v2881_v42 }
 0x3b3   : > { %6943 = vst [vmem:[%s10080_s12 + $0x38] sm:$0xff] %v6464_v4  }
 0x3b4   : > { %7007 = vst [vmem:[%s10080_s12 + $0x138] sm:$0xff] %v6784_v40  }
 0x3b5   : > { %7410 = vxpose.xlu0.b32.end [16/16] %v7409_v33, 128 }
 0x3b6   : > { %v2696_v29 = vpop.f32.mrb[160].mxu1  ;;  %v2889_v23 = vpop.f32.mrb[96].mxu0 }
 0x3b7   : > { %v7267_v48 = vpack.i.bf16 %v2696_v29, %v10068_v51  ;;  %v10209_v34 = vpop.f32.mrb[161].mxu1  ;;  %v2891_v26 = vpop.f32.mrb[97].mxu0 }
 0x3b8   : > { %v7491_v18 = vpack.i.bf16 %v10209_v34, %v10070_v44  ;;  %v2700_v46 = vpop.f32.mrb[162].mxu1  ;;  %v2893_v50 = vpop.f32.mrb[98].mxu0 }
 0x3b9   : > { %v7269_v22 = vpack.i.bf16 %v2700_v46, %v10072_v12  ;;  %v6469_v2 = vpack.c.bf16 %v2893_v50, %v2889_v23  ;;  %7268 = vxpose.xlu1.b32.start [1/16] %v7267_v48, 128  ;;  %v10214_v39 = vpop.f32.mrb[163].mxu1  ;;  %v2895_v54 = vpop.f32.mrb[99].mxu0 }
 0x3ba   : > { %v7493_v33 = vpack.i.bf16 %v10214_v39, %v10077_v60  ;;  %v6789_v15 = vpack.c.bf16 %v2895_v54, %v2891_v26  ;;  %v7187_v51 = vpop.trf.xlu0 }
 0x3bb   : > { %6944 = vst [vmem:[%s10080_s12 + $0x40] sm:$0xff] %v6469_v2   ;;  %v7191_v43 = vunpack.i.h.bf16 %v7187_v51  ;;  %v7188_v31 = vunpack.i.l.bf16 %v7187_v51 }
 0x3bc   : > { %7008 = vst [vmem:[%s10080_s12 + $0x140] sm:$0xff] %v6789_v15  }
 0x3bd   : > { %7270 = vxpose.xlu1.b32.cont [2/16] %v7269_v22, 128  ;;  %v6007_v17 = vpack.c.bf16 %v7191_v43, %v7188_v31 }
 0x3be   : > { %v2706_v3 = vpop.f32.mrb[164].mxu1  ;;  %v2899_v58 = vpop.f32.mrb[100].mxu0 }
 0x3bf   : > { %v7271_v12 = vpack.i.bf16 %v2706_v3, %v10089_v0  ;;  %v10221_v36 = vpop.f32.mrb[165].mxu1  ;;  %v2901_v19 = vpop.f32.mrb[101].mxu0  ;;  %3768 = vst [vmem:[%s10226_s14] sm:$0xff] %v6007_v17 }
 0x3c0   : > { %v7495_v27 = vpack.i.bf16 %v10221_v36, %v10091_v10  ;;  %v2710_v38 = vpop.f32.mrb[166].mxu1  ;;  %v2903_v47 = vpop.f32.mrb[102].mxu0 }
 0x3c1   : > { %v7273_v49 = vpack.i.bf16 %v2710_v38, %v10093_v59  ;;  %v6474_v21 = vpack.c.bf16 %v2903_v47, %v2899_v58  ;;  %7272 = vxpose.xlu1.b32.cont [3/16] %v7271_v12, 128  ;;  %v10230_v37 = vpop.f32.mrb[167].mxu1  ;;  %v2905_v0 = vpop.f32.mrb[103].mxu0 }
 0x3c2   : > { %v7497_v42 = vpack.i.bf16 %v10230_v37, %v10098_v7  ;;  %v6794_v25 = vpack.c.bf16 %v2905_v0, %v2901_v19  ;;  %v7192_v4 = vpop.trf.xlu0 }
 0x3c3   : > { %6945 = vst [vmem:[%s10080_s12 + $0x48] sm:$0xff] %v6474_v21   ;;  %v7196_v9 = vunpack.i.h.bf16 %v7192_v4  ;;  %v7193_v40 = vunpack.i.l.bf16 %v7192_v4 }
 0x3c4   : > { %7009 = vst [vmem:[%s10080_s12 + $0x148] sm:$0xff] %v6794_v25  }
 0x3c5   : > { %7274 = vxpose.xlu1.b32.cont [4/16] %v7273_v49, 128  ;;  %v6009_v29 = vpack.c.bf16 %v7196_v9, %v7193_v40 }
 0x3c6   : > { %v2716_v23 = vpop.f32.mrb[168].mxu1  ;;  %v2909_v48 = vpop.f32.mrb[104].mxu0 }
 0x3c7   : > { %v7275_v59 = vpack.i.bf16 %v2716_v23, %v10107_v11  ;;  %v10237_v26 = vpop.f32.mrb[169].mxu1  ;;  %v2911_v46 = vpop.f32.mrb[105].mxu0  ;;  %3770 = vst [vmem:[%s10226_s14 + $0x10] sm:$0xff] %v6009_v29 }
 0x3c8   : > { %v7499_v50 = vpack.i.bf16 %v10237_v26, %v10109_v30  ;;  %v2720_v22 = vpop.f32.mrb[170].mxu1  ;;  %v2913_v2 = vpop.f32.mrb[106].mxu0 }
 0x3c9   : > { %v7277_v54 = vpack.i.bf16 %v2720_v22, %v10111_v61  ;;  %v6479_v15 = vpack.c.bf16 %v2913_v2, %v2909_v48  ;;  %7276 = vxpose.xlu1.b32.cont [5/16] %v7275_v59, 128  ;;  %v10243_v51 = vpop.f32.mrb[171].mxu1  ;;  %v2915_v43 = vpop.f32.mrb[107].mxu0 }
 0x3ca   : > { %v7501_v11 = vpack.i.bf16 %v10243_v51, %v10116_v57  ;;  %v6799_v31 = vpack.c.bf16 %v2915_v43, %v2911_v46  ;;  %v7197_v3 = vpop.trf.xlu0 }
 0x3cb   : > { %6946 = vst [vmem:[%s10080_s12 + $0x50] sm:$0xff] %v6479_v15   ;;  %v7201_v58 = vunpack.i.h.bf16 %v7197_v3  ;;  %v7198_v17 = vunpack.i.l.bf16 %v7197_v3 }
 0x3cc   : > { %7010 = vst [vmem:[%s10080_s12 + $0x150] sm:$0xff] %v6799_v31  }
 0x3cd   : > { %7278 = vxpose.xlu1.b32.cont [6/16] %v7277_v54, 128  ;;  %v6011_v12 = vpack.c.bf16 %v7201_v58, %v7198_v17 }
 0x3ce   : > { %v2726_v19 = vpop.f32.mrb[172].mxu1  ;;  %v2919_v38 = vpop.f32.mrb[108].mxu0 }
 0x3cf   : > { %v7279_v61 = vpack.i.bf16 %v2726_v19, %v10125_v53  ;;  %v10250_v47 = vpop.f32.mrb[173].mxu1  ;;  %v2921_v49 = vpop.f32.mrb[109].mxu0  ;;  %3772 = vst [vmem:[%s10226_s14 + $0x20] sm:$0xff] %v6011_v12 }
 0x3d0   : > { %v7503_v21 = vpack.i.bf16 %v10250_v47, %v10127_v24  ;;  %v2730_v0 = vpop.f32.mrb[174].mxu1  ;;  %v2923_v25 = vpop.f32.mrb[110].mxu0 }
 0x3d1   : > { %v7281_v4 = vpack.i.bf16 %v2730_v0, %v10129_v41  ;;  %v6484_v9 = vpack.c.bf16 %v2923_v25, %v2919_v38  ;;  %7280 = vxpose.xlu1.b32.cont [7/16] %v7279_v61, 128  ;;  %v10256_v40 = vpop.f32.mrb[175].mxu1  ;;  %v2925_v29 = vpop.f32.mrb[111].mxu0 }
 0x3d2   : > { %v7505_v53 = vpack.i.bf16 %v10256_v40, %v10134_v35  ;;  %v6804_v23 = vpack.c.bf16 %v2925_v29, %v2921_v49  ;;  %v7202_v48 = vpop.trf.xlu0 }
 0x3d3   : > { %6947 = vst [vmem:[%s10080_s12 + $0x58] sm:$0xff] %v6484_v9   ;;  %v7206_v59 = vunpack.i.h.bf16 %v7202_v48  ;;  %v7203_v46 = vunpack.i.l.bf16 %v7202_v48 }
 0x3d4   : > { %7011 = vst [vmem:[%s10080_s12 + $0x158] sm:$0xff] %v6804_v23  }
 0x3d5   : > { %7282 = vxpose.xlu1.b32.cont [8/16] %v7281_v4, 128  ;;  %v6013_v22 = vpack.c.bf16 %v7206_v59, %v7203_v46 }
 0x3d6   : > { %v2736_v2 = vpop.f32.mrb[176].mxu1  ;;  %v2929_v54 = vpop.f32.mrb[112].mxu0 }
 0x3d7   : > { %v7283_v41 = vpack.i.bf16 %v2736_v2, %v10143_v16  ;;  %v10263_v15 = vpop.f32.mrb[177].mxu1  ;;  %v2931_v43 = vpop.f32.mrb[113].mxu0  ;;  %3774 = vst [vmem:[%s10226_s14 + $0x30] sm:$0xff] %v6013_v22 }
 0x3d8   : > { %v7507_v31 = vpack.i.bf16 %v10263_v15, %v10145_v56  ;;  %v2740_v3 = vpop.f32.mrb[178].mxu1  ;;  %v2933_v58 = vpop.f32.mrb[114].mxu0 }
 0x3d9   : > { %v7285_v17 = vpack.i.bf16 %v2740_v3, %v10147_v45  ;;  %v6489_v12 = vpack.c.bf16 %v2933_v58, %v2929_v54  ;;  %7284 = vxpose.xlu1.b32.cont [9/16] %v7283_v41, 128  ;;  %v10269_v19 = vpop.f32.mrb[179].mxu1  ;;  %v2935_v38 = vpop.f32.mrb[115].mxu0 }
 0x3da   : > { %v7509_v16 = vpack.i.bf16 %v10269_v19, %v10152_v14  ;;  %v6809_v61 = vpack.c.bf16 %v2935_v38, %v2931_v43  ;;  %v7207_v49 = vpop.trf.xlu0 }
 0x3db   : > { %6948 = vst [vmem:[%s10080_s12 + $0x60] sm:$0xff] %v6489_v12   ;;  %v7211_v0 = vunpack.i.h.bf16 %v7207_v49  ;;  %v7208_v25 = vunpack.i.l.bf16 %v7207_v49 }
 0x3dc   : > { %7012 = vst [vmem:[%s10080_s12 + $0x160] sm:$0xff] %v6809_v61  }
 0x3dd   : > { %7286 = vxpose.xlu1.b32.cont [10/16] %v7285_v17, 128  ;;  %v6015_v4 = vpack.c.bf16 %v7211_v0, %v7208_v25 }
 0x3de   : > { %v2746_v9 = vpop.f32.mrb[180].mxu1  ;;  %v2939_v29 = vpop.f32.mrb[116].mxu0 }
 0x3df   : > { %v7287_v45 = vpack.i.bf16 %v2746_v9, %v10160_v5  ;;  %v10276_v23 = vpop.f32.mrb[181].mxu1  ;;  %v2941_v48 = vpop.f32.mrb[117].mxu0  ;;  %3776 = vst [vmem:[%s10226_s14 + $0x40] sm:$0xff] %v6015_v4 }
 0x3e0   : > { %v7511_v59 = vpack.i.bf16 %v10276_v23, %v10162_v13  ;;  %v2750_v46 = vpop.f32.mrb[182].mxu1  ;;  %v2943_v22 = vpop.f32.mrb[118].mxu0 }
 0x3e1   : > { %v7289_v2 = vpack.i.bf16 %v2750_v46, %v10164_v32  ;;  %v6494_v54 = vpack.c.bf16 %v2943_v22, %v2939_v29  ;;  %7288 = vxpose.xlu1.b32.cont [11/16] %v7287_v45, 128  ;;  %v10282_v41 = vpop.f32.mrb[183].mxu1  ;;  %v2945_v43 = vpop.f32.mrb[119].mxu0 }
 0x3e2   : > { %v7513_v5 = vpack.i.bf16 %v10282_v41, %v10169_v52  ;;  %v6814_v3 = vpack.c.bf16 %v2945_v43, %v2941_v48  ;;  %v7212_v58 = vpop.trf.xlu0 }
 0x3e3   : > { %6949 = vst [vmem:[%s10080_s12 + $0x68] sm:$0xff] %v6494_v54   ;;  %v7216_v17 = vunpack.i.h.bf16 %v7212_v58  ;;  %v7213_v12 = vunpack.i.l.bf16 %v7212_v58 }
 0x3e4   : > { %7013 = vst [vmem:[%s10080_s12 + $0x168] sm:$0xff] %v6814_v3  }
 0x3e5   : > { %7290 = vxpose.xlu1.b32.cont [12/16] %v7289_v2, 128  ;;  %v6017_v38 = vpack.c.bf16 %v7216_v17, %v7213_v12 }
 0x3e6   : > { %v2756_v61 = vpop.f32.mrb[184].mxu1  ;;  %v2949_v49 = vpop.f32.mrb[120].mxu0 }
 0x3e7   : > { %v7291_v32 = vpack.i.bf16 %v2756_v61, %v10176_v55  ;;  %v10289_v0 = vpop.f32.mrb[185].mxu1  ;;  %v2951_v25 = vpop.f32.mrb[121].mxu0  ;;  %3778 = vst [vmem:[%s10226_s14 + $0x50] sm:$0xff] %v6017_v38 }
 0x3e8   : > { %v7515_v4 = vpack.i.bf16 %v10289_v0, %v10178_v20  ;;  %v2760_v9 = vpop.f32.mrb[186].mxu1  ;;  %v2953_v29 = vpop.f32.mrb[122].mxu0 }
 0x3e9   : > { %v7293_v45 = vpack.i.bf16 %v2760_v9, %v10180_v1  ;;  %v6499_v48 = vpack.c.bf16 %v2953_v29, %v2949_v49  ;;  %7292 = vxpose.xlu1.b32.cont [13/16] %v7291_v32, 128  ;;  %v10295_v46 = vpop.f32.mrb[187].mxu1  ;;  %v2955_v22 = vpop.f32.mrb[123].mxu0 }
 0x3ea   : > { %v7517_v55 = vpack.i.bf16 %v10295_v46, %v10185_v6  ;;  %v6819_v2 = vpack.c.bf16 %v2955_v22, %v2951_v25  ;;  %v7217_v54 = vpop.trf.xlu0 }
 0x3eb   : > { %6950 = vst [vmem:[%s10080_s12 + $0x70] sm:$0xff] %v6499_v48   ;;  %v7221_v43 = vunpack.i.h.bf16 %v7217_v54  ;;  %v7218_v3 = vunpack.i.l.bf16 %v7217_v54 }
 0x3ec   : > { %7014 = vst [vmem:[%s10080_s12 + $0x170] sm:$0xff] %v6819_v2  }
 0x3ed   : > { %7294 = vxpose.xlu1.b32.cont [14/16] %v7293_v45, 128  ;;  %v6019_v58 = vpack.c.bf16 %v7221_v43, %v7218_v3 }
 0x3ee   : > { %v2766_v17 = vpop.f32.mrb[188].mxu1  ;;  %v2959_v12 = vpop.f32.mrb[124].mxu0 }
 0x3ef   : > { %v7295_v1 = vpack.i.bf16 %v2766_v17, %v10192_v28  ;;  %v10302_v38 = vpop.f32.mrb[189].mxu1  ;;  %v2961_v61 = vpop.f32.mrb[125].mxu0  ;;  %3780 = vst [vmem:[%s10226_s14 + $0x60] sm:$0xff] %v6019_v58 }
 0x3f0   : > { %v7519_v49 = vpack.i.bf16 %v10302_v38, %v10194_v62  ;;  %v2770_v32 = vpop.f32.mrb[190].mxu1  ;;  %v2963_v25 = vpop.f32.mrb[126].mxu0 }
 0x3f1   : > { %v7297_v9 = vpack.i.bf16 %v2770_v32, %v10196_v63  ;;  %v6504_v29 = vpack.c.bf16 %v2963_v25, %v2959_v12  ;;  %7296 = vxpose.xlu1.b32.cont [15/16] %v7295_v1, 128  ;;  %v10308_v45 = vpop.f32.mrb[191].mxu1  ;;  %v2965_v48 = vpop.f32.mrb[127].mxu0 }
 0x3f2   : > { %v7521_v28 = vpack.i.bf16 %v10308_v45, %v10201_v8  ;;  %v6824_v22 = vpack.c.bf16 %v2965_v48, %v2961_v61  ;;  %v7222_v2 = vpop.trf.xlu0 }
 0x3f3   : > { %6951 = vst [vmem:[%s10080_s12 + $0x78] sm:$0xff] %v6504_v29   ;;  %v7226_v54 = vunpack.i.h.bf16 %v7222_v2  ;;  %v7223_v43 = vunpack.i.l.bf16 %v7222_v2 }
 0x3f4   : > { %7015 = vst [vmem:[%s10080_s12 + $0x178] sm:$0xff] %v6824_v22  }
 0x3f5   : > { %7298 = vxpose.xlu1.b32.end [16/16] %v7297_v9, 128  ;;  %v6021_v3 = vpack.c.bf16 %v7226_v54, %v7223_v43 }
 0x3f6   : > { %v2969_v63 = vpop.f32.mrb[128].mxu0  ;;  %v7227_v58 = vpop.trf.xlu0 }
 0x3f7   : > { %v2971_v17 = vpop.f32.mrb[129].mxu0  ;;  %3782 = vst [vmem:[%s10226_s14 + $0x70] sm:$0xff] %v6021_v3  ;;  %v7231_v12 = vunpack.i.h.bf16 %v7227_v58  ;;  %v7228_v1 = vunpack.i.l.bf16 %v7227_v58 }
 0x3f8   : > { %v2973_v32 = vpop.f32.mrb[130].mxu0 }
 0x3f9   : > { %v6509_v25 = vpack.c.bf16 %v2973_v32, %v2969_v63  ;;  %7492 = vxpose.xlu1.b32.start [1/16] %v7491_v18, 128  ;;  %v2975_v61 = vpop.f32.mrb[131].mxu0  ;;  %v6023_v29 = vpack.c.bf16 %v7231_v12, %v7228_v1 }
 0x3fa   : > { %v6829_v48 = vpack.c.bf16 %v2975_v61, %v2971_v17  ;;  %v7232_v9 = vpop.trf.xlu0 }
 0x3fb   : > { %6952 = vst [vmem:[%s10080_s12 + $0x80] sm:$0xff] %v6509_v25   ;;  %3784 = vst [vmem:[%s10226_s14 + $0x80] sm:$0xff] %v6023_v29  ;;  %v7236_v22 = vunpack.i.h.bf16 %v7232_v9  ;;  %v7233_v2 = vunpack.i.l.bf16 %v7232_v9 }
 0x3fc   : > { %7016 = vst [vmem:[%s10080_s12 + $0x180] sm:$0xff] %v6829_v48  }
 0x3fd   : > { %7494 = vxpose.xlu1.b32.cont [2/16] %v7493_v33, 128  ;;  %v6025_v54 = vpack.c.bf16 %v7236_v22, %v7233_v2 }
 0x3fe   : > { %v2979_v43 = vpop.f32.mrb[132].mxu0  ;;  %v7237_v44 = vpop.trf.xlu0 }
 0x3ff   : > { %v2981_v34 = vpop.f32.mrb[133].mxu0  ;;  %3786 = vst [vmem:[%s10226_s14 + $0x90] sm:$0xff] %v6025_v54  ;;  %v7241_v18 = vunpack.i.h.bf16 %v7237_v44  ;;  %v7238_v3 = vunpack.i.l.bf16 %v7237_v44 }
 0x400   : > { %v2983_v63 = vpop.f32.mrb[134].mxu0 }
 0x401   : > { %v6514_v58 = vpack.c.bf16 %v2983_v63, %v2979_v43  ;;  %7496 = vxpose.xlu1.b32.cont [3/16] %v7495_v27, 128  ;;  %v2985_v17 = vpop.f32.mrb[135].mxu0  ;;  %v6027_v60 = vpack.c.bf16 %v7241_v18, %v7238_v3 }
 0x402   : > { %v6834_v39 = vpack.c.bf16 %v2985_v17, %v2981_v34  ;;  %v7242_v33 = vpop.trf.xlu0 }
 0x403   : > { %6953 = vst [vmem:[%s10080_s12 + $0x88] sm:$0xff] %v6514_v58   ;;  %3788 = vst [vmem:[%s10226_s14 + $0xa0] sm:$0xff] %v6027_v60  ;;  %v7246_v12 = vunpack.i.h.bf16 %v7242_v33  ;;  %v7243_v1 = vunpack.i.l.bf16 %v7242_v33 }
 0x404   : > { %7017 = vst [vmem:[%s10080_s12 + $0x188] sm:$0xff] %v6834_v39  }
 0x405   : > { %7498 = vxpose.xlu1.b32.cont [4/16] %v7497_v42, 128  ;;  %v6029_v32 = vpack.c.bf16 %v7246_v12, %v7243_v1 }
 0x406   : > { %v2989_v25 = vpop.f32.mrb[136].mxu0  ;;  %v7247_v10 = vpop.trf.xlu0 }
 0x407   : > { %v2991_v36 = vpop.f32.mrb[137].mxu0  ;;  %3790 = vst [vmem:[%s10226_s14 + $0xb0] sm:$0xff] %v6029_v32  ;;  %v7251_v27 = vunpack.i.h.bf16 %v7247_v10  ;;  %v7248_v61 = vunpack.i.l.bf16 %v7247_v10 }
 0x408   : > { %v2993_v29 = vpop.f32.mrb[138].mxu0 }
 0x409   : > { %v6519_v48 = vpack.c.bf16 %v2993_v29, %v2989_v25  ;;  %7500 = vxpose.xlu1.b32.cont [5/16] %v7499_v50, 128  ;;  %v2995_v9 = vpop.f32.mrb[139].mxu0  ;;  %v6031_v7 = vpack.c.bf16 %v7251_v27, %v7248_v61 }
 0x40a   : > { %v6839_v37 = vpack.c.bf16 %v2995_v9, %v2991_v36  ;;  %v7252_v42 = vpop.trf.xlu0 }
 0x40b   : > { %6954 = vst [vmem:[%s10080_s12 + $0x90] sm:$0xff] %v6519_v48   ;;  %3792 = vst [vmem:[%s10226_s14 + $0xc0] sm:$0xff] %v6031_v7  ;;  %v7256_v22 = vunpack.i.h.bf16 %v7252_v42  ;;  %v7253_v2 = vunpack.i.l.bf16 %v7252_v42 }
 0x40c   : > { %7018 = vst [vmem:[%s10080_s12 + $0x190] sm:$0xff] %v6839_v37  }
 0x40d   : > { %7502 = vxpose.xlu1.b32.cont [6/16] %v7501_v11, 128  ;;  %v6033_v54 = vpack.c.bf16 %v7256_v22, %v7253_v2 }
 0x40e   : > { %v2999_v43 = vpop.f32.mrb[140].mxu0  ;;  %v7257_v30 = vpop.trf.xlu0 }
 0x40f   : > { %v3001_v26 = vpop.f32.mrb[141].mxu0  ;;  %3794 = vst [vmem:[%s10226_s14 + $0xd0] sm:$0xff] %v6033_v54  ;;  %v7261_v50 = vunpack.i.h.bf16 %v7257_v30  ;;  %v7258_v44 = vunpack.i.l.bf16 %v7257_v30 }
 0x410   : > { %v3003_v34 = vpop.f32.mrb[142].mxu0 }
 0x411   : > { %v6524_v18 = vpack.c.bf16 %v3003_v34, %v2999_v43  ;;  %7504 = vxpose.xlu1.b32.cont [7/16] %v7503_v21, 128  ;;  %v3005_v3 = vpop.f32.mrb[143].mxu0  ;;  %v6035_v57 = vpack.c.bf16 %v7261_v50, %v7258_v44 }
 0x412   : > { %v6844_v51 = vpack.c.bf16 %v3005_v3, %v3001_v26  ;;  %v7262_v11 = vpop.trf.xlu0 }
 0x413   : > { %6955 = vst [vmem:[%s10080_s12 + $0x98] sm:$0xff] %v6524_v18   ;;  %3796 = vst [vmem:[%s10226_s14 + $0xe0] sm:$0xff] %v6035_v57  ;;  %v7266_v63 = vunpack.i.h.bf16 %v7262_v11  ;;  %v7263_v58 = vunpack.i.l.bf16 %v7262_v11 }
 0x414   : > { %7019 = vst [vmem:[%s10080_s12 + $0x198] sm:$0xff] %v6844_v51  }
 0x415   : > { %7506 = vxpose.xlu1.b32.cont [8/16] %v7505_v53, 128  ;;  %v6037_v17 = vpack.c.bf16 %v7266_v63, %v7263_v58 }
 0x416   : > { %v3009_v60 = vpop.f32.mrb[144].mxu0  ;;  %v7411_v24 = vpop.trf.xlu0 }
 0x417   : > { %v3011_v47 = vpop.f32.mrb[145].mxu0  ;;  %3798 = vst [vmem:[%s10226_s14 + $0xf0] sm:$0xff] %v6037_v17  ;;  %v7415_v21 = vunpack.i.h.bf16 %v7411_v24  ;;  %v7412_v39 = vunpack.i.l.bf16 %v7411_v24 }
 0x418   : > { %v3013_v33 = vpop.f32.mrb[146].mxu0 }
 0x419   : > { %v6529_v12 = vpack.c.bf16 %v3013_v33, %v3009_v60  ;;  %7508 = vxpose.xlu1.b32.cont [9/16] %v7507_v31, 128  ;;  %v3015_v1 = vpop.f32.mrb[147].mxu0  ;;  %v6167_v35 = vpack.c.bf16 %v7415_v21, %v7412_v39 }
 0x41a   : > { %v6849_v40 = vpack.c.bf16 %v3015_v1, %v3011_v47  ;;  %v7416_v53 = vpop.trf.xlu0 }
 0x41b   : > { %6956 = vst [vmem:[%s10080_s12 + $0xa0] sm:$0xff] %v6529_v12   ;;  %5771 = vst [vmem:[%s10226_s14 + $0x100] sm:$0xff] %v6167_v35  ;;  %v7420_v32 = vunpack.i.h.bf16 %v7416_v53  ;;  %v7417_v25 = vunpack.i.l.bf16 %v7416_v53 }
 0x41c   : > { %7020 = vst [vmem:[%s10080_s12 + $0x1a0] sm:$0xff] %v6849_v40  }
 0x41d   : > { %7510 = vxpose.xlu1.b32.cont [10/16] %v7509_v16, 128  ;;  %v6169_v10 = vpack.c.bf16 %v7420_v32, %v7417_v25 }
 0x41e   : > { %v3019_v36 = vpop.f32.mrb[148].mxu0  ;;  %v7421_v56 = vpop.trf.xlu0 }
 0x41f   : > { %v3021_v15 = vpop.f32.mrb[149].mxu0  ;;  %5773 = vst [vmem:[%s10226_s14 + $0x110] sm:$0xff] %v6169_v10  ;;  %v7425_v31 = vunpack.i.h.bf16 %v7421_v56  ;;  %v7422_v27 = vunpack.i.l.bf16 %v7421_v56 }
 0x420   : > { %v3023_v61 = vpop.f32.mrb[150].mxu0 }
 0x421   : > { %v6534_v29 = vpack.c.bf16 %v3023_v61, %v3019_v36  ;;  %7512 = vxpose.xlu1.b32.cont [11/16] %v7511_v59, 128  ;;  %v3025_v48 = vpop.f32.mrb[151].mxu0  ;;  %v6171_v14 = vpack.c.bf16 %v7425_v31, %v7422_v27 }
 0x422   : > { %v6854_v19 = vpack.c.bf16 %v3025_v48, %v3021_v15  ;;  %v7426_v16 = vpop.trf.xlu0 }
 0x423   : > { %6957 = vst [vmem:[%s10080_s12 + $0xa8] sm:$0xff] %v6534_v29   ;;  %5775 = vst [vmem:[%s10226_s14 + $0x120] sm:$0xff] %v6171_v14  ;;  %v7430_v9 = vunpack.i.h.bf16 %v7426_v16  ;;  %v7427_v7 = vunpack.i.l.bf16 %v7426_v16 }
 0x424   : > { %7021 = vst [vmem:[%s10080_s12 + $0x1a8] sm:$0xff] %v6854_v19  }
 0x425   : > { %7514 = vxpose.xlu1.b32.cont [12/16] %v7513_v5, 128  ;;  %v6173_v37 = vpack.c.bf16 %v7430_v9, %v7427_v7 }
 0x426   : > { %v3029_v42 = vpop.f32.mrb[152].mxu0  ;;  %v7431_v13 = vpop.trf.xlu0 }
 0x427   : > { %v3031_v23 = vpop.f32.mrb[153].mxu0  ;;  %5777 = vst [vmem:[%s10226_s14 + $0x130] sm:$0xff] %v6173_v37  ;;  %v7435_v59 = vunpack.i.h.bf16 %v7431_v13  ;;  %v7432_v22 = vunpack.i.l.bf16 %v7431_v13 }
 0x428   : > { %v3033_v2 = vpop.f32.mrb[154].mxu0 }
 0x429   : > { %v6539_v54 = vpack.c.bf16 %v3033_v2, %v3029_v42  ;;  %7516 = vxpose.xlu1.b32.cont [13/16] %v7515_v4, 128  ;;  %v3035_v43 = vpop.f32.mrb[155].mxu0  ;;  %v6175_v52 = vpack.c.bf16 %v7435_v59, %v7432_v22 }
 0x42a   : > { %v6859_v41 = vpack.c.bf16 %v3035_v43, %v3031_v23  ;;  %v7436_v5 = vpop.trf.xlu0 }
 0x42b   : > { %6958 = vst [vmem:[%s10080_s12 + $0xb0] sm:$0xff] %v6539_v54   ;;  %5779 = vst [vmem:[%s10226_s14 + $0x140] sm:$0xff] %v6175_v52  ;;  %v7440_v30 = vunpack.i.h.bf16 %v7436_v5  ;;  %v7437_v26 = vunpack.i.l.bf16 %v7436_v5 }
 0x42c   : > { %7022 = vst [vmem:[%s10080_s12 + $0x1b0] sm:$0xff] %v6859_v41  }
 0x42d   : > { %7518 = vxpose.xlu1.b32.cont [14/16] %v7517_v55, 128  ;;  %v6177_v50 = vpack.c.bf16 %v7440_v30, %v7437_v26 }
 0x42e   : > { %v3039_v44 = vpop.f32.mrb[156].mxu0  ;;  %v7441_v20 = vpop.trf.xlu0 }
 0x42f   : > { %v3041_v0 = vpop.f32.mrb[157].mxu0  ;;  %5781 = vst [vmem:[%s10226_s14 + $0x150] sm:$0xff] %v6177_v50  ;;  %v7445_v4 = vunpack.i.h.bf16 %v7441_v20  ;;  %v7442_v34 = vunpack.i.l.bf16 %v7441_v20 }
 0x430   : > { %v3043_v18 = vpop.f32.mrb[158].mxu0 }
 0x431   : > { %v6544_v3 = vpack.c.bf16 %v3043_v18, %v3039_v44  ;;  %7520 = vxpose.xlu1.b32.cont [15/16] %v7519_v49, 128  ;;  %v3045_v57 = vpop.f32.mrb[159].mxu0  ;;  %v6179_v6 = vpack.c.bf16 %v7445_v4, %v7442_v34 }
 0x432   : > { %v6864_v46 = vpack.c.bf16 %v3045_v57, %v3041_v0  ;;  %v7446_v55 = vpop.trf.xlu0 }
 0x433   : > { %6959 = vst [vmem:[%s10080_s12 + $0xb8] sm:$0xff] %v6544_v3   ;;  %5783 = vst [vmem:[%s10226_s14 + $0x160] sm:$0xff] %v6179_v6  ;;  %v7450_v51 = vunpack.i.h.bf16 %v7446_v55  ;;  %v7447_v11 = vunpack.i.l.bf16 %v7446_v55 }
 0x434   : > { %7023 = vst [vmem:[%s10080_s12 + $0x1b8] sm:$0xff] %v6864_v46  }
 0x435   : > { %7522 = vxpose.xlu1.b32.end [16/16] %v7521_v28, 128  ;;  %v6181_v63 = vpack.c.bf16 %v7450_v51, %v7447_v11 }
 0x436   : > { %v3049_v58 = vpop.f32.mrb[160].mxu0  ;;  %v7451_v62 = vpop.trf.xlu0 }
 0x437   : > { %v3051_v38 = vpop.f32.mrb[161].mxu0  ;;  %5785 = vst [vmem:[%s10226_s14 + $0x170] sm:$0xff] %v6181_v63  ;;  %v7455_v49 = vunpack.i.h.bf16 %v7451_v62  ;;  %v7452_v17 = vunpack.i.l.bf16 %v7451_v62 }
 0x438   : > { %v3053_v60 = vpop.f32.mrb[162].mxu0 }
 0x439   : > { %v6549_v24 = vpack.c.bf16 %v3053_v60, %v3049_v58  ;;  %v7299_v47 = vpop.trf.xlu1  ;;  %v3055_v21 = vpop.f32.mrb[163].mxu0  ;;  %v6183_v39 = vpack.c.bf16 %v7455_v49, %v7452_v17 }
 0x43a   : > { %v7303_v33 = vunpack.i.h.bf16 %v7299_v47  ;;  %v7300_v8 = vunpack.i.l.bf16 %v7299_v47  ;;  %v7456_v45 = vpop.trf.xlu0  ;;  %v6869_v28 = vpack.c.bf16 %v3055_v21, %v3051_v38 }
 0x43b   : > { %6960 = vst [vmem:[%s10080_s12 + $0xc0] sm:$0xff] %v6549_v24   ;;  %5787 = vst [vmem:[%s10226_s14 + $0x180] sm:$0xff] %v6183_v39  ;;  %v7460_v12 = vunpack.i.h.bf16 %v7456_v45  ;;  %v7457_v35 = vunpack.i.l.bf16 %v7456_v45 }
 0x43c   : > { %v6008_v1 = vpack.c.bf16 %v7303_v33, %v7300_v8  ;;  %7024 = vst [vmem:[%s10080_s12 + $0x1c0] sm:$0xff] %v6869_v28  }
 0x43d   : > { %v7304_v40 = vpop.trf.xlu1  ;;  %v6185_v56 = vpack.c.bf16 %v7460_v12, %v7457_v35 }
 0x43e   : > { %3769 = vst [vmem:[%s10226_s14 + $0x8] sm:$0xff] %v6008_v1  ;;  %v7308_v53 = vunpack.i.h.bf16 %v7304_v40  ;;  %v7305_v32 = vunpack.i.l.bf16 %v7304_v40  ;;  %v3059_v25 = vpop.f32.mrb[164].mxu0  ;;  %v7461_v10 = vpop.trf.xlu0 }
 0x43f   : > { %v3061_v36 = vpop.f32.mrb[165].mxu0  ;;  %v7465_v15 = vunpack.i.h.bf16 %v7461_v10  ;;  %v7462_v61 = vunpack.i.l.bf16 %v7461_v10  ;;  %5789 = vst [vmem:[%s10226_s14 + $0x190] sm:$0xff] %v6185_v56 }
 0x440   : > { %v6010_v31 = vpack.c.bf16 %v7308_v53, %v7305_v32  ;;  %v3063_v27 = vpop.f32.mrb[166].mxu0 }
 0x441   : > { %v6554_v29 = vpack.c.bf16 %v3063_v27, %v3059_v25  ;;  %v7309_v48 = vpop.trf.xlu1  ;;  %v3065_v14 = vpop.f32.mrb[167].mxu0 }
 0x442   : > { %3771 = vst [vmem:[%s10226_s14 + $0x18] sm:$0xff] %v6010_v31  ;;  %v7313_v19 = vunpack.i.h.bf16 %v7309_v48  ;;  %v7310_v16 = vunpack.i.l.bf16 %v7309_v48  ;;  %v7466_v9 = vpop.trf.xlu0 }
 0x443   : > { %7974 = shalt.err (!%p7971_p9)
}
 0x444   : > { %s7975_s23 = scalar_lea.hbm %s10406_s9, 8192  ;;  %s7979_s7 = scalar_lea.hbm %s10585_s2, 16384 }
 0x445   : > { %p7976_p1 = scmp.ne.s32.totalorder %s10406_s9, %s7975_s23  ;;  %p7980_p7 = scmp.lt.u32.totalorder %s10406_s9, %s10585_s2 }
 0x446   : > { %p7981_p13 = scmp.lt.u32.totalorder %s7979_s7, %s7975_s23  ;;  %p7983_p6 = scmp.lt.u32.totalorder %s7975_s23, %s10406_s9 }
 0x447   : > { %p7977_p2 = pnand %p7976_p1, %p8241_p10 }
 0x448   : > { %p7982_p4 = por %p7981_p13, %p7980_p7 }
 0x449   : > { %p7978_p3 = pneg %p7977_p2 }
 0x44a   : > { %p7984_p8 = por %p7983_p6, %p7982_p4 }
 0x44c   : > { %p7985_p12 = pnand %p7984_p8, %p7978_p3 }
 0x44e   : > { %7988 = shalt.err (!%p7985_p12)
}
 0x44f   : > { %s8116_s5 = smov 64   ;;  %s8117_s13 = smov 4   ;;  %6961 = vst [vmem:[%s10080_s12 + $0xc8] sm:$0xff] %v6554_v29   ;;  %v6874_v7 = vpack.c.bf16 %v3065_v14, %v3061_v36  ;;  %v6187_v37 = vpack.c.bf16 %v7465_v15, %v7462_v61  ;;  %v7470_v42 = vunpack.i.h.bf16 %v7466_v9  ;;  %v6012_v13 = vpack.c.bf16 %v7313_v19, %v7310_v16  ;;  %v7314_v59 = vpop.trf.xlu1  ;;  %v3069_v54 = vpop.f32.mrb[168].mxu0 }
 0x450   : > { %7070 = dma.vmem_to_hbm [thread:$0]  (%p8241_p10), %s10409_s18, 8192, %s10406_s9, %s5116_s28, %s8116_s5, %s8116_s5, %s8117_s13   ;;  %v7467_v23 = vunpack.i.l.bf16 %v7466_v9  ;;  %v7318_v22 = vunpack.i.h.bf16 %v7314_v59  ;;  %v7315_v2 = vunpack.i.l.bf16 %v7314_v59  ;;  %v7471_v43 = vpop.trf.xlu0  ;;  %v3071_v52 = vpop.f32.mrb[169].mxu0 }
 0x451   : > { %7025 = vst [vmem:[%s10080_s12 + $0x1c8] sm:$0xff] %v6874_v7   ;;  %5791 = vst [vmem:[%s10226_s14 + $0x1a0] sm:$0xff] %v6187_v37  ;;  %v7475_v5 = vunpack.i.h.bf16 %v7471_v43  ;;  %v3073_v26 = vpop.f32.mrb[170].mxu0  ;;  %v7472_v50 = vunpack.i.l.bf16 %v7471_v43  ;;  %s5120_s10 = sand.u32 1, %s8178_s21   ;;  %s5159_s9 = sshll.u32 %s10226_s14, 4  ;;  %s10498_s9 = int_to_ptr.vmem [resolvable:$true] %s5159_s9 }
 0x452   : > { %3773 = vst [vmem:[%s10226_s14 + $0x28] sm:$0xff] %v6012_v13  ;;  %v6189_v41 = vpack.c.bf16 %v7470_v42, %v7467_v23  ;;  %v6014_v30 = vpack.c.bf16 %v7318_v22, %v7315_v2  ;;  %v6559_v44 = vpack.c.bf16 %v3073_v26, %v3069_v54  ;;  %v3075_v0 = vpop.f32.mrb[171].mxu0  ;;  %s5177_s18 = sshll.u32 %s10080_s12, 4  ;;  %s10496_s25 = scalar_lea.hbm %s10586_s3, %s10398_s26  ;;  %s10506_s18 = int_to_ptr.vmem [resolvable:$true] %s5177_s18 }
 0x453   : > { %v7319_v20 = vpop.trf.xlu1  ;;  %v6879_v3 = vpack.c.bf16 %v3075_v0, %v3071_v52  ;;  %v6191_v57 = vpack.c.bf16 %v7475_v5, %v7472_v50  ;;  %v3079_v58 = vpop.f32.mrb[172].mxu0  ;;  %s10504_s21 = scalar_lea.hbm %s10587_s4, %s10398_s26  ;;  %s7989_s11 = scalar_lea.vmem %s10498_s9, 8192 }
 0x454   : > { %5793 = vst [vmem:[%s10226_s14 + $0x1b0] sm:$0xff] %v6189_v41  ;;  %3775 = vst [vmem:[%s10226_s14 + $0x38] sm:$0xff] %v6014_v30  ;;  %v7323_v4 = vunpack.i.h.bf16 %v7319_v20  ;;  %v7320_v34 = vunpack.i.l.bf16 %v7319_v20  ;;  %v7476_v18 = vpop.trf.xlu0  ;;  %v3081_v38 = vpop.f32.mrb[173].mxu0  ;;  %p7990_p11 = scmp.ne.s32.totalorder %s10498_s9, %s7989_s11  ;;  %s8118_s27 = smov [#allocation8]  }
 0x455   : > { %6962 = vst [vmem:[%s10080_s12 + $0xd0] sm:$0xff] %v6559_v44   ;;  %v7480_v6 = vunpack.i.h.bf16 %v7476_v18  ;;  %v7477_v55 = vunpack.i.l.bf16 %v7476_v18  ;;  %7026 = vst [vmem:[%s10080_s12 + $0x1d0] sm:$0xff] %v6879_v3   ;;  %v3083_v24 = vpop.f32.mrb[174].mxu0  ;;  %s7993_s28 = sshll.u32 %s8118_s27, 4  ;;  %s7994_s28 = int_to_ptr.vmem [resolvable:$false] %s7993_s28 }
 0x456   : > { %v6016_v46 = vpack.c.bf16 %v7323_v4, %v7320_v34  ;;  %5795 = vst [vmem:[%s10226_s14 + $0x1c0] sm:$0xff] %v6191_v57  ;;  %v6564_v21 = vpack.c.bf16 %v3083_v24, %v3079_v58  ;;  %v3085_v33 = vpop.f32.mrb[175].mxu0  ;;  %p7991_p0 = pnand %p7990_p11, %p8241_p10  ;;  %s7995_s23 = scalar_lea.vmem %s7994_s28, 16384 }
 0x457   : > { %v7324_v51 = vpop.trf.xlu1  ;;  %v6193_v49 = vpack.c.bf16 %v7480_v6, %v7477_v55  ;;  %v6884_v12 = vpack.c.bf16 %v3085_v33, %v3081_v38  ;;  %v3089_v36 = vpop.f32.mrb[176].mxu0  ;;  %p7996_p9 = scmp.lt.s32.totalorder %s10498_s9, %s7994_s28  ;;  %p7997_p1 = scmp.lt.s32.totalorder %s7995_s23, %s7989_s11 }
 0x458   : > { %3777 = vst [vmem:[%s10226_s14 + $0x48] sm:$0xff] %v6016_v46  ;;  %v7328_v11 = vunpack.i.h.bf16 %v7324_v51  ;;  %v7325_v63 = vunpack.i.l.bf16 %v7324_v51  ;;  %v7481_v62 = vpop.trf.xlu0  ;;  %6963 = vst [vmem:[%s10080_s12 + $0xd8] sm:$0xff] %v6564_v21   ;;  %v3091_v56 = vpop.f32.mrb[177].mxu0  ;;  %p7992_p5 = pneg %p7991_p0 }
 0x459   : > { %v7485_v17 = vunpack.i.h.bf16 %v7481_v62  ;;  %v7482_v47 = vunpack.i.l.bf16 %v7481_v62  ;;  %5797 = vst [vmem:[%s10226_s14 + $0x1d0] sm:$0xff] %v6193_v49  ;;  %7027 = vst [vmem:[%s10080_s12 + $0x1d8] sm:$0xff] %v6884_v12   ;;  %v3093_v27 = vpop.f32.mrb[178].mxu0  ;;  %p7998_p2 = por %p7997_p1, %p7996_p9 }
 0x45a   : > { %v6018_v60 = vpack.c.bf16 %v7328_v11, %v7325_v63  ;;  %v6569_v61 = vpack.c.bf16 %v3093_v27, %v3089_v36  ;;  %v3095_v48 = vpop.f32.mrb[179].mxu0 }
 0x45b   : > { %v7329_v39 = vpop.trf.xlu1  ;;  %v6195_v1 = vpack.c.bf16 %v7485_v17, %v7482_v47  ;;  %v6889_v16 = vpack.c.bf16 %v3095_v48, %v3091_v56  ;;  %p7999_p3 = pnand %p7998_p2, %p7992_p5 }
 0x45c   : > { %3779 = vst [vmem:[%s10226_s14 + $0x58] sm:$0xff] %v6018_v60  ;;  %v7333_v8 = vunpack.i.h.bf16 %v7329_v39  ;;  %v7330_v45 = vunpack.i.l.bf16 %v7329_v39  ;;  %v7486_v28 = vpop.trf.xlu0  ;;  %6964 = vst [vmem:[%s10080_s12 + $0xe0] sm:$0xff] %v6569_v61  }
 0x45d   : > { %v7490_v35 = vunpack.i.h.bf16 %v7486_v28  ;;  %v7487_v53 = vunpack.i.l.bf16 %v7486_v28  ;;  %5799 = vst [vmem:[%s10226_s14 + $0x1e0] sm:$0xff] %v6195_v1  ;;  %7028 = vst [vmem:[%s10080_s12 + $0x1e0] sm:$0xff] %v6889_v16  }
 0x45e   : > { %v6020_v40 = vpack.c.bf16 %v7333_v8, %v7330_v45  ;;  %v3099_v13 = vpop.f32.mrb[180].mxu0 }
 0x45f   : > { %v7334_v32 = vpop.trf.xlu1  ;;  %v6197_v15 = vpack.c.bf16 %v7490_v35, %v7487_v53  ;;  %v3101_v23 = vpop.f32.mrb[181].mxu0 }
 0x460   : > { %3781 = vst [vmem:[%s10226_s14 + $0x68] sm:$0xff] %v6020_v40  ;;  %v7338_v25 = vunpack.i.h.bf16 %v7334_v32  ;;  %v7335_v10 = vunpack.i.l.bf16 %v7334_v32  ;;  %v3103_v22 = vpop.f32.mrb[182].mxu0 }
 0x461   : > { %5801 = vst [vmem:[%s10226_s14 + $0x1f0] sm:$0xff] %v6197_v15  ;;  %v6574_v2 = vpack.c.bf16 %v3103_v22, %v3099_v13  ;;  %v3105_v43 = vpop.f32.mrb[183].mxu0 }
 0x462   : > { %v6022_v31 = vpack.c.bf16 %v7338_v25, %v7335_v10  ;;  %v6894_v5 = vpack.c.bf16 %v3105_v43, %v3101_v23 }
 0x463   : > { %v7339_v29 = vpop.trf.xlu1  ;;  %6965 = vst [vmem:[%s10080_s12 + $0xe8] sm:$0xff] %v6574_v2  }
 0x464   : > { %3783 = vst [vmem:[%s10226_s14 + $0x78] sm:$0xff] %v6022_v31  ;;  %v7343_v14 = vunpack.i.h.bf16 %v7339_v29  ;;  %v7340_v19 = vunpack.i.l.bf16 %v7339_v29  ;;  %7029 = vst [vmem:[%s10080_s12 + $0x1e8] sm:$0xff] %v6894_v5  }
 0x466   : > { %v6024_v9 = vpack.c.bf16 %v7343_v14, %v7340_v19  ;;  %v3109_v20 = vpop.f32.mrb[184].mxu0 }
 0x467   : > { %v7344_v7 = vpop.trf.xlu1  ;;  %v3111_v0 = vpop.f32.mrb[185].mxu0 }
 0x468   : > { %3785 = vst [vmem:[%s10226_s14 + $0x88] sm:$0xff] %v6024_v9  ;;  %v7348_v37 = vunpack.i.h.bf16 %v7344_v7  ;;  %v7345_v42 = vunpack.i.l.bf16 %v7344_v7  ;;  %v3113_v34 = vpop.f32.mrb[186].mxu0 }
 0x469   : > { %v6579_v18 = vpack.c.bf16 %v3113_v34, %v3109_v20  ;;  %v3115_v57 = vpop.f32.mrb[187].mxu0 }
 0x46a   : > { %v6026_v59 = vpack.c.bf16 %v7348_v37, %v7345_v42  ;;  %v6899_v55 = vpack.c.bf16 %v3115_v57, %v3111_v0 }
 0x46b   : > { %v7349_v54 = vpop.trf.xlu1  ;;  %6966 = vst [vmem:[%s10080_s12 + $0xf0] sm:$0xff] %v6579_v18  }
 0x46c   : > { %3787 = vst [vmem:[%s10226_s14 + $0x98] sm:$0xff] %v6026_v59  ;;  %v7353_v52 = vunpack.i.h.bf16 %v7349_v54  ;;  %v7350_v41 = vunpack.i.l.bf16 %v7349_v54  ;;  %7030 = vst [vmem:[%s10080_s12 + $0x1f0] sm:$0xff] %v6899_v55  }
 0x46e   : > { %v6028_v30 = vpack.c.bf16 %v7353_v52, %v7350_v41  ;;  %v3119_v62 = vpop.f32.mrb[188].mxu0 }
 0x46f   : > { %v7354_v26 = vpop.trf.xlu1  ;;  %v3121_v38 = vpop.f32.mrb[189].mxu0 }
 0x470   : > { %3789 = vst [vmem:[%s10226_s14 + $0xa8] sm:$0xff] %v6028_v30  ;;  %v7358_v50 = vunpack.i.h.bf16 %v7354_v26  ;;  %v7355_v44 = vunpack.i.l.bf16 %v7354_v26  ;;  %v3123_v17 = vpop.f32.mrb[190].mxu0 }
 0x471   : > { %v6584_v60 = vpack.c.bf16 %v3123_v17, %v3119_v62  ;;  %v3125_v47 = vpop.f32.mrb[191].mxu0 }
 0x472   : > { %v6030_v4 = vpack.c.bf16 %v7358_v50, %v7355_v44  ;;  %v6904_v33 = vpack.c.bf16 %v3125_v47, %v3121_v38 }
 0x473   : > { %v7359_v3 = vpop.trf.xlu1  ;;  %6967 = vst [vmem:[%s10080_s12 + $0xf8] sm:$0xff] %v6584_v60  }
 0x474   : > { %3791 = vst [vmem:[%s10226_s14 + $0xb8] sm:$0xff] %v6030_v4  ;;  %v7363_v6 = vunpack.i.h.bf16 %v7359_v3  ;;  %v7360_v46 = vunpack.i.l.bf16 %v7359_v3  ;;  %7031 = vst [vmem:[%s10080_s12 + $0x1f8] sm:$0xff] %v6904_v33   ;;  %s10509_s12 = scalar_lea.sflag [#allocation9], %s5120_s10 }
 0x476   : > { %v6032_v51 = vpack.c.bf16 %v7363_v6, %v7360_v46 }
 0x477   : > { %v7364_v11 = vpop.trf.xlu1 }
 0x478   : > { %3793 = vst [vmem:[%s10226_s14 + $0xc8] sm:$0xff] %v6032_v51  ;;  %v7368_v63 = vunpack.i.h.bf16 %v7364_v11  ;;  %v7365_v58 = vunpack.i.l.bf16 %v7364_v11 }
 0x47a   : > { %v6034_v49 = vpack.c.bf16 %v7368_v63, %v7365_v58 }
 0x47b   : > { %v7369_v24 = vpop.trf.xlu1 }
 0x47c   : > { %3795 = vst [vmem:[%s10226_s14 + $0xd8] sm:$0xff] %v6034_v49  ;;  %v7373_v21 = vunpack.i.h.bf16 %v7369_v24  ;;  %v7370_v39 = vunpack.i.l.bf16 %v7369_v24 }
 0x47e   : > { %v6036_v8 = vpack.c.bf16 %v7373_v21, %v7370_v39 }
 0x47f   : > { %v7374_v45 = vpop.trf.xlu1 }
 0x480   : > { %3797 = vst [vmem:[%s10226_s14 + $0xe8] sm:$0xff] %v6036_v8  ;;  %v7378_v28 = vunpack.i.h.bf16 %v7374_v45  ;;  %v7375_v12 = vunpack.i.l.bf16 %v7374_v45 }
 0x482   : > { %v6038_v1 = vpack.c.bf16 %v7378_v28, %v7375_v12 }
 0x483   : > { %v7523_v35 = vpop.trf.xlu1 }
 0x484   : > { %3799 = vst [vmem:[%s10226_s14 + $0xf8] sm:$0xff] %v6038_v1  ;;  %v7527_v40 = vunpack.i.h.bf16 %v7523_v35  ;;  %v7524_v53 = vunpack.i.l.bf16 %v7523_v35 }
 0x486   : > { %v6168_v32 = vpack.c.bf16 %v7527_v40, %v7524_v53 }
 0x487   : > { %v7528_v25 = vpop.trf.xlu1 }
 0x488   : > { %5772 = vst [vmem:[%s10226_s14 + $0x108] sm:$0xff] %v6168_v32  ;;  %v7532_v10 = vunpack.i.h.bf16 %v7528_v25  ;;  %v7529_v36 = vunpack.i.l.bf16 %v7528_v25 }
 0x48a   : > { %v6170_v56 = vpack.c.bf16 %v7532_v10, %v7529_v36 }
 0x48b   : > { %v7533_v15 = vpop.trf.xlu1 }
 0x48c   : > { %5774 = vst [vmem:[%s10226_s14 + $0x118] sm:$0xff] %v6170_v56  ;;  %v7537_v31 = vunpack.i.h.bf16 %v7533_v15  ;;  %v7534_v27 = vunpack.i.l.bf16 %v7533_v15 }
 0x48e   : > { %v6172_v61 = vpack.c.bf16 %v7537_v31, %v7534_v27 }
 0x48f   : > { %v7538_v29 = vpop.trf.xlu1 }
 0x490   : > { %5776 = vst [vmem:[%s10226_s14 + $0x128] sm:$0xff] %v6172_v61  ;;  %v7542_v48 = vunpack.i.h.bf16 %v7538_v29  ;;  %v7539_v14 = vunpack.i.l.bf16 %v7538_v29 }
 0x492   : > { %v6174_v19 = vpack.c.bf16 %v7542_v48, %v7539_v14 }
 0x493   : > { %v7543_v16 = vpop.trf.xlu1 }
 0x494   : > { %5778 = vst [vmem:[%s10226_s14 + $0x138] sm:$0xff] %v6174_v19  ;;  %v7547_v9 = vunpack.i.h.bf16 %v7543_v16  ;;  %v7544_v7 = vunpack.i.l.bf16 %v7543_v16 }
 0x496   : > { %v6176_v37 = vpack.c.bf16 %v7547_v9, %v7544_v7 }
 0x497   : > { %v7548_v42 = vpop.trf.xlu1 }
 0x498   : > { %5780 = vst [vmem:[%s10226_s14 + $0x148] sm:$0xff] %v6176_v37  ;;  %v7552_v13 = vunpack.i.h.bf16 %v7548_v42  ;;  %v7549_v23 = vunpack.i.l.bf16 %v7548_v42 }
 0x49a   : > { %v6178_v59 = vpack.c.bf16 %v7552_v13, %v7549_v23 }
 0x49b   : > { %v7553_v22 = vpop.trf.xlu1 }
 0x49c   : > { %5782 = vst [vmem:[%s10226_s14 + $0x158] sm:$0xff] %v6178_v59  ;;  %v7557_v2 = vunpack.i.h.bf16 %v7553_v22  ;;  %v7554_v54 = vunpack.i.l.bf16 %v7553_v22 }
 0x49e   : > { %v6180_v43 = vpack.c.bf16 %v7557_v2, %v7554_v54 }
 0x49f   : > { %v7558_v52 = vpop.trf.xlu1 }
 0x4a0   : > { %5784 = vst [vmem:[%s10226_s14 + $0x168] sm:$0xff] %v6180_v43  ;;  %v7562_v41 = vunpack.i.h.bf16 %v7558_v52  ;;  %v7559_v5 = vunpack.i.l.bf16 %v7558_v52 }
 0x4a2   : > { %v6182_v30 = vpack.c.bf16 %v7562_v41, %v7559_v5 }
 0x4a3   : > { %v7563_v26 = vpop.trf.xlu1 }
 0x4a4   : > { %5786 = vst [vmem:[%s10226_s14 + $0x178] sm:$0xff] %v6182_v30  ;;  %v7567_v50 = vunpack.i.h.bf16 %v7563_v26  ;;  %v7564_v44 = vunpack.i.l.bf16 %v7563_v26 }
 0x4a6   : > { %v6184_v20 = vpack.c.bf16 %v7567_v50, %v7564_v44 }
 0x4a7   : > { %v7568_v0 = vpop.trf.xlu1 }
 0x4a8   : > { %5788 = vst [vmem:[%s10226_s14 + $0x188] sm:$0xff] %v6184_v20  ;;  %v7572_v4 = vunpack.i.h.bf16 %v7568_v0  ;;  %v7569_v34 = vunpack.i.l.bf16 %v7568_v0 }
 0x4aa   : > { %v6186_v18 = vpack.c.bf16 %v7572_v4, %v7569_v34 }
 0x4ab   : > { %v7573_v3 = vpop.trf.xlu1 }
 0x4ac   : > { %5790 = vst [vmem:[%s10226_s14 + $0x198] sm:$0xff] %v6186_v18  ;;  %v7577_v57 = vunpack.i.h.bf16 %v7573_v3  ;;  %v7574_v6 = vunpack.i.l.bf16 %v7573_v3 }
 0x4ae   : > { %v6188_v46 = vpack.c.bf16 %v7577_v57, %v7574_v6 }
 0x4af   : > { %v7578_v55 = vpop.trf.xlu1 }
 0x4b0   : > { %5792 = vst [vmem:[%s10226_s14 + $0x1a8] sm:$0xff] %v6188_v46  ;;  %v7582_v51 = vunpack.i.h.bf16 %v7578_v55  ;;  %v7579_v11 = vunpack.i.l.bf16 %v7578_v55 }
 0x4b2   : > { %v6190_v63 = vpack.c.bf16 %v7582_v51, %v7579_v11 }
 0x4b3   : > { %v7583_v58 = vpop.trf.xlu1 }
 0x4b4   : > { %5794 = vst [vmem:[%s10226_s14 + $0x1b8] sm:$0xff] %v6190_v63  ;;  %v7587_v62 = vunpack.i.h.bf16 %v7583_v58  ;;  %v7584_v38 = vunpack.i.l.bf16 %v7583_v58 }
 0x4b6   : > { %v6192_v49 = vpack.c.bf16 %v7587_v62, %v7584_v38 }
 0x4b7   : > { %v7588_v17 = vpop.trf.xlu1 }
 0x4b8   : > { %5796 = vst [vmem:[%s10226_s14 + $0x1c8] sm:$0xff] %v6192_v49  ;;  %v7592_v60 = vunpack.i.h.bf16 %v7588_v17  ;;  %v7589_v24 = vunpack.i.l.bf16 %v7588_v17 }
 0x4ba   : > { %v6194_v47 = vpack.c.bf16 %v7592_v60, %v7589_v24 }
 0x4bb   : > { %v7593_v21 = vpop.trf.xlu1 }
 0x4bc   : > { %5798 = vst [vmem:[%s10226_s14 + $0x1d8] sm:$0xff] %v6194_v47  ;;  %v7597_v39 = vunpack.i.h.bf16 %v7593_v21  ;;  %v7594_v33 = vunpack.i.l.bf16 %v7593_v21 }
 0x4be   : > { %v6196_v8 = vpack.c.bf16 %v7597_v39, %v7594_v33 }
 0x4bf   : > { %v7598_v45 = vpop.trf.xlu1 }
 0x4c0   : > { %5800 = vst [vmem:[%s10226_s14 + $0x1e8] sm:$0xff] %v6196_v8  ;;  %v7602_v28 = vunpack.i.h.bf16 %v7598_v45  ;;  %v7599_v12 = vunpack.i.l.bf16 %v7598_v45 }
 0x4c2   : > { %v6198_v1 = vpack.c.bf16 %v7602_v28, %v7599_v12 }
 0x4c4   : > { %5802 = vst [vmem:[%s10226_s14 + $0x1f8] sm:$0xff] %v6198_v1 }
 0x4c5   : > { %8002 = shalt.err (!%p7999_p3)
}
 0x4c6   : > { %s8003_s14 = scalar_lea.hbm %s10496_s25, 8192  ;;  %s8007_s30 = scalar_lea.hbm %s10586_s3, 16384 }
 0x4c7   : > { %p8004_p7 = scmp.ne.s32.totalorder %s10496_s25, %s8003_s14  ;;  %p8008_p6 = scmp.lt.u32.totalorder %s10496_s25, %s10586_s3 }
 0x4c8   : > { %p8009_p8 = scmp.lt.u32.totalorder %s8007_s30, %s8003_s14  ;;  %p8011_p11 = scmp.lt.u32.totalorder %s8003_s14, %s10496_s25 }
 0x4c9   : > { %p8005_p13 = pnand %p8004_p7, %p8241_p10 }
 0x4ca   : > { %p8010_p12 = por %p8009_p8, %p8008_p6 }
 0x4cb   : > { %p8006_p4 = pneg %p8005_p13 }
 0x4cc   : > { %p8012_p0 = por %p8011_p11, %p8010_p12 }
 0x4ce   : > { %p8013_p5 = pnand %p8012_p0, %p8006_p4 }
 0x4d0   : > { %8016 = shalt.err (!%p8013_p5)
}
 0x4d1   : > { %s8119_s11 = smov 256   ;;  %s8120_s28 = smov 16  }
 0x4d2   : > { %7071 = dma.vmem_to_hbm [thread:$0]  (%p8241_p10), %s10498_s9, 8192, %s10496_s25, %s10509_s12, %s8119_s11, %s8119_s11, %s8120_s28  }
 0x4d3   : > { %s8017_s23 = scalar_lea.vmem %s10506_s18, 8192  ;;  %s8121_s14 = smov [#allocation10]  }
 0x4d4   : > { %p8018_p9 = scmp.ne.s32.totalorder %s10506_s18, %s8017_s23  ;;  %s8021_s26 = sshll.u32 %s8121_s14, 4  ;;  %s8022_s26 = int_to_ptr.vmem [resolvable:$false] %s8021_s26 }
 0x4d5   : > { %s8023_s10 = scalar_lea.vmem %s8022_s26, 16384  ;;  %p8024_p3 = scmp.lt.s32.totalorder %s10506_s18, %s8022_s26 }
 0x4d6   : > { %p8019_p1 = pnand %p8018_p9, %p8241_p10  ;;  %p8025_p7 = scmp.lt.s32.totalorder %s8023_s10, %s8017_s23 }
 0x4d8   : > { %p8020_p2 = pneg %p8019_p1  ;;  %p8026_p13 = por %p8025_p7, %p8024_p3 }
 0x4da   : > { %p8027_p4 = pnand %p8026_p13, %p8020_p2 }
 0x4dc   : > { %8030 = shalt.err (!%p8027_p4)
}
 0x4dd   : > { %s8031_s9 = scalar_lea.hbm %s10504_s21, 8192  ;;  %s8035_s7 = scalar_lea.hbm %s10587_s4, 16384 }
 0x4de   : > { %p8032_p6 = scmp.ne.s32.totalorder %s10504_s21, %s8031_s9  ;;  %p8036_p11 = scmp.lt.u32.totalorder %s10504_s21, %s10587_s4 }
 0x4df   : > { %p8037_p0 = scmp.lt.u32.totalorder %s8035_s7, %s8031_s9  ;;  %p8039_p9 = scmp.lt.u32.totalorder %s8031_s9, %s10504_s21 }
 0x4e0   : > { %p8033_p8 = pnand %p8032_p6, %p8241_p10 }
 0x4e1   : > { %p8038_p5 = por %p8037_p0, %p8036_p11 }
 0x4e2   : > { %p8034_p12 = pneg %p8033_p8 }
 0x4e3   : > { %p8040_p1 = por %p8039_p9, %p8038_p5 }
 0x4e5   : > { %p8041_p2 = pnand %p8040_p1, %p8034_p12 }
 0x4e7   : > { %8044 = shalt.err (!%p8041_p2)
}
 0x4e8   : > { %7072 = dma.vmem_to_hbm [thread:$0]  (%p8241_p10), %s10506_s18, 8192, %s10504_s21, %s10509_s12, %s8116_s5, %s8116_s5, %s8117_s13  }
 0x4e9 PF: > { %s5192_s28 = sand.u32 1, %s8087_s15   ;;  %p11086_p3 = scmp.ne.s32.totalorder %s10768_s24, 0 }
 0x4ea   : > { %p11087_p7 = scmp.ge.s32.totalorder %s8107_s20, 2  ;;  %s5193_s23 = scalar_lea.sflag [#allocation4], %s5192_s28 }
 0x4ec   : > { %p7085_p13 = pnand %p11087_p7, %p11086_p3 }
 0x4ee   : > { %8078 = dma.done.wait (!%p7085_p13), %s5193_s23, 8192  }
 0x4ef   : > { %8080 = vsyncadd (!%p7085_p13), %s5193_s23, 4294959104  ;;  %s5201_s6 = sand.u32 1, %s5342_s22  }
 0x4f0   : > { %s5202_s14 = scalar_lea.sflag [#allocation9], %s5201_s6 }
 0x4f1   : > { %8082 = dma.done.wait (!%p7085_p13), %s5202_s14, 16384  }
 0x4f2   : > { %8084 = vsyncadd (!%p7085_p13), %s5202_s14, 4294950912  ;;  %s25_s20 = sadd.s32 1, %s8107_s20   ;;  %s11088_s15 = smov %s8091_s16 }
 0x4f3   : > { %p22_p10 = scmp.ge.s32.totalorder %s25_s20, 4   ;;  %s11089_s16 = smov %s8095_s17 }
 0x4f4   : > { %s11090_s17 = smov %s8250_s8  ;;  %s11091_s18 = smov %s8103_s19 }
 0x4f5   : > { %s11092_s19 = smov %s11094_s29  ;;  %24 = sbr.rel (!%p22_p10) target bundleno = 9 (0x9), region = 112 }
 0x4fc   :  { %5216 = vsyncpa [#allocation3], 1 }
 0x4fd   :  { %5218 = vsyncpa [#allocation3 + $0x1], 1 }
 0x4fe   :  { %5219 = vsyncpa [#allocation6], 1 }
 0x4ff   :  { %5220 = vsyncpa [#allocation4], 1 }
 0x500   :  { %5222 = vsyncpa [#allocation4 + $0x1], 1 }
 0x501   :  { %5223 = vsyncpa [#allocation9], 1 }
 0x502   :  { %5225 = vsyncpa [#allocation9 + $0x1], 1 }

</bundles_post_ra>
